<compile_context>
chip_gen: v7x
topology: tpu7x:2x2x1
jax: 0.10.0
libtpu: 0.0.40
codegen_flags: <defaults>
</compile_context>

<pallas_src>
import functools

import jax
import jax.numpy as jnp
import numpy as np
from jax.experimental import pallas as pl
from jax.experimental.pallas import tpu as pltpu


def _layernorm(x, gamma, beta, eps=1e-5):
    mu = jnp.mean(x, axis=-1, keepdims=True)
    var = jnp.mean((x - mu) ** 2, axis=-1, keepdims=True)
    return (x - mu) * jax.lax.rsqrt(var + eps) * gamma + beta


def encoder_layer_kernel(x_ref, wq_ref, wk_ref, wv_ref, wc_ref, bc_ref,
                         w1_ref, b1_ref, w2_ref, b2_ref,
                         g1_ref, be1_ref, g2_ref, be2_ref,
                         o_ref, *, n_heads, gt, n, compute_dtype):
    mt, D = x_ref.shape                     # (Gt*n, D)
    kd = D // n_heads

    x = x_ref[...].astype(jnp.float32)      # residual / LN path stays f32
    xc = x.astype(compute_dtype)

    # QKV projections for all Gt groups at once (Mt-row MXU matmuls, f32 acc).
    # The kd**-0.5 attention scaling is pre-folded into Wq in the wrapper.
    q = jnp.dot(xc, wq_ref[...], preferred_element_type=jnp.float32)
    k = jnp.dot(xc, wk_ref[...], preferred_element_type=jnp.float32)
    v = jnp.dot(xc, wv_ref[...], preferred_element_type=jnp.float32)

    # Per-head attention: static loop over heads, single-batch-dim matmuls
    # (batch = groups). Avoids lane-splitting reshapes / 4-D transposes.
    # TODO(synk): optional attention `mask` argument not supported (forward default mask=None)
    head_outs = []
    for h in range(n_heads):
        lo, hi = h * kd, (h + 1) * kd
        qh = q[:, lo:hi].reshape(gt, n, kd)
        kh = k[:, lo:hi].reshape(gt, n, kd)
        vh = v[:, lo:hi].reshape(gt, n, kd).astype(compute_dtype)

        s = jnp.einsum('gid,gjd->gij', qh, kh,
                       preferred_element_type=jnp.float32)      # (Gt, n, n)
        s = s - jnp.max(s, axis=-1, keepdims=True)
        p = jnp.exp(s)
        p = p * pl.reciprocal(jnp.sum(p, axis=-1, keepdims=True), approx=True)

        ah = jnp.einsum('gij,gjd->gid', p.astype(compute_dtype), vh,
                        preferred_element_type=jnp.float32)      # (Gt, n, kd)
        head_outs.append(ah.reshape(mt, kd))

    attn = jnp.concatenate(head_outs, axis=-1)                   # (Mt, D)

    # multi_head_combine + residual, then LayerNorm1 (f32).
    h1 = x + jnp.dot(attn.astype(compute_dtype), wc_ref[...],
                     preferred_element_type=jnp.float32) + bc_ref[...]
    h1 = _layernorm(h1, g1_ref[...], be1_ref[...])

    # feed-forward + residual, then LayerNorm2 (f32).
    ff = jnp.dot(h1.astype(compute_dtype), w1_ref[...],
                 preferred_element_type=jnp.float32) + b1_ref[...]
    ff = jnp.maximum(ff, 0.0)
    ff = jnp.dot(ff.astype(compute_dtype), w2_ref[...],
                 preferred_element_type=jnp.float32) + b2_ref[...]
    out = _layernorm(h1 + ff, g2_ref[...], be2_ref[...])

    o_ref[...] = out.astype(o_ref.dtype)


def _pick_group_tile(G, n, target_rows=256):
    """Largest divisor Gt of G with Gt*n <= ~256 rows and Gt*n % 8 == 0."""
    best = None
    for d in range(1, G + 1):
        if G % d:
            continue
        if d * n <= max(target_rows, n) and (d * n) % 8 == 0:
            best = d
    return best if best is not None else G   # Gt == G -> block == full array


def encoder_layer(x, params, n_heads, compute_dtype=jnp.bfloat16):
    """x: (B, n1, n2, n, D) -> (B, n1, n2, n, D)."""
    B, n1, n2, n, D = x.shape
    assert D % n_heads == 0
    G = B * n1 * n2
    M = G * n
    xf = x.reshape(M, D)

    (wq, wk, wv, wc, bc, w1, b1, w2, b2, g1, be1, g2, be2) = params
    kd = D // n_heads
    scaling = kd ** -0.5

    # Fold attention scaling into Wq once; cast MXU weights to compute dtype.
    # Biases / LN params stay f32 (added in the f32 path).
    wq_c = (wq * scaling).astype(compute_dtype)
    wk_c = wk.astype(compute_dtype)
    wv_c = wv.astype(compute_dtype)
    wc_c = wc.astype(compute_dtype)
    w1_c = w1.astype(compute_dtype)
    w2_c = w2.astype(compute_dtype)
    consts = (wq_c, wk_c, wv_c, wc_c, bc.astype(jnp.float32),
              w1_c, b1.astype(jnp.float32), w2_c, b2.astype(jnp.float32),
              g1.astype(jnp.float32), be1.astype(jnp.float32),
              g2.astype(jnp.float32), be2.astype(jnp.float32))

    Gt = _pick_group_tile(G, n)
    Mt = Gt * n
    grid = (M // Mt,)

    def const_spec(arr):
        nd = arr.ndim
        return pl.BlockSpec(arr.shape, lambda i, _nd=nd: (0,) * _nd)

    kernel = functools.partial(encoder_layer_kernel, n_heads=n_heads,
                               gt=Gt, n=n, compute_dtype=compute_dtype)

    # Advisory cost estimate so XLA schedules around the fused custom call.
    flops = 24 * M * D * D + 4 * M * n * D
    transcendentals = G * n_heads * n * n + 4 * M
    bytes_accessed = (2 * M * D * x.dtype.itemsize
                      + sum(int(c.size) * c.dtype.itemsize for c in consts))

    out = pl.pallas_call(
        kernel,
        out_shape=jax.ShapeDtypeStruct((M, D), x.dtype),
        grid_spec=pltpu.PrefetchScalarGridSpec(
            num_scalar_prefetch=0,
            grid=grid,
            in_specs=[pl.BlockSpec((Mt, D), lambda i: (i, 0))]
                     + [const_spec(c) for c in consts],
            out_specs=pl.BlockSpec((Mt, D), lambda i: (i, 0)),
        ),
        compiler_params=pltpu.CompilerParams(
            dimension_semantics=("parallel",),        # groups are independent
            vmem_limit_bytes=64 * 1024 * 1024),
        cost_estimate=pl.CostEstimate(flops=int(flops),
                                      transcendentals=int(transcendentals),
                                      bytes_accessed=int(bytes_accessed)),
    )(xf, *consts)

    return out.reshape(B, n1, n2, n, D)


def encoder_layer_ref(x, params, n_heads, compute_dtype=jnp.float32):
    """Pure-JAX reference mirroring the PyTorch forward (same matmul dtype)."""
    (wq, wk, wv, wc, bc, w1, b1, w2, b2, g1, be1, g2, be2) = params
    B, n1, n2, n, D = x.shape
    kd = D // n_heads
    scaling = kd ** -0.5
    cd = compute_dtype

    def mm(a, b):
        return jnp.matmul(a.astype(cd), b.astype(cd),
                          preferred_element_type=jnp.float32)

    def heads(t):  # (..., n, D) -> (..., H, n, kd)
        return jnp.swapaxes(t.reshape(B, n1, n2, n, n_heads, kd), -2, -3)

    q = heads(mm(x, wq * scaling))
    k = heads(mm(x, wk))
    v = heads(mm(x, wv))
    score = jnp.matmul(q, jnp.swapaxes(k, -1, -2))            # (B,n1,n2,H,n,n)
    attn = mm(jax.nn.softmax(score, axis=-1), v)              # (B,n1,n2,H,n,kd)
    attn = jnp.swapaxes(attn, -2, -3).reshape(B, n1, n2, n, D)

    h = x + mm(attn, wc) + bc[0]
    h = _layernorm(h, g1[0], be1[0])
    ff = jnp.maximum(mm(h, w1) + b1[0], 0.0)
    ff = mm(ff, w2) + b2[0]
    return _layernorm(h + ff, g2[0], be2[0])


def init_params(key, D, n_heads):
    ks = jax.random.split(key, 9)
    wq = jax.random.normal(ks[0], (D, D), jnp.float32) * 0.1
    wk = jax.random.normal(ks[1], (D, D), jnp.float32) * 0.1
    wv = jax.random.normal(ks[2], (D, D), jnp.float32) * 0.1
    wc = jax.random.normal(ks[3], (D, D), jnp.float32) * 0.1
    bc = jax.random.normal(ks[4], (1, D), jnp.float32) * 0.1
    w1 = jax.random.normal(ks[5], (D, 4 * D), jnp.float32) * 0.1
    b1 = jax.random.normal(ks[6], (1, 4 * D), jnp.float32) * 0.1
    w2 = jax.random.normal(ks[7], (4 * D, D), jnp.float32) * 0.1
    b2 = jax.random.normal(ks[8], (1, D), jnp.float32) * 0.1
    g1 = jnp.ones((1, D), jnp.float32)
    be1 = jnp.zeros((1, D), jnp.float32)
    g2 = jnp.ones((1, D), jnp.float32)
    be2 = jnp.zeros((1, D), jnp.float32)
    return (wq, wk, wv, wc, bc, w1, b1, w2, b2, g1, be1, g2, be2)


if __name__ == "__main__":
    B, n1, n2, n, D = 2, 2, 2, 8, 32
    n_heads = 4

    key = jax.random.PRNGKey(0)
    k_x, k_p = jax.random.split(key)
    x = jax.random.normal(k_x, (B, n1, n2, n, D), jnp.float32)
    params = init_params(k_p, D, n_heads)

    out = jax.block_until_ready(
        encoder_layer(x, params, n_heads, compute_dtype=jnp.bfloat16))
    ref = jax.block_until_ready(
        encoder_layer_ref(x, params, n_heads, compute_dtype=jnp.bfloat16))

    np.testing.assert_allclose(np.asarray(out), np.asarray(ref),
                               rtol=2e-2, atol=2e-2)
    print("KERNEL_OK")
</pallas_src>

<mosaic_0001>
module attributes {stable_mosaic.version = 11 : i64} {
  func.func @encoder_layer_kernel(%arg0: i32, %arg1: memref<64x32xf32, #tpu.memory_space<vmem>>, %arg2: memref<32x32xbf16, #tpu.memory_space<vmem>>, %arg3: memref<32x32xbf16, #tpu.memory_space<vmem>>, %arg4: memref<32x32xbf16, #tpu.memory_space<vmem>>, %arg5: memref<32x32xbf16, #tpu.memory_space<vmem>>, %arg6: memref<1x32xf32, #tpu.memory_space<vmem>>, %arg7: memref<32x128xbf16, #tpu.memory_space<vmem>>, %arg8: memref<1x128xf32, #tpu.memory_space<vmem>>, %arg9: memref<128x32xbf16, #tpu.memory_space<vmem>>, %arg10: memref<1x32xf32, #tpu.memory_space<vmem>>, %arg11: memref<1x32xf32, #tpu.memory_space<vmem>>, %arg12: memref<1x32xf32, #tpu.memory_space<vmem>>, %arg13: memref<1x32xf32, #tpu.memory_space<vmem>>, %arg14: memref<1x32xf32, #tpu.memory_space<vmem>>, %arg15: memref<64x32xf32, #tpu.memory_space<vmem>>) attributes {dimension_semantics = [#tpu.dimension_semantics<parallel>], iteration_bounds = array<i64: 1>, scalar_prefetch = 0 : i64, scratch_operands = 0 : i64, tpu.core_type = #tpu.core_type<tc>, window_params = [{transform_indices = @transform_0, window_bounds = array<i64: 64, 32>}, {pipeline_mode = #tpu.pipeline_mode<synchronous>, transform_indices = @transform_1, window_bounds = array<i64: 32, 32>}, {pipeline_mode = #tpu.pipeline_mode<synchronous>, transform_indices = @transform_2, window_bounds = array<i64: 32, 32>}, {pipeline_mode = #tpu.pipeline_mode<synchronous>, transform_indices = @transform_3, window_bounds = array<i64: 32, 32>}, {pipeline_mode = #tpu.pipeline_mode<synchronous>, transform_indices = @transform_4, window_bounds = array<i64: 32, 32>}, {pipeline_mode = #tpu.pipeline_mode<synchronous>, transform_indices = @transform_5, window_bounds = array<i64: 1, 32>}, {pipeline_mode = #tpu.pipeline_mode<synchronous>, transform_indices = @transform_6, window_bounds = array<i64: 32, 128>}, {pipeline_mode = #tpu.pipeline_mode<synchronous>, transform_indices = @transform_7, window_bounds = array<i64: 1, 128>}, {pipeline_mode = #tpu.pipeline_mode<synchronous>, transform_indices = @transform_8, window_bounds = array<i64: 128, 32>}, {pipeline_mode = #tpu.pipeline_mode<synchronous>, transform_indices = @transform_9, window_bounds = array<i64: 1, 32>}, {pipeline_mode = #tpu.pipeline_mode<synchronous>, transform_indices = @transform_10, window_bounds = array<i64: 1, 32>}, {pipeline_mode = #tpu.pipeline_mode<synchronous>, transform_indices = @transform_11, window_bounds = array<i64: 1, 32>}, {pipeline_mode = #tpu.pipeline_mode<synchronous>, transform_indices = @transform_12, window_bounds = array<i64: 1, 32>}, {pipeline_mode = #tpu.pipeline_mode<synchronous>, transform_indices = @transform_13, window_bounds = array<i64: 1, 32>}, {transform_indices = @transform_14, window_bounds = array<i64: 64, 32>}]} {
    %c0 = arith.constant 0 : index
    %c0_0 = arith.constant 0 : index
    %0 = vector.load %arg1[%c0, %c0_0] : memref<64x32xf32, #tpu.memory_space<vmem>>, vector<64x32xf32>
    %1 = arith.truncf %0 : vector<64x32xf32> to vector<64x32xbf16>
    %c0_1 = arith.constant 0 : index
    %c0_2 = arith.constant 0 : index
    %2 = vector.load %arg2[%c0_1, %c0_2] : memref<32x32xbf16, #tpu.memory_space<vmem>>, vector<32x32xbf16>
    %cst = arith.constant dense<0.000000e+00> : vector<64x32xf32>
    %3 = tpu.matmul %1, %2, %cst {dimension_numbers = #tpu.dot_dimension_numbers<[1], [0], [0], [1], [0, 0, 1, 1], [], []>} : vector<64x32xbf16>, vector<32x32xbf16>, vector<64x32xf32> -> vector<64x32xf32>
    %c0_3 = arith.constant 0 : index
    %c0_4 = arith.constant 0 : index
    %4 = vector.load %arg3[%c0_3, %c0_4] : memref<32x32xbf16, #tpu.memory_space<vmem>>, vector<32x32xbf16>
    %cst_5 = arith.constant dense<0.000000e+00> : vector<64x32xf32>
    %5 = tpu.matmul %1, %4, %cst_5 {dimension_numbers = #tpu.dot_dimension_numbers<[1], [0], [0], [1], [0, 0, 1, 1], [], []>} : vector<64x32xbf16>, vector<32x32xbf16>, vector<64x32xf32> -> vector<64x32xf32>
    %c0_6 = arith.constant 0 : index
    %c0_7 = arith.constant 0 : index
    %6 = vector.load %arg4[%c0_6, %c0_7] : memref<32x32xbf16, #tpu.memory_space<vmem>>, vector<32x32xbf16>
    %cst_8 = arith.constant dense<0.000000e+00> : vector<64x32xf32>
    %7 = tpu.matmul %1, %6, %cst_8 {dimension_numbers = #tpu.dot_dimension_numbers<[1], [0], [0], [1], [0, 0, 1, 1], [], []>} : vector<64x32xbf16>, vector<32x32xbf16>, vector<64x32xf32> -> vector<64x32xf32>
    %8 = vector.extract_strided_slice %3 {offsets = [0, 0], sizes = [64, 8], strides = [1, 1]} : vector<64x32xf32> to vector<64x8xf32>
    %9 = vector.shape_cast %8 : vector<64x8xf32> to vector<8x8x8xf32>
    %10 = vector.extract_strided_slice %5 {offsets = [0, 0], sizes = [64, 8], strides = [1, 1]} : vector<64x32xf32> to vector<64x8xf32>
    %11 = vector.shape_cast %10 : vector<64x8xf32> to vector<8x8x8xf32>
    %12 = vector.extract_strided_slice %7 {offsets = [0, 0], sizes = [64, 8], strides = [1, 1]} : vector<64x32xf32> to vector<64x8xf32>
    %13 = vector.shape_cast %12 : vector<64x8xf32> to vector<8x8x8xf32>
    %14 = arith.truncf %13 : vector<8x8x8xf32> to vector<8x8x8xbf16>
    "tpu.trace_start"() <{level = 10 : i32, message = "gid,gjd->gij"}> : () -> ()
    %cst_9 = arith.constant dense<0.000000e+00> : vector<8x8x8xf32>
    %15 = tpu.matmul %9, %11, %cst_9 {dimension_numbers = #tpu.dot_dimension_numbers<[2], [2], [1], [1], [0, 0, 0, 1, 1, 1], [0], [0]>} : vector<8x8x8xf32>, vector<8x8x8xf32>, vector<8x8x8xf32> -> vector<8x8x8xf32>
    "tpu.trace_stop"() : () -> ()
    %cst_10 = arith.constant dense<0xFF800000> : vector<8x8xf32>
    %16 = vector.multi_reduction <maximumf>, %15, %cst_10 [2] : vector<8x8x8xf32> to vector<8x8xf32>
    %17 = vector.shape_cast %16 : vector<8x8xf32> to vector<8x8x1xf32>
    %18 = vector.broadcast %17 : vector<8x8x1xf32> to vector<8x8x8xf32>
    %19 = arith.subf %15, %18 : vector<8x8x8xf32>
    %20 = math.exp %19 : vector<8x8x8xf32>
    %cst_11 = arith.constant dense<0.000000e+00> : vector<8x8xf32>
    %21 = vector.multi_reduction <add>, %20, %cst_11 [2] : vector<8x8x8xf32> to vector<8x8xf32>
    %22 = vector.shape_cast %21 : vector<8x8xf32> to vector<8x8x1xf32>
    %23 = tpu.reciprocal %22 {approx = true} : vector<8x8x1xf32> -> vector<8x8x1xf32>
    %24 = vector.broadcast %23 : vector<8x8x1xf32> to vector<8x8x8xf32>
    %25 = arith.mulf %20, %24 : vector<8x8x8xf32>
    %26 = arith.truncf %25 : vector<8x8x8xf32> to vector<8x8x8xbf16>
    "tpu.trace_start"() <{level = 10 : i32, message = "gij,gjd->gid"}> : () -> ()
    %cst_12 = arith.constant dense<0.000000e+00> : vector<8x8x8xf32>
    %27 = tpu.matmul %26, %14, %cst_12 {dimension_numbers = #tpu.dot_dimension_numbers<[2], [1], [1], [2], [0, 0, 0, 1, 1, 2], [0], [0]>} : vector<8x8x8xbf16>, vector<8x8x8xbf16>, vector<8x8x8xf32> -> vector<8x8x8xf32>
    "tpu.trace_stop"() : () -> ()
    %28 = vector.shape_cast %27 : vector<8x8x8xf32> to vector<64x8xf32>
    %29 = vector.extract_strided_slice %3 {offsets = [0, 8], sizes = [64, 8], strides = [1, 1]} : vector<64x32xf32> to vector<64x8xf32>
    %30 = vector.shape_cast %29 : vector<64x8xf32> to vector<8x8x8xf32>
    %31 = vector.extract_strided_slice %5 {offsets = [0, 8], sizes = [64, 8], strides = [1, 1]} : vector<64x32xf32> to vector<64x8xf32>
    %32 = vector.shape_cast %31 : vector<64x8xf32> to vector<8x8x8xf32>
    %33 = vector.extract_strided_slice %7 {offsets = [0, 8], sizes = [64, 8], strides = [1, 1]} : vector<64x32xf32> to vector<64x8xf32>
    %34 = vector.shape_cast %33 : vector<64x8xf32> to vector<8x8x8xf32>
    %35 = arith.truncf %34 : vector<8x8x8xf32> to vector<8x8x8xbf16>
    "tpu.trace_start"() <{level = 10 : i32, message = "gid,gjd->gij"}> : () -> ()
    %cst_13 = arith.constant dense<0.000000e+00> : vector<8x8x8xf32>
    %36 = tpu.matmul %30, %32, %cst_13 {dimension_numbers = #tpu.dot_dimension_numbers<[2], [2], [1], [1], [0, 0, 0, 1, 1, 1], [0], [0]>} : vector<8x8x8xf32>, vector<8x8x8xf32>, vector<8x8x8xf32> -> vector<8x8x8xf32>
    "tpu.trace_stop"() : () -> ()
    %cst_14 = arith.constant dense<0xFF800000> : vector<8x8xf32>
    %37 = vector.multi_reduction <maximumf>, %36, %cst_14 [2] : vector<8x8x8xf32> to vector<8x8xf32>
    %38 = vector.shape_cast %37 : vector<8x8xf32> to vector<8x8x1xf32>
    %39 = vector.broadcast %38 : vector<8x8x1xf32> to vector<8x8x8xf32>
    %40 = arith.subf %36, %39 : vector<8x8x8xf32>
    %41 = math.exp %40 : vector<8x8x8xf32>
    %cst_15 = arith.constant dense<0.000000e+00> : vector<8x8xf32>
    %42 = vector.multi_reduction <add>, %41, %cst_15 [2] : vector<8x8x8xf32> to vector<8x8xf32>
    %43 = vector.shape_cast %42 : vector<8x8xf32> to vector<8x8x1xf32>
    %44 = tpu.reciprocal %43 {approx = true} : vector<8x8x1xf32> -> vector<8x8x1xf32>
    %45 = vector.broadcast %44 : vector<8x8x1xf32> to vector<8x8x8xf32>
    %46 = arith.mulf %41, %45 : vector<8x8x8xf32>
    %47 = arith.truncf %46 : vector<8x8x8xf32> to vector<8x8x8xbf16>
    "tpu.trace_start"() <{level = 10 : i32, message = "gij,gjd->gid"}> : () -> ()
    %cst_16 = arith.constant dense<0.000000e+00> : vector<8x8x8xf32>
    %48 = tpu.matmul %47, %35, %cst_16 {dimension_numbers = #tpu.dot_dimension_numbers<[2], [1], [1], [2], [0, 0, 0, 1, 1, 2], [0], [0]>} : vector<8x8x8xbf16>, vector<8x8x8xbf16>, vector<8x8x8xf32> -> vector<8x8x8xf32>
    "tpu.trace_stop"() : () -> ()
    %49 = vector.shape_cast %48 : vector<8x8x8xf32> to vector<64x8xf32>
    %50 = vector.extract_strided_slice %3 {offsets = [0, 16], sizes = [64, 8], strides = [1, 1]} : vector<64x32xf32> to vector<64x8xf32>
    %51 = vector.shape_cast %50 : vector<64x8xf32> to vector<8x8x8xf32>
    %52 = vector.extract_strided_slice %5 {offsets = [0, 16], sizes = [64, 8], strides = [1, 1]} : vector<64x32xf32> to vector<64x8xf32>
    %53 = vector.shape_cast %52 : vector<64x8xf32> to vector<8x8x8xf32>
    %54 = vector.extract_strided_slice %7 {offsets = [0, 16], sizes = [64, 8], strides = [1, 1]} : vector<64x32xf32> to vector<64x8xf32>
    %55 = vector.shape_cast %54 : vector<64x8xf32> to vector<8x8x8xf32>
    %56 = arith.truncf %55 : vector<8x8x8xf32> to vector<8x8x8xbf16>
    "tpu.trace_start"() <{level = 10 : i32, message = "gid,gjd->gij"}> : () -> ()
    %cst_17 = arith.constant dense<0.000000e+00> : vector<8x8x8xf32>
    %57 = tpu.matmul %51, %53, %cst_17 {dimension_numbers = #tpu.dot_dimension_numbers<[2], [2], [1], [1], [0, 0, 0, 1, 1, 1], [0], [0]>} : vector<8x8x8xf32>, vector<8x8x8xf32>, vector<8x8x8xf32> -> vector<8x8x8xf32>
    "tpu.trace_stop"() : () -> ()
    %cst_18 = arith.constant dense<0xFF800000> : vector<8x8xf32>
    %58 = vector.multi_reduction <maximumf>, %57, %cst_18 [2] : vector<8x8x8xf32> to vector<8x8xf32>
    %59 = vector.shape_cast %58 : vector<8x8xf32> to vector<8x8x1xf32>
    %60 = vector.broadcast %59 : vector<8x8x1xf32> to vector<8x8x8xf32>
    %61 = arith.subf %57, %60 : vector<8x8x8xf32>
    %62 = math.exp %61 : vector<8x8x8xf32>
    %cst_19 = arith.constant dense<0.000000e+00> : vector<8x8xf32>
    %63 = vector.multi_reduction <add>, %62, %cst_19 [2] : vector<8x8x8xf32> to vector<8x8xf32>
    %64 = vector.shape_cast %63 : vector<8x8xf32> to vector<8x8x1xf32>
    %65 = tpu.reciprocal %64 {approx = true} : vector<8x8x1xf32> -> vector<8x8x1xf32>
    %66 = vector.broadcast %65 : vector<8x8x1xf32> to vector<8x8x8xf32>
    %67 = arith.mulf %62, %66 : vector<8x8x8xf32>
    %68 = arith.truncf %67 : vector<8x8x8xf32> to vector<8x8x8xbf16>
    "tpu.trace_start"() <{level = 10 : i32, message = "gij,gjd->gid"}> : () -> ()
    %cst_20 = arith.constant dense<0.000000e+00> : vector<8x8x8xf32>
    %69 = tpu.matmul %68, %56, %cst_20 {dimension_numbers = #tpu.dot_dimension_numbers<[2], [1], [1], [2], [0, 0, 0, 1, 1, 2], [0], [0]>} : vector<8x8x8xbf16>, vector<8x8x8xbf16>, vector<8x8x8xf32> -> vector<8x8x8xf32>
    "tpu.trace_stop"() : () -> ()
    %70 = vector.shape_cast %69 : vector<8x8x8xf32> to vector<64x8xf32>
    %71 = vector.extract_strided_slice %3 {offsets = [0, 24], sizes = [64, 8], strides = [1, 1]} : vector<64x32xf32> to vector<64x8xf32>
    %72 = vector.shape_cast %71 : vector<64x8xf32> to vector<8x8x8xf32>
    %73 = vector.extract_strided_slice %5 {offsets = [0, 24], sizes = [64, 8], strides = [1, 1]} : vector<64x32xf32> to vector<64x8xf32>
    %74 = vector.shape_cast %73 : vector<64x8xf32> to vector<8x8x8xf32>
    %75 = vector.extract_strided_slice %7 {offsets = [0, 24], sizes = [64, 8], strides = [1, 1]} : vector<64x32xf32> to vector<64x8xf32>
    %76 = vector.shape_cast %75 : vector<64x8xf32> to vector<8x8x8xf32>
    %77 = arith.truncf %76 : vector<8x8x8xf32> to vector<8x8x8xbf16>
    "tpu.trace_start"() <{level = 10 : i32, message = "gid,gjd->gij"}> : () -> ()
    %cst_21 = arith.constant dense<0.000000e+00> : vector<8x8x8xf32>
    %78 = tpu.matmul %72, %74, %cst_21 {dimension_numbers = #tpu.dot_dimension_numbers<[2], [2], [1], [1], [0, 0, 0, 1, 1, 1], [0], [0]>} : vector<8x8x8xf32>, vector<8x8x8xf32>, vector<8x8x8xf32> -> vector<8x8x8xf32>
    "tpu.trace_stop"() : () -> ()
    %cst_22 = arith.constant dense<0xFF800000> : vector<8x8xf32>
    %79 = vector.multi_reduction <maximumf>, %78, %cst_22 [2] : vector<8x8x8xf32> to vector<8x8xf32>
    %80 = vector.shape_cast %79 : vector<8x8xf32> to vector<8x8x1xf32>
    %81 = vector.broadcast %80 : vector<8x8x1xf32> to vector<8x8x8xf32>
    %82 = arith.subf %78, %81 : vector<8x8x8xf32>
    %83 = math.exp %82 : vector<8x8x8xf32>
    %cst_23 = arith.constant dense<0.000000e+00> : vector<8x8xf32>
    %84 = vector.multi_reduction <add>, %83, %cst_23 [2] : vector<8x8x8xf32> to vector<8x8xf32>
    %85 = vector.shape_cast %84 : vector<8x8xf32> to vector<8x8x1xf32>
    %86 = tpu.reciprocal %85 {approx = true} : vector<8x8x1xf32> -> vector<8x8x1xf32>
    %87 = vector.broadcast %86 : vector<8x8x1xf32> to vector<8x8x8xf32>
    %88 = arith.mulf %83, %87 : vector<8x8x8xf32>
    %89 = arith.truncf %88 : vector<8x8x8xf32> to vector<8x8x8xbf16>
    "tpu.trace_start"() <{level = 10 : i32, message = "gij,gjd->gid"}> : () -> ()
    %cst_24 = arith.constant dense<0.000000e+00> : vector<8x8x8xf32>
    %90 = tpu.matmul %89, %77, %cst_24 {dimension_numbers = #tpu.dot_dimension_numbers<[2], [1], [1], [2], [0, 0, 0, 1, 1, 2], [0], [0]>} : vector<8x8x8xbf16>, vector<8x8x8xbf16>, vector<8x8x8xf32> -> vector<8x8x8xf32>
    "tpu.trace_stop"() : () -> ()
    %91 = vector.shape_cast %90 : vector<8x8x8xf32> to vector<64x8xf32>
    %92 = tpu.concatenate %28, %49, %70, %91 in 1 : vector<64x8xf32>, vector<64x8xf32>, vector<64x8xf32>, vector<64x8xf32> -> vector<64x32xf32>
    %93 = arith.truncf %92 : vector<64x32xf32> to vector<64x32xbf16>
    %c0_25 = arith.constant 0 : index
    %c0_26 = arith.constant 0 : index
    %94 = vector.load %arg5[%c0_25, %c0_26] : memref<32x32xbf16, #tpu.memory_space<vmem>>, vector<32x32xbf16>
    %cst_27 = arith.constant dense<0.000000e+00> : vector<64x32xf32>
    %95 = tpu.matmul %93, %94, %cst_27 {dimension_numbers = #tpu.dot_dimension_numbers<[1], [0], [0], [1], [0, 0, 1, 1], [], []>} : vector<64x32xbf16>, vector<32x32xbf16>, vector<64x32xf32> -> vector<64x32xf32>
    %96 = arith.addf %0, %95 : vector<64x32xf32>
    %c0_28 = arith.constant 0 : index
    %c0_29 = arith.constant 0 : index
    %97 = vector.load %arg6[%c0_28, %c0_29] : memref<1x32xf32, #tpu.memory_space<vmem>>, vector<1x32xf32>
    %98 = vector.broadcast %97 : vector<1x32xf32> to vector<64x32xf32>
    %99 = arith.addf %96, %98 : vector<64x32xf32>
    %c0_30 = arith.constant 0 : index
    %c0_31 = arith.constant 0 : index
    %100 = vector.load %arg11[%c0_30, %c0_31] : memref<1x32xf32, #tpu.memory_space<vmem>>, vector<1x32xf32>
    %c0_32 = arith.constant 0 : index
    %c0_33 = arith.constant 0 : index
    %101 = vector.load %arg12[%c0_32, %c0_33] : memref<1x32xf32, #tpu.memory_space<vmem>>, vector<1x32xf32>
    %cst_34 = arith.constant dense<0.000000e+00> : vector<64xf32>
    %102 = vector.multi_reduction <add>, %99, %cst_34 [1] : vector<64x32xf32> to vector<64xf32>
    %103 = vector.shape_cast %102 : vector<64xf32> to vector<64x1xf32>
    %cst_35 = arith.constant 3.200000e+01 : f32
    %104 = vector.broadcast %cst_35 : f32 to vector<64x1xf32>
    %105 = arith.divf %103, %104 : vector<64x1xf32>
    %106 = vector.broadcast %105 : vector<64x1xf32> to vector<64x32xf32>
    %107 = arith.subf %99, %106 : vector<64x32xf32>
    %108 = arith.mulf %107, %107 : vector<64x32xf32>
    %cst_36 = arith.constant dense<0.000000e+00> : vector<64xf32>
    %109 = vector.multi_reduction <add>, %108, %cst_36 [1] : vector<64x32xf32> to vector<64xf32>
    %110 = vector.shape_cast %109 : vector<64xf32> to vector<64x1xf32>
    %cst_37 = arith.constant 3.200000e+01 : f32
    %111 = vector.broadcast %cst_37 : f32 to vector<64x1xf32>
    %112 = arith.divf %110, %111 : vector<64x1xf32>
    %113 = vector.broadcast %105 : vector<64x1xf32> to vector<64x32xf32>
    %114 = arith.subf %99, %113 : vector<64x32xf32>
    %cst_38 = arith.constant 9.99999974E-6 : f32
    %115 = vector.broadcast %cst_38 : f32 to vector<64x1xf32>
    %116 = arith.addf %112, %115 : vector<64x1xf32>
    %117 = math.rsqrt %116 : vector<64x1xf32>
    %118 = vector.broadcast %117 : vector<64x1xf32> to vector<64x32xf32>
    %119 = arith.mulf %114, %118 : vector<64x32xf32>
    %120 = vector.broadcast %100 : vector<1x32xf32> to vector<64x32xf32>
    %121 = arith.mulf %119, %120 : vector<64x32xf32>
    %122 = vector.broadcast %101 : vector<1x32xf32> to vector<64x32xf32>
    %123 = arith.addf %121, %122 : vector<64x32xf32>
    %124 = arith.truncf %123 : vector<64x32xf32> to vector<64x32xbf16>
    %c0_39 = arith.constant 0 : index
    %c0_40 = arith.constant 0 : index
    %125 = vector.load %arg7[%c0_39, %c0_40] : memref<32x128xbf16, #tpu.memory_space<vmem>>, vector<32x128xbf16>
    %cst_41 = arith.constant dense<0.000000e+00> : vector<64x128xf32>
    %126 = tpu.matmul %124, %125, %cst_41 {dimension_numbers = #tpu.dot_dimension_numbers<[1], [0], [0], [1], [0, 0, 1, 1], [], []>} : vector<64x32xbf16>, vector<32x128xbf16>, vector<64x128xf32> -> vector<64x128xf32>
    %c0_42 = arith.constant 0 : index
    %c0_43 = arith.constant 0 : index
    %127 = vector.load %arg8[%c0_42, %c0_43] : memref<1x128xf32, #tpu.memory_space<vmem>>, vector<1x128xf32>
    %128 = vector.broadcast %127 : vector<1x128xf32> to vector<64x128xf32>
    %129 = arith.addf %126, %128 : vector<64x128xf32>
    %cst_44 = arith.constant 0.000000e+00 : f32
    %130 = vector.broadcast %cst_44 : f32 to vector<64x128xf32>
    %131 = arith.maximumf %129, %130 : vector<64x128xf32>
    %132 = arith.truncf %131 : vector<64x128xf32> to vector<64x128xbf16>
    %c0_45 = arith.constant 0 : index
    %c0_46 = arith.constant 0 : index
    %133 = vector.load %arg9[%c0_45, %c0_46] : memref<128x32xbf16, #tpu.memory_space<vmem>>, vector<128x32xbf16>
    %cst_47 = arith.constant dense<0.000000e+00> : vector<64x32xf32>
    %134 = tpu.matmul %132, %133, %cst_47 {dimension_numbers = #tpu.dot_dimension_numbers<[1], [0], [0], [1], [0, 0, 1, 1], [], []>} : vector<64x128xbf16>, vector<128x32xbf16>, vector<64x32xf32> -> vector<64x32xf32>
    %c0_48 = arith.constant 0 : index
    %c0_49 = arith.constant 0 : index
    %135 = vector.load %arg10[%c0_48, %c0_49] : memref<1x32xf32, #tpu.memory_space<vmem>>, vector<1x32xf32>
    %136 = vector.broadcast %135 : vector<1x32xf32> to vector<64x32xf32>
    %137 = arith.addf %134, %136 : vector<64x32xf32>
    %138 = arith.addf %123, %137 : vector<64x32xf32>
    %c0_50 = arith.constant 0 : index
    %c0_51 = arith.constant 0 : index
    %139 = vector.load %arg13[%c0_50, %c0_51] : memref<1x32xf32, #tpu.memory_space<vmem>>, vector<1x32xf32>
    %c0_52 = arith.constant 0 : index
    %c0_53 = arith.constant 0 : index
    %140 = vector.load %arg14[%c0_52, %c0_53] : memref<1x32xf32, #tpu.memory_space<vmem>>, vector<1x32xf32>
    %cst_54 = arith.constant dense<0.000000e+00> : vector<64xf32>
    %141 = vector.multi_reduction <add>, %138, %cst_54 [1] : vector<64x32xf32> to vector<64xf32>
    %142 = vector.shape_cast %141 : vector<64xf32> to vector<64x1xf32>
    %cst_55 = arith.constant 3.200000e+01 : f32
    %143 = vector.broadcast %cst_55 : f32 to vector<64x1xf32>
    %144 = arith.divf %142, %143 : vector<64x1xf32>
    %145 = vector.broadcast %144 : vector<64x1xf32> to vector<64x32xf32>
    %146 = arith.subf %138, %145 : vector<64x32xf32>
    %147 = arith.mulf %146, %146 : vector<64x32xf32>
    %cst_56 = arith.constant dense<0.000000e+00> : vector<64xf32>
    %148 = vector.multi_reduction <add>, %147, %cst_56 [1] : vector<64x32xf32> to vector<64xf32>
    %149 = vector.shape_cast %148 : vector<64xf32> to vector<64x1xf32>
    %cst_57 = arith.constant 3.200000e+01 : f32
    %150 = vector.broadcast %cst_57 : f32 to vector<64x1xf32>
    %151 = arith.divf %149, %150 : vector<64x1xf32>
    %152 = vector.broadcast %144 : vector<64x1xf32> to vector<64x32xf32>
    %153 = arith.subf %138, %152 : vector<64x32xf32>
    %cst_58 = arith.constant 9.99999974E-6 : f32
    %154 = vector.broadcast %cst_58 : f32 to vector<64x1xf32>
    %155 = arith.addf %151, %154 : vector<64x1xf32>
    %156 = math.rsqrt %155 : vector<64x1xf32>
    %157 = vector.broadcast %156 : vector<64x1xf32> to vector<64x32xf32>
    %158 = arith.mulf %153, %157 : vector<64x32xf32>
    %159 = vector.broadcast %139 : vector<1x32xf32> to vector<64x32xf32>
    %160 = arith.mulf %158, %159 : vector<64x32xf32>
    %161 = vector.broadcast %140 : vector<1x32xf32> to vector<64x32xf32>
    %162 = arith.addf %160, %161 : vector<64x32xf32>
    %c0_59 = arith.constant 0 : index
    %c0_60 = arith.constant 0 : index
    %163 = vector.load %arg15[%c0_59, %c0_60] : memref<64x32xf32, #tpu.memory_space<vmem>>, vector<64x32xf32>
    tpu.vector_store %arg15[%c0_59, %c0_60], %162 {strides = array<i32>} : memref<64x32xf32, #tpu.memory_space<vmem>>, vector<64x32xf32>,
    return
  }
  func.func @transform_0(%arg0: i32) -> (i32, i32) {
    %c0_i32 = arith.constant 0 : i32
    %c0_i32_0 = arith.constant 0 : i32
    return %arg0, %c0_i32 : i32, i32
  }
  func.func @transform_1(%arg0: i32) -> (i32, i32) {
    %c0_i32 = arith.constant 0 : i32
    %c0_i32_0 = arith.constant 0 : i32
    %c0_i32_1 = arith.constant 0 : i32
    return %c0_i32, %c0_i32_0 : i32, i32
  }
  func.func @transform_2(%arg0: i32) -> (i32, i32) {
    %c0_i32 = arith.constant 0 : i32
    %c0_i32_0 = arith.constant 0 : i32
    %c0_i32_1 = arith.constant 0 : i32
    return %c0_i32, %c0_i32_0 : i32, i32
  }
  func.func @transform_3(%arg0: i32) -> (i32, i32) {
    %c0_i32 = arith.constant 0 : i32
    %c0_i32_0 = arith.constant 0 : i32
    %c0_i32_1 = arith.constant 0 : i32
    return %c0_i32, %c0_i32_0 : i32, i32
  }
  func.func @transform_4(%arg0: i32) -> (i32, i32) {
    %c0_i32 = arith.constant 0 : i32
    %c0_i32_0 = arith.constant 0 : i32
    %c0_i32_1 = arith.constant 0 : i32
    return %c0_i32, %c0_i32_0 : i32, i32
  }
  func.func @transform_5(%arg0: i32) -> (i32, i32) {
    %c0_i32 = arith.constant 0 : i32
    %c0_i32_0 = arith.constant 0 : i32
    %c0_i32_1 = arith.constant 0 : i32
    return %c0_i32, %c0_i32_0 : i32, i32
  }
  func.func @transform_6(%arg0: i32) -> (i32, i32) {
    %c0_i32 = arith.constant 0 : i32
    %c0_i32_0 = arith.constant 0 : i32
    %c0_i32_1 = arith.constant 0 : i32
    return %c0_i32, %c0_i32_0 : i32, i32
  }
  func.func @transform_7(%arg0: i32) -> (i32, i32) {
    %c0_i32 = arith.constant 0 : i32
    %c0_i32_0 = arith.constant 0 : i32
    %c0_i32_1 = arith.constant 0 : i32
    return %c0_i32, %c0_i32_0 : i32, i32
  }
  func.func @transform_8(%arg0: i32) -> (i32, i32) {
    %c0_i32 = arith.constant 0 : i32
    %c0_i32_0 = arith.constant 0 : i32
    %c0_i32_1 = arith.constant 0 : i32
    return %c0_i32, %c0_i32_0 : i32, i32
  }
  func.func @transform_9(%arg0: i32) -> (i32, i32) {
    %c0_i32 = arith.constant 0 : i32
    %c0_i32_0 = arith.constant 0 : i32
    %c0_i32_1 = arith.constant 0 : i32
    return %c0_i32, %c0_i32_0 : i32, i32
  }
  func.func @transform_10(%arg0: i32) -> (i32, i32) {
    %c0_i32 = arith.constant 0 : i32
    %c0_i32_0 = arith.constant 0 : i32
    %c0_i32_1 = arith.constant 0 : i32
    return %c0_i32, %c0_i32_0 : i32, i32
  }
  func.func @transform_11(%arg0: i32) -> (i32, i32) {
    %c0_i32 = arith.constant 0 : i32
    %c0_i32_0 = arith.constant 0 : i32
    %c0_i32_1 = arith.constant 0 : i32
    return %c0_i32, %c0_i32_0 : i32, i32
  }
  func.func @transform_12(%arg0: i32) -> (i32, i32) {
    %c0_i32 = arith.constant 0 : i32
    %c0_i32_0 = arith.constant 0 : i32
    %c0_i32_1 = arith.constant 0 : i32
    return %c0_i32, %c0_i32_0 : i32, i32
  }
  func.func @transform_13(%arg0: i32) -> (i32, i32) {
    %c0_i32 = arith.constant 0 : i32
    %c0_i32_0 = arith.constant 0 : i32
    %c0_i32_1 = arith.constant 0 : i32
    return %c0_i32, %c0_i32_0 : i32, i32
  }
  func.func @transform_14(%arg0: i32) -> (i32, i32) {
    %c0_i32 = arith.constant 0 : i32
    %c0_i32_0 = arith.constant 0 : i32
    return %arg0, %c0_i32 : i32, i32
  }
}

</mosaic_0001>

<bundles_post_ra>
// kernel: tpu_custom_call.1
= control target key start
LH: loop header
LB: loop body
LE: loop exit
PB: predicated region body
PF: predicated region fallthrough
CT: control target
= control target key end

     0   :  { %19 = vsyncpa [#allocation3], 0  ;;  %s8474_s0 = inlined_call_operand.hbm [shape: f32[64,32], index: 0, kind: input, shape index: {}]   ;;  %s8475_s1 = inlined_call_operand.hbm [shape: bf16[32,32], index: 1, kind: input, shape index: {}]   ;;  %s8476_s2 = inlined_call_operand.hbm [shape: bf16[32,32], index: 2, kind: input, shape index: {}]   ;;  %s8477_s3 = inlined_call_operand.hbm [shape: bf16[32,32], index: 3, kind: input, shape index: {}]   ;;  %s8478_s4 = inlined_call_operand.hbm [shape: bf16[32,32], index: 4, kind: input, shape index: {}]   ;;  %s8479_s5 = inlined_call_operand.hbm [shape: f32[1,32], index: 5, kind: input, shape index: {}]   ;;  %s8480_s6 = inlined_call_operand.hbm [shape: bf16[32,128], index: 6, kind: input, shape index: {}]   ;;  %s8481_s7 = inlined_call_operand.hbm [shape: f32[1,128], index: 7, kind: input, shape index: {}]   ;;  %s8482_s8 = inlined_call_operand.hbm [shape: bf16[128,32], index: 8, kind: input, shape index: {}]   ;;  %s8483_s9 = inlined_call_operand.hbm [shape: f32[1,32], index: 9, kind: input, shape index: {}]   ;;  %s8484_s10 = inlined_call_operand.hbm [shape: f32[1,32], index: 10, kind: input, shape index: {}]   ;;  %s8485_s11 = inlined_call_operand.hbm [shape: f32[1,32], index: 11, kind: input, shape index: {}]   ;;  %s8486_s12 = inlined_call_operand.hbm [shape: f32[1,32], index: 12, kind: input, shape index: {}]   ;;  %s8487_s13 = inlined_call_operand.hbm [shape: f32[1,32], index: 13, kind: input, shape index: {}]   ;;  %s8488_s14 = inlined_call_operand.hbm [shape: f32[64,32], index: 14, kind: output, shape index: {}]  }
   0x1   :  { %20 = vsyncpa [#allocation6], 0 }
   0x2   :  { %21 = vsyncpa [#allocation9], 0 }
   0x3   :  { %22 = vsyncpa [#allocation12], 0 }
   0x4   :  { %23 = vsyncpa [#allocation15], 0 }
   0x5   :  { %24 = vsyncpa [#allocation18], 0 }
   0x6   :  { %25 = vsyncpa [#allocation21], 0 }
   0x7   :  { %26 = vsyncpa [#allocation24], 0 }
   0x8   :  { %27 = vsyncpa [#allocation4], 0  ;;  %s7065_s29 = smov [#allocation5]   ;;  %s6717_s17 = scalar_lea.hbm %s8475_s1, 256 }
   0x9   :  { %s45_s30 = sshll.u32 %s7065_s29, 4  ;;  %p6718_p0 = scmp.ne.s32.totalorder %s8475_s1, %s6717_s17  ;;  %s46_s30 = int_to_ptr.vmem [resolvable:$true] %s45_s30 }
   0xa   :  { %p6721_p1 = scmp.lt.u32.totalorder %s6717_s17, %s8475_s1 }
   0xc   :  { %p6723_p2 = pnand %p6721_p1, %p6718_p0 }
   0xe   :  { %6726 = shalt.err (!%p6723_p2)
}
   0xf   :  { %s6727_s22 = scalar_lea.vmem %s46_s30, 256  ;;  %p6732_p4 = scmp.lt.s32.totalorder %s46_s30, %s46_s30 }
  0x10   :  { %p6728_p3 = scmp.ne.s32.totalorder %s46_s30, %s6727_s22  ;;  %p6733_p5 = scmp.lt.s32.totalorder %s6727_s22, %s6727_s22 }
  0x12   :  { %p6734_p6 = por %p6733_p5, %p6732_p4 }
  0x14   :  { %p6735_p7 = pnand %p6734_p6, %p6728_p3 }
  0x16   :  { %6738 = shalt.err (!%p6735_p7)
}
  0x17   :  { %s7066_s23 = smov 64   ;;  %s7067_s24 = smov 4  }
  0x18   :  { %51 = dma.hbm_to_vmem [thread:$0]  %s8475_s1, 256, %s46_s30, [#allocation6], %s7066_s23, %s7066_s23, %s7067_s24  }
  0x19   :  { %s7068_s27 = smov [#allocation8]   ;;  %s7069_s29 = smov [#allocation11]  }
  0x1a   :  { %s69_s28 = sshll.u32 %s7068_s27, 4  ;;  %s94_s15 = sshll.u32 %s7069_s29, 4  ;;  %s70_s28 = int_to_ptr.vmem [resolvable:$true] %s69_s28  ;;  %s95_s15 = int_to_ptr.vmem [resolvable:$true] %s94_s15 }
  0x1b   :  { %s6739_s18 = scalar_lea.hbm %s8477_s3, 256 }
  0x1c   :  { %p6740_p8 = scmp.ne.s32.totalorder %s8477_s3, %s6739_s18  ;;  %p6743_p9 = scmp.lt.u32.totalorder %s6739_s18, %s8477_s3 }
  0x1e   :  { %p6745_p10 = pnand %p6743_p9, %p6740_p8 }
  0x20   :  { %6748 = shalt.err (!%p6745_p10)
}
  0x21   :  { %s6749_s1 = scalar_lea.vmem %s70_s28, 256  ;;  %p6754_p12 = scmp.lt.s32.totalorder %s70_s28, %s70_s28 }
  0x22   :  { %p6750_p11 = scmp.ne.s32.totalorder %s70_s28, %s6749_s1  ;;  %p6755_p13 = scmp.lt.s32.totalorder %s6749_s1, %s6749_s1 }
  0x24   :  { %p6756_p0 = por %p6755_p13, %p6754_p12 }
  0x26   :  { %p6757_p1 = pnand %p6756_p0, %p6750_p11 }
  0x28   :  { %6760 = shalt.err (!%p6757_p1)
}
  0x29   :  { %75 = dma.hbm_to_vmem [thread:$0]  %s8477_s3, 256, %s70_s28, [#allocation9], %s7066_s23, %s7066_s23, %s7067_s24  }
  0x2a   :  { %s6761_s29 = scalar_lea.hbm %s8479_s5, 16 }
  0x2b   :  { %p6762_p2 = scmp.ne.s32.totalorder %s8479_s5, %s6761_s29  ;;  %p6765_p3 = scmp.lt.u32.totalorder %s6761_s29, %s8479_s5 }
  0x2d   :  { %p6767_p4 = pnand %p6765_p3, %p6762_p2 }
  0x2f   :  { %6770 = shalt.err (!%p6767_p4)
}
  0x30   :  { %s6771_s20 = scalar_lea.vmem %s95_s15, 16  ;;  %s6775_s21 = scalar_lea.vmem %s95_s15, 32 }
  0x31   :  { %p6772_p5 = scmp.ne.s32.totalorder %s95_s15, %s6771_s20  ;;  %p6776_p6 = scmp.lt.s32.totalorder %s95_s15, %s95_s15 }
  0x32   :  { %p6777_p7 = scmp.lt.s32.totalorder %s6775_s21, %s6771_s20 }
  0x34   :  { %p6778_p8 = por %p6777_p7, %p6776_p6 }
  0x36   :  { %p6779_p9 = pnand %p6778_p8, %p6772_p5 }
  0x38   :  { %6782 = shalt.err (!%p6779_p9)
}
  0x39   :  { %97 = dma.hbm_to_vmem [thread:$0]  %s8479_s5, 16, %s95_s15, [#allocation12]  }
  0x3a   :  { %s7070_s22 = smov [#allocation14]   ;;  %s7071_s30 = smov [#allocation17]  }
  0x3b   :  { %s116_s1 = sshll.u32 %s7070_s22, 4  ;;  %s138_s25 = sshll.u32 %s7071_s30, 4  ;;  %s117_s1 = int_to_ptr.vmem [resolvable:$true] %s116_s1  ;;  %s139_s25 = int_to_ptr.vmem [resolvable:$true] %s138_s25 }
  0x3c   :  { %s6783_s29 = scalar_lea.hbm %s8481_s7, 16 }
  0x3d   :  { %p6784_p10 = scmp.ne.s32.totalorder %s8481_s7, %s6783_s29  ;;  %p6787_p11 = scmp.lt.u32.totalorder %s6783_s29, %s8481_s7 }
  0x3f   :  { %p6789_p12 = pnand %p6787_p11, %p6784_p10 }
  0x41   :  { %6792 = shalt.err (!%p6789_p12)
}
  0x42   :  { %s6793_s5 = scalar_lea.vmem %s117_s1, 16  ;;  %s6797_s15 = scalar_lea.vmem %s117_s1, 32 }
  0x43   :  { %p6794_p13 = scmp.ne.s32.totalorder %s117_s1, %s6793_s5  ;;  %p6798_p0 = scmp.lt.s32.totalorder %s117_s1, %s117_s1 }
  0x44   :  { %p6799_p1 = scmp.lt.s32.totalorder %s6797_s15, %s6793_s5 }
  0x46   :  { %p6800_p2 = por %p6799_p1, %p6798_p0 }
  0x48   :  { %p6801_p3 = pnand %p6800_p2, %p6794_p13 }
  0x4a   :  { %6804 = shalt.err (!%p6801_p3)
}
  0x4b   :  { %119 = dma.hbm_to_vmem [thread:$0]  %s8481_s7, 16, %s117_s1, [#allocation15]  }
  0x4c   :  { %s6805_s22 = scalar_lea.hbm %s8483_s9, 16 }
  0x4d   :  { %p6806_p4 = scmp.ne.s32.totalorder %s8483_s9, %s6805_s22  ;;  %p6809_p5 = scmp.lt.u32.totalorder %s6805_s22, %s8483_s9 }
  0x4f   :  { %p6811_p6 = pnand %p6809_p5, %p6806_p4 }
  0x51   :  { %6814 = shalt.err (!%p6811_p6)
}
  0x52   :  { %s6815_s16 = scalar_lea.vmem %s139_s25, 16  ;;  %s6819_s17 = scalar_lea.vmem %s139_s25, 32 }
  0x53   :  { %p6816_p7 = scmp.ne.s32.totalorder %s139_s25, %s6815_s16  ;;  %p6820_p8 = scmp.lt.s32.totalorder %s139_s25, %s139_s25 }
  0x54   :  { %p6821_p9 = scmp.lt.s32.totalorder %s6819_s17, %s6815_s16 }
  0x56   :  { %p6822_p10 = por %p6821_p9, %p6820_p8 }
  0x58   :  { %p6823_p11 = pnand %p6822_p10, %p6816_p7 }
  0x5a   :  { %6826 = shalt.err (!%p6823_p11)
}
  0x5b   :  { %141 = dma.hbm_to_vmem [thread:$0]  %s8483_s9, 16, %s139_s25, [#allocation18]  }
  0x5c   :  { %s7072_s18 = smov [#allocation20]   ;;  %s7073_s5 = smov [#allocation2]  }
  0x5d   :  { %s158_s19 = sshll.u32 %s7072_s18, 4  ;;  %s33_s15 = sshll.u32 %s7073_s5, 4  ;;  %s159_s19 = int_to_ptr.vmem [resolvable:$true] %s158_s19  ;;  %s34_s15 = int_to_ptr.vmem [resolvable:$true] %s33_s15 }
  0x5e   :  { %s6827_s3 = scalar_lea.hbm %s8485_s11, 16 }
  0x5f   :  { %p6828_p12 = scmp.ne.s32.totalorder %s8485_s11, %s6827_s3  ;;  %p6831_p13 = scmp.lt.u32.totalorder %s6827_s3, %s8485_s11 }
  0x61   :  { %p6833_p0 = pnand %p6831_p13, %p6828_p12 }
  0x63   :  { %6836 = shalt.err (!%p6833_p0)
}
  0x64   :  { %s6837_s9 = scalar_lea.vmem %s159_s19, 16  ;;  %s6841_s25 = scalar_lea.vmem %s159_s19, 32 }
  0x65   :  { %p6838_p1 = scmp.ne.s32.totalorder %s159_s19, %s6837_s9  ;;  %p6842_p2 = scmp.lt.s32.totalorder %s159_s19, %s159_s19 }
  0x66   :  { %p6843_p3 = scmp.lt.s32.totalorder %s6841_s25, %s6837_s9 }
  0x68   :  { %p6844_p4 = por %p6843_p3, %p6842_p2 }
  0x6a   :  { %p6845_p5 = pnand %p6844_p4, %p6838_p1 }
  0x6c   :  { %6848 = shalt.err (!%p6845_p5)
}
  0x6d   :  { %161 = dma.hbm_to_vmem [thread:$0]  %s8485_s11, 16, %s159_s19, [#allocation21]  }
  0x6e   :  { %s6849_s7 = scalar_lea.hbm %s8474_s0, 1024 }
  0x6f   :  { %p6850_p6 = scmp.ne.s32.totalorder %s8474_s0, %s6849_s7  ;;  %p6853_p7 = scmp.lt.u32.totalorder %s6849_s7, %s8474_s0 }
  0x71   :  { %p6855_p8 = pnand %p6853_p7, %p6850_p6 }
  0x73   :  { %6858 = shalt.err (!%p6855_p8)
}
  0x74   :  { %s6859_s21 = scalar_lea.vmem %s34_s15, 1024  ;;  %p6864_p10 = scmp.lt.s32.totalorder %s34_s15, %s34_s15 }
  0x75   :  { %p6860_p9 = scmp.ne.s32.totalorder %s34_s15, %s6859_s21  ;;  %p6865_p11 = scmp.lt.s32.totalorder %s6859_s21, %s6859_s21 }
  0x77   :  { %p6866_p12 = por %p6865_p11, %p6864_p10 }
  0x79   :  { %p6867_p13 = pnand %p6866_p12, %p6860_p9 }
  0x7b   :  { %6870 = shalt.err (!%p6867_p13)
}
  0x7c   :  { %s7074_s11 = smov 128   ;;  %s7075_s19 = smov 8  }
  0x7d   :  { %39 = dma.hbm_to_vmem [thread:$0]  %s8474_s0, 1024, %s34_s15, [#allocation3], %s7074_s11, %s7074_s11, %s7075_s19  }
  0x7e   :  { %s7076_s22 = smov [#allocation7]   ;;  %s7077_s26 = smov [#allocation10]  }
  0x7f   :  { %s57_s30 = sshll.u32 %s7076_s22, 4  ;;  %s81_s9 = sshll.u32 %s7077_s26, 4  ;;  %s58_s30 = int_to_ptr.vmem [resolvable:$true] %s57_s30  ;;  %s82_s9 = int_to_ptr.vmem [resolvable:$true] %s81_s9 }
  0x80   :  { %s6871_s29 = scalar_lea.hbm %s8476_s2, 256 }
  0x81   :  { %p6872_p0 = scmp.ne.s32.totalorder %s8476_s2, %s6871_s29  ;;  %p6875_p1 = scmp.lt.u32.totalorder %s6871_s29, %s8476_s2 }
  0x83   :  { %p6877_p2 = pnand %p6875_p1, %p6872_p0 }
  0x85   :  { %6880 = shalt.err (!%p6877_p2)
}
  0x86   :  { %s6881_s0 = scalar_lea.vmem %s58_s30, 256  ;;  %p6886_p4 = scmp.lt.s32.totalorder %s58_s30, %s58_s30 }
  0x87   :  { %p6882_p3 = scmp.ne.s32.totalorder %s58_s30, %s6881_s0  ;;  %p6887_p5 = scmp.lt.s32.totalorder %s6881_s0, %s6881_s0 }
  0x89   :  { %p6888_p6 = por %p6887_p5, %p6886_p4 }
  0x8b   :  { %p6889_p7 = pnand %p6888_p6, %p6882_p3 }
  0x8d   :  { %6892 = shalt.err (!%p6889_p7)
}
  0x8e   :  { %63 = dma.hbm_to_vmem [thread:$0]  %s8476_s2, 256, %s58_s30, [#allocation6], %s7066_s23, %s7066_s23, %s7067_s24  }
  0x8f   :  { %s6893_s21 = scalar_lea.hbm %s8478_s4, 256 }
  0x90   :  { %p6894_p8 = scmp.ne.s32.totalorder %s8478_s4, %s6893_s21  ;;  %p6897_p9 = scmp.lt.u32.totalorder %s6893_s21, %s8478_s4 }
  0x92   :  { %p6899_p10 = pnand %p6897_p9, %p6894_p8 }
  0x94   :  { %6902 = shalt.err (!%p6899_p10)
}
  0x95   :  { %s6903_s25 = scalar_lea.vmem %s82_s9, 256  ;;  %p6908_p12 = scmp.lt.s32.totalorder %s82_s9, %s82_s9 }
  0x96   :  { %p6904_p11 = scmp.ne.s32.totalorder %s82_s9, %s6903_s25  ;;  %p6909_p13 = scmp.lt.s32.totalorder %s6903_s25, %s6903_s25 }
  0x98   :  { %p6910_p0 = por %p6909_p13, %p6908_p12 }
  0x9a   :  { %p6911_p1 = pnand %p6910_p0, %p6904_p11 }
  0x9c   :  { %6914 = shalt.err (!%p6911_p1)
}
  0x9d   :  { %87 = dma.hbm_to_vmem [thread:$0]  %s8478_s4, 256, %s82_s9, [#allocation9], %s7066_s23, %s7066_s23, %s7067_s24  }
  0x9e   :  { %s7078_s27 = smov [#allocation13]   ;;  %s7079_s16 = smov [#allocation16]  }
  0x9f   :  { %s103_s29 = sshll.u32 %s7078_s27, 4  ;;  %s125_s17 = sshll.u32 %s7079_s16, 4  ;;  %s104_s29 = int_to_ptr.vmem [resolvable:$true] %s103_s29  ;;  %s126_s17 = int_to_ptr.vmem [resolvable:$true] %s125_s17 }
  0xa0   :  { %s6915_s0 = scalar_lea.hbm %s8480_s6, 256 }
  0xa1   :  { %p6916_p2 = scmp.ne.s32.totalorder %s8480_s6, %s6915_s0  ;;  %p6919_p3 = scmp.lt.u32.totalorder %s6915_s0, %s8480_s6 }
  0xa3   :  { %p6921_p4 = pnand %p6919_p3, %p6916_p2 }
  0xa5   :  { %6924 = shalt.err (!%p6921_p4)
}
  0xa6   :  { %s6925_s4 = scalar_lea.vmem %s104_s29, 256  ;;  %p6930_p6 = scmp.lt.s32.totalorder %s104_s29, %s104_s29 }
  0xa7   :  { %p6926_p5 = scmp.ne.s32.totalorder %s104_s29, %s6925_s4  ;;  %p6931_p7 = scmp.lt.s32.totalorder %s6925_s4, %s6925_s4 }
  0xa9   :  { %p6932_p8 = por %p6931_p7, %p6930_p6 }
  0xab   :  { %p6933_p9 = pnand %p6932_p8, %p6926_p5 }
  0xad   :  { %6936 = shalt.err (!%p6933_p9)
}
  0xae   :  { %109 = dma.hbm_to_vmem [thread:$0]  %s8480_s6, 256, %s104_s29, [#allocation12], %s7066_s23, %s7066_s23, %s7067_s24  }
  0xaf   :  { %s6937_s22 = scalar_lea.hbm %s8482_s8, 1024 }
  0xb0   :  { %p6938_p10 = scmp.ne.s32.totalorder %s8482_s8, %s6937_s22  ;;  %p6941_p11 = scmp.lt.u32.totalorder %s6937_s22, %s8482_s8 }
  0xb2   :  { %p6943_p12 = pnand %p6941_p11, %p6938_p10 }
  0xb4   :  { %6946 = shalt.err (!%p6943_p12)
}
  0xb5   :  { %s6947_s27 = scalar_lea.vmem %s126_s17, 1024  ;;  %p6952_p0 = scmp.lt.s32.totalorder %s126_s17, %s126_s17 }
  0xb6   :  { %p6948_p13 = scmp.ne.s32.totalorder %s126_s17, %s6947_s27  ;;  %p6953_p1 = scmp.lt.s32.totalorder %s6947_s27, %s6947_s27 }
  0xb8   :  { %p6954_p2 = por %p6953_p1, %p6952_p0 }
  0xba   :  { %p6955_p3 = pnand %p6954_p2, %p6948_p13 }
  0xbc   :  { %6958 = shalt.err (!%p6955_p3)
}
  0xbd   :  { %131 = dma.hbm_to_vmem [thread:$0]  %s8482_s8, 1024, %s126_s17, [#allocation15], %s7066_s23, %s7066_s23, %s7067_s24  }
  0xbe   :  { %s7080_s16 = smov [#allocation19]   ;;  %s7081_s1 = smov [#allocation22]  }
  0xbf   :  { %s148_s7 = sshll.u32 %s7080_s16, 4  ;;  %s168_s0 = sshll.u32 %s7081_s1, 4  ;;  %s149_s7 = int_to_ptr.vmem [resolvable:$true] %s148_s7  ;;  %s169_s0 = int_to_ptr.vmem [resolvable:$true] %s168_s0 }
  0xc0   :  { %s6959_s5 = scalar_lea.hbm %s8484_s10, 16 }
  0xc1   :  { %p6960_p4 = scmp.ne.s32.totalorder %s8484_s10, %s6959_s5  ;;  %p6963_p5 = scmp.lt.u32.totalorder %s6959_s5, %s8484_s10 }
  0xc3   :  { %p6965_p6 = pnand %p6963_p5, %p6960_p4 }
  0xc5   :  { %6968 = shalt.err (!%p6965_p6)
}
  0xc6   :  { %s6969_s8 = scalar_lea.vmem %s149_s7, 16  ;;  %s6973_s23 = scalar_lea.vmem %s149_s7, 32 }
  0xc7   :  { %p6970_p7 = scmp.ne.s32.totalorder %s149_s7, %s6969_s8  ;;  %p6974_p8 = scmp.lt.s32.totalorder %s149_s7, %s149_s7 }
  0xc8   :  { %p6975_p9 = scmp.lt.s32.totalorder %s6973_s23, %s6969_s8 }
  0xca   :  { %p6976_p10 = por %p6975_p9, %p6974_p8 }
  0xcc   :  { %p6977_p11 = pnand %p6976_p10, %p6970_p7 }
  0xce   :  { %6980 = shalt.err (!%p6977_p11)
}
  0xcf   :  { %151 = dma.hbm_to_vmem [thread:$0]  %s8484_s10, 16, %s149_s7, [#allocation18]  }
  0xd0   :  { %s6981_s22 = scalar_lea.hbm %s8486_s12, 16 }
  0xd1   :  { %p6982_p12 = scmp.ne.s32.totalorder %s8486_s12, %s6981_s22  ;;  %p6985_p13 = scmp.lt.u32.totalorder %s6981_s22, %s8486_s12 }
  0xd3   :  { %p6987_p0 = pnand %p6985_p13, %p6982_p12 }
  0xd5   :  { %6990 = shalt.err (!%p6987_p0)
}
  0xd6   :  { %s6991_s27 = scalar_lea.vmem %s169_s0, 16  ;;  %s6995_s6 = scalar_lea.vmem %s169_s0, 32 }
  0xd7   :  { %p6992_p1 = scmp.ne.s32.totalorder %s169_s0, %s6991_s27  ;;  %p6996_p2 = scmp.lt.s32.totalorder %s169_s0, %s169_s0 }
  0xd8   :  { %p6997_p3 = scmp.lt.s32.totalorder %s6995_s6, %s6991_s27 }
  0xda   :  { %p6998_p4 = por %p6997_p3, %p6996_p2 }
  0xdc   :  { %p6999_p5 = pnand %p6998_p4, %p6992_p1 }
  0xde   :  { %7002 = shalt.err (!%p6999_p5)
}
  0xdf   :  { %171 = dma.hbm_to_vmem [thread:$0]  %s8486_s12, 16, %s169_s0, [#allocation21]  }
  0xe0   :  { %s7082_s16 = smov [#allocation23]   ;;  %s7003_s18 = scalar_lea.hbm %s8487_s13, 16 }
  0xe1   :  { %s178_s7 = sshll.u32 %s7082_s16, 4  ;;  %p7004_p6 = scmp.ne.s32.totalorder %s8487_s13, %s7003_s18  ;;  %s179_s7 = int_to_ptr.vmem [resolvable:$true] %s178_s7 }
  0xe2   :  { %p7007_p7 = scmp.lt.u32.totalorder %s7003_s18, %s8487_s13 }
  0xe4   :  { %p7009_p8 = pnand %p7007_p7, %p7004_p6 }
  0xe6   :  { %7012 = shalt.err (!%p7009_p8)
}
  0xe7   :  { %s7013_s21 = scalar_lea.vmem %s179_s7, 16  ;;  %s7017_s12 = scalar_lea.vmem %s179_s7, 32 }
  0xe8   :  { %p7014_p9 = scmp.ne.s32.totalorder %s179_s7, %s7013_s21  ;;  %p7018_p10 = scmp.lt.s32.totalorder %s179_s7, %s179_s7 }
  0xe9   :  { %p7019_p11 = scmp.lt.s32.totalorder %s7017_s12, %s7013_s21 }
  0xeb   :  { %p7020_p12 = por %p7019_p11, %p7018_p10 }
  0xed   :  { %p7021_p13 = pnand %p7020_p12, %p7014_p9 }
  0xef   :  { %7024 = shalt.err (!%p7021_p13)
}
  0xf0   :  { %181 = dma.hbm_to_vmem [thread:$0]  %s8487_s13, 16, %s179_s7, [#allocation24]  }
  0xf1   :  { %7047 = dma.done.wait [#allocation3], 1024  }
  0xf2   :  { %7048 = vsyncadd [#allocation3], 4294966272 }
  0xf3   :  { %7049 = dma.done.wait [#allocation6], 512  }
  0xf4   :  { %7050 = vsyncadd [#allocation6], 4294966784 }
  0xf5   :  { %7051 = dma.done.wait [#allocation9], 512  }
  0xf6   :  { %7052 = vsyncadd [#allocation9], 4294966784 }
  0xf7   :  { %7053 = dma.done.wait [#allocation12], 272  }
  0xf8   :  { %7054 = vsyncadd [#allocation12], 4294967024 }
  0xf9   :  { %7055 = dma.done.wait [#allocation15], 1040  }
  0xfa   :  { %7056 = vsyncadd [#allocation15], 4294966256 }
  0xfb   :  { %7057 = dma.done.wait [#allocation18], 32  }
  0xfc   :  { %7058 = vsyncadd [#allocation18], 4294967264 }
  0xfd   :  { %7059 = dma.done.wait [#allocation21], 32  }
  0xfe   :  { %7060 = vsyncadd [#allocation21], 4294967264 }
  0xff   :  { %7061 = dma.done.wait [#allocation24], 16  }
 0x100   :  { %7062 = vsyncadd [#allocation24], 4294967280  ;;  %v6531_v0 = vld [vmem:[#allocation5] sm:$0xff]   ;;  %v6532_v1 = vld [vmem:[#allocation5 + $0x8] sm:$0xff]   ;;  %vm253_vm0 = vcmask 261120   ;;  %v7083_v18 = vmov 0.0  }
 0x101   :  { %6009 = vmatprep.subr.bf16.mxu1 %v6531_v0  ;;  %v225_v2 = vld [vmem:[#allocation2] sm:$0xff]  ;;  %v226_v3 = vld [vmem:[#allocation2 + $0x8] sm:$0xff]  ;;  %v227_v5 = vld [vmem:[#allocation2 + $0x10] sm:$0xff]  ;;  %vm7084_vm1 = vmmov 0   ;;  %vm501_vm2 = vcmask 64512   ;;  %vm1209_vm3 = vcmask 1043456  }
 0x102   :  { %6010 = vmatpush3.bf16.msra.mxu1 %v6531_v0  ;;  %v233_v4 = vpack.c.bf16 %v226_v3, %v225_v2  ;;  %v228_v6 = vld [vmem:[#allocation2 + $0x18] sm:$0xff]  ;;  %v229_v7 = vld [vmem:[#allocation2 + $0x20] sm:$0xff]  ;;  %v230_v8 = vld [vmem:[#allocation2 + $0x28] sm:$0xff]  ;;  %s7085_s13 = smov 120   ;;  %s7086_s23 = smov 112   ;;  %vm4999_vm4 = vcmask 130048  }
 0x103   :  { %6011 = vmatprep.subr.bf16.mxu1 %v6532_v1  ;;  %v6533_v9 = vld [vmem:[#allocation7] sm:$0xff]   ;;  %v234_v10 = vpack.c.bf16 %v228_v6, %v227_v5  ;;  %v6534_v11 = vld [vmem:[#allocation7 + $0x8] sm:$0xff]   ;;  %v235_v12 = vpack.c.bf16 %v230_v8, %v229_v7  ;;  %v6535_v16 = vld [vmem:[#allocation8] sm:$0xff]   ;;  %s7087_s24 = smov 104   ;;  %s7088_s17 = smov 16   ;;  %vm5008_vm5 = vcmask 195584  }
 0x104   :  { %6013 = vmatprep.mubr.msk.bf16.mxu1 %vm253_vm0, %v233_v4  ;;  %6037 = vmatprep.mubr.msk.bf16.mxu0 %vm253_vm0, %v233_v4  ;;  %v231_v13 = vld [vmem:[#allocation2 + $0x30] sm:$0xff]  ;;  %v232_v14 = vld [vmem:[#allocation2 + $0x38] sm:$0xff]  ;;  %v6536_v17 = vld [vmem:[#allocation8 + $0x8] sm:$0xff]   ;;  %s7089_s3 = smov 24   ;;  %s7090_s28 = smov [#allocation25]  }
 0x105   :  { %v236_v15 = vpack.c.bf16 %v232_v14, %v231_v13  ;;  %6033 = vmatprep.subr.bf16.mxu0 %v6535_v16  ;;  %s5679_s22 = sshll.u32 %s7090_s28, 4  ;;  %s5680_s22 = int_to_ptr.vmem [resolvable:$true] %s5679_s22 }
 0x106   :  { %6012 = vmatpush3.bf16.msra.mxu1 %v6532_v1  ;;  %6034 = vmatpush3.bf16.msra.mxu0 %v6535_v16  ;;  %s7025_s26 = scalar_lea.vmem %s5680_s22, 1024  ;;  %p7030_p1 = scmp.lt.s32.totalorder %s5680_s22, %s5680_s22 }
 0x107   :  { %6021 = vmatprep.subr.bf16.mxu1 %v6533_v9  ;;  %6035 = vmatprep.subr.bf16.mxu0 %v6536_v17  ;;  %p7026_p0 = scmp.ne.s32.totalorder %s5680_s22, %s7025_s26  ;;  %p7031_p2 = scmp.lt.s32.totalorder %s7025_s26, %s7025_s26 }
 0x109   :  { %6014 = vmatmul.mubr.msk.bf16.vlgmr.msra.gmra.mrb[0].mxu1 %vm253_vm0, %v234_v10  ;;  %p7032_p3 = por %p7031_p2, %p7030_p1 }
 0x10a   :  { %6017 = vmatprep.mubr.msk.bf16.mxu1 %vm253_vm0, %v235_v12  ;;  %6022 = vmatpush3.bf16.msra.mxu1 %v6533_v9 }
 0x10b   :  { %6023 = vmatprep.subr.bf16.mxu1 %v6534_v11  ;;  %6036 = vmatpush3.bf16.msra.mxu0 %v6536_v17  ;;  %p7033_p4 = pnand %p7032_p3, %p7026_p0 }
 0x10c   :  { %6065 = vmatprep.subr.mxu0 %v7083_v18 }
 0x10e   :  { %6024 = vmatpush3.bf16.msra.mxu1 %v6534_v11  ;;  %6038 = vmatmul.mubr.msk.bf16.vlgmr.msra.gmra.mrb[0].mxu0 %vm253_vm0, %v234_v10 }
 0x10f   :  { %6041 = vmatprep.mubr.msk.bf16.mxu0 %vm253_vm0, %v235_v12  ;;  %6045 = vmatprep.subr.mxu1 %v7083_v18 }
 0x111   :  { %6018 = vmatmul.mubr.msk.bf16.gmra.mrb[4].mxu1 %vm253_vm0, %v236_v15 }
 0x112   :  { %6025 = vmatprep.mubr.msk.bf16.mxu1 %vm253_vm0, %v233_v4 }
 0x116   :  { %6042 = vmatmul.mubr.msk.bf16.gmra.mrb[4].mxu0 %vm253_vm0, %v236_v15 }
 0x117   :  { %6067 = vmatprep.mubr.msk.f32.mxu0 %vm7084_vm1, %v7083_v18 }
 0x119   :  { %6026 = vmatmul.mubr.msk.bf16.vlgmr.msra.gmra.mrb[8].mxu1 %vm253_vm0, %v234_v10 }
 0x11a   :  { %6029 = vmatprep.mubr.msk.bf16.mxu1 %vm253_vm0, %v235_v12 }
 0x121   :  { %6030 = vmatmul.mubr.msk.bf16.gmra.mrb[12].mxu1 %vm253_vm0, %v236_v15 }
 0x122   :  { %6047 = vmatprep.mubr.msk.f32.mxu1 %vm7084_vm1, %v7083_v18 }
 0x1dc   :  { %v7373_v19 = vpop.f32.mrb[0].mxu1 }
 0x1dd   :  { %v7375_v20 = vpop.f32.mrb[1].mxu1 }
 0x1de   :  { %v7377_v21 = vpop.f32.mrb[2].mxu1 }
 0x1df   :  { %v7379_v22 = vpop.f32.mrb[3].mxu1 }
 0x1e1   :  { %v7461_v35 = vpop.f32.mrb[0].mxu0 }
 0x1e2   :  { %v462_v36 = vpop.f32.mrb[1].mxu0 }
 0x1e3   :  { %v7463_v37 = vpop.f32.mrb[2].mxu0  ;;  %v7473_v43 = vpack.c.bf16 %v462_v36, %v462_v36 }
 0x1e4   :  { %v7381_v23 = vpop.f32.mrb[4].mxu1  ;;  %v465_v38 = vpop.f32.mrb[3].mxu0 }
 0x1e5   :  { %v7383_v24 = vpop.f32.mrb[5].mxu1  ;;  %v7475_v44 = vpack.c.bf16 %v465_v38, %v465_v38  ;;  %v1211_v45 = vsel %vm1209_vm3, %v7473_v43, 0 }
 0x1e6   :  { %v7385_v25 = vpop.f32.mrb[6].mxu1 }
 0x1e7   :  { %v7387_v26 = vpop.f32.mrb[7].mxu1  ;;  %v1257_v46 = vsel %vm1209_vm3, %v7475_v44, 0 }
 0x1e9   :  { %v7465_v39 = vpop.f32.mrb[4].mxu0 }
 0x1ea   :  { %v7467_v40 = vpop.f32.mrb[5].mxu0 }
 0x1eb   :  { %v7469_v41 = vpop.f32.mrb[6].mxu0 }
 0x1ec   :  { %v7389_v27 = vpop.f32.mrb[8].mxu1  ;;  %v7471_v42 = vpop.f32.mrb[7].mxu0 }
 0x1ed   :  { %v7391_v28 = vpop.f32.mrb[9].mxu1 }
 0x1ee   :  { %v7393_v29 = vpop.f32.mrb[10].mxu1  ;;  %6046 = vmatpush3.xpose.msk.msra.mxu1 %vm501_vm2, %v7391_v28 }
 0x1ef   :  { %v7397_v30 = vpop.f32.mrb[11].mxu1  ;;  %6050 = vmatprep.subr.mxu1 %v7083_v18 }
 0x1f1   :  { %6048 = vmatmul.mubr.msk.f32.vlgmr.msra.gmra.mrb[16].mxu1 %vm501_vm2, %v7375_v20 }
 0x1f2   :  { %6051 = vmatpush3.xpose.msk.msra.mxu1 %vm501_vm2, %v7397_v30  ;;  %6052 = vmatprep.mubr.msk.f32.mxu1 %vm7084_vm1, %v7083_v18 }
 0x1f3   :  { %6055 = vmatprep.subr.mxu1 %v7083_v18 }
 0x1f4   :  { %v7407_v31 = vpop.f32.mrb[12].mxu1 }
 0x1f5   :  { %v7409_v32 = vpop.f32.mrb[13].mxu1  ;;  %6053 = vmatmul.mubr.msk.f32.vlgmr.msra.gmra.mrb[18].mxu1 %vm501_vm2, %v7379_v22 }
 0x1f6   :  { %6056 = vmatpush3.xpose.msk.msra.mxu1 %vm501_vm2, %v7389_v27  ;;  %6066 = vmatpush3.xpose.msk.msra.mxu0 %vm501_vm2, %v7409_v32  ;;  %v7417_v33 = vpop.f32.mrb[14].mxu1 }
 0x1f7   :  { %6057 = vmatprep.mubr.msk.f32.mxu1 %vm7084_vm1, %v7083_v18  ;;  %6060 = vmatprep.subr.mxu1 %v7083_v18  ;;  %v7422_v34 = vpop.f32.mrb[15].mxu1 }
 0x1f8   :  { %6075 = vmatprep.subr.mxu0 %v7083_v18 }
 0x1f9   :  { %6058 = vmatmul.mubr.msk.f32.vlgmr.msra.gmra.mrb[20].mxu1 %vm501_vm2, %v7373_v19  ;;  %6068 = vmatmul.mubr.msk.f32.vlgmr.msra.gmra.mrb[8].mxu0 %vm501_vm2, %v7383_v24 }
 0x1fa   :  { %6061 = vmatpush3.xpose.msk.msra.mxu1 %vm501_vm2, %v7393_v29  ;;  %6076 = vmatpush3.xpose.msk.msra.mxu0 %vm501_vm2, %v7407_v31 }
 0x1fb   :  { %6062 = vmatprep.mubr.msk.f32.mxu1 %vm7084_vm1, %v7083_v18  ;;  %6077 = vmatprep.mubr.msk.f32.mxu0 %vm7084_vm1, %v7083_v18 }
 0x1fc   :  { %6070 = vmatprep.subr.mxu1 %v7083_v18  ;;  %6085 = vmatprep.subr.bf16.mxu0 %v7083_v18 }
 0x1fd   :  { %6063 = vmatmul.mubr.msk.f32.vlgmr.msra.gmra.mrb[22].mxu1 %vm501_vm2, %v7377_v21  ;;  %6078 = vmatmul.mubr.msk.f32.vlgmr.msra.gmra.mrb[10].mxu0 %vm501_vm2, %v7381_v23 }
 0x1fe   :  { %6071 = vmatpush3.xpose.msk.msra.mxu1 %vm501_vm2, %v7422_v34  ;;  %6072 = vmatprep.mubr.msk.f32.mxu1 %vm7084_vm1, %v7083_v18 }
 0x1ff   :  { %6080 = vmatprep.subr.mxu1 %v7083_v18  ;;  %6087 = vmatprep.mubr.msk.bf16.mxu0 %vm7084_vm1, %v7083_v18 }
 0x200   :  { %6086 = vmatpush3.bf16.msra.mxu0 %v1211_v45 }
 0x201   :  { %6073 = vmatmul.mubr.msk.f32.vlgmr.msra.gmra.mrb[24].mxu1 %vm501_vm2, %v7387_v26  ;;  %6097 = vmatprep.subr.bf16.mxu0 %v7083_v18 }
 0x202   :  { %6081 = vmatpush3.xpose.msk.msra.mxu1 %vm501_vm2, %v7417_v33  ;;  %6082 = vmatprep.mubr.msk.f32.mxu1 %vm7084_vm1, %v7083_v18 }
 0x203   :  { %6091 = vmatprep.subr.bf16.mxu1 %v7083_v18 }
 0x205   :  { %6083 = vmatmul.mubr.msk.f32.vlgmr.msra.gmra.mrb[26].mxu1 %vm501_vm2, %v7385_v25 }
 0x206   :  { %6093 = vmatprep.mubr.msk.bf16.mxu1 %vm7084_vm1, %v7083_v18  ;;  %6092 = vmatpush3.bf16.msra.mxu1 %v1257_v46 }
 0x207   :  { %6103 = vmatprep.subr.bf16.mxu1 %v7083_v18 }
 0x2c4   :  { %v574_v47 = vpop.f32.mrb[16].mxu1 }
 0x2c5   :  { %v6049_v48 = vpop.f32.mrb[17].mxu1  ;;  %v1110_v49 = vsel %vm501_vm2, %v574_v47, -inf }
 0x2c6   :  { %1111 = vmax.xlane.f32.xlu0 %v1110_v49 }
 0x2c8   :  { %v650_v50 = vpop.f32.mrb[18].mxu1 }
 0x2c9   :  { %v6054_v51 = vpop.f32.mrb[19].mxu1  ;;  %v1113_v52 = vsel %vm501_vm2, %v650_v50, -inf }
 0x2ca   :  { %1114 = vmax.xlane.f32.xlu0 %v1113_v52 }
 0x2cc   :  { %v726_v53 = vpop.f32.mrb[20].mxu1  ;;  %v878_v54 = vpop.f32.mrb[8].mxu0 }
 0x2cd   :  { %v6059_v55 = vpop.f32.mrb[21].mxu1  ;;  %v6069_v56 = vpop.f32.mrb[9].mxu0  ;;  %v1122_v57 = vsel %vm501_vm2, %v878_v54, -inf  ;;  %v1116_v58 = vsel %vm501_vm2, %v726_v53, -inf }
 0x2ce   :  { %1123 = vmax.xlane.f32.xlu0 %v1122_v57  ;;  %1117 = vmax.xlane.f32.xlu1 %v1116_v58 }
 0x2d0   :  { %v802_v59 = vpop.f32.mrb[22].mxu1  ;;  %v1030_v60 = vpop.f32.mrb[10].mxu0 }
 0x2d1   :  { %v6064_v61 = vpop.f32.mrb[23].mxu1  ;;  %v6079_v62 = vpop.f32.mrb[11].mxu0  ;;  %v1128_v63 = vsel %vm501_vm2, %v1030_v60, -inf  ;;  %v1119_v0 = vsel %vm501_vm2, %v802_v59, -inf }
 0x2d2   :  { %1129 = vmax.xlane.f32.xlu0 %v1128_v63  ;;  %1120 = vmax.xlane.f32.xlu1 %v1119_v0 }
 0x2d4   :  { %v954_v1 = vpop.f32.mrb[24].mxu1 }
 0x2d5   :  { %v6074_v2 = vpop.f32.mrb[25].mxu1  ;;  %v1125_v3 = vsel %vm501_vm2, %v954_v1, -inf }
 0x2d6   :  { %1126 = vmax.xlane.f32.xlu1 %v1125_v3 }
 0x2d8   :  { %v1106_v4 = vpop.f32.mrb[26].mxu1 }
 0x2d9   :  { %v6084_v5 = vpop.f32.mrb[27].mxu1  ;;  %v1131_v6 = vsel %vm501_vm2, %v1106_v4, -inf }
 0x2da   :  { %1132 = vmax.xlane.f32.xlu1 %v1131_v6 }
 0x353   :  { %v1112_v7 = vpop.xlane.xlu0 %1111 }
 0x354   :  { %v1134_v8 = vsub.f32 %v574_v47, %v1112_v7 }
 0x356   :  { %v1142_v9 = vmul.f32 1.442695, %v1134_v8 }
 0x357   :  { %v1115_v10 = vpop.xlane.xlu0 %1114 }
 0x358   :  { %6549 = vpow2.f32 %v1142_v9  ;;  %v1135_v11 = vsub.f32 %v650_v50, %v1115_v10 }
 0x35a   :  { %v1144_v12 = vmul.f32 1.442695, %v1135_v11 }
 0x35b   :  { %v1124_v13 = vpop.xlane.xlu0 %1123  ;;  %v1118_v14 = vpop.xlane.xlu1 %1117 }
 0x35c   :  { %6551 = vpow2.f32 %v1144_v12  ;;  %v1138_v15 = vsub.f32 %v878_v54, %v1124_v13  ;;  %v1136_v16 = vsub.f32 %v726_v53, %v1118_v14  ;;  %v7554_v12 = vpack.c.bf16 %v7461_v35, %v7461_v35 }
 0x35e   :  { %v1146_v17 = vmul.f32 1.442695, %v1136_v16  ;;  %v1150_v36 = vmul.f32 1.442695, %v1138_v15 }
 0x35f   :  { %v1130_v38 = vpop.xlane.xlu0 %1129  ;;  %v1121_v45 = vpop.xlane.xlu1 %1120 }
 0x360   :  { %v1140_v46 = vsub.f32 %v1030_v60, %v1130_v38  ;;  %v1137_v48 = vsub.f32 %v802_v59, %v1121_v45  ;;  %6553 = vpow2.f32 %v1146_v17  ;;  %v1303_v38 = vsel %vm1209_vm3, %v7554_v12, 0 }
 0x361   :  { %6555 = vpow2.f32 %v1150_v36  ;;  %v7558_v36 = vpack.c.bf16 %v7463_v37, %v7463_v37 }
 0x362   :  { %v6550_v49 = vpop.eup %6549  ;;  %v1148_v51 = vmul.f32 1.442695, %v1137_v48  ;;  %v1154_v47 = vmul.f32 1.442695, %v1140_v46 }
 0x363   :  { %v1127_v52 = vpop.xlane.xlu1 %1126  ;;  %v1158_v50 = vsel %vm501_vm2, %v6550_v49, 0.0  ;;  %v1349_v37 = vsel %vm1209_vm3, %v7558_v36, 0 }
 0x364   :  { %v1139_v55 = vsub.f32 %v954_v1, %v1127_v52  ;;  %1159 = vadd.xlane.f32.xlu0 %v1158_v50  ;;  %6557 = vpow2.f32 %v1148_v51  ;;  %v7572_v51 = vpack.c.bf16 %v7467_v40, %v7467_v40  ;;  %v7583_v40 = vpack.c.bf16 %v7471_v42, %v7471_v42 }
 0x365   :  { %6559 = vpow2.f32 %v1154_v47 }
 0x366   :  { %v7492_v56 = vpop.eup %6551  ;;  %v1152_v53 = vmul.f32 1.442695, %v1139_v55  ;;  %v1441_v42 = vsel %vm1209_vm3, %v7583_v40, 0 }
 0x367   :  { %v1161_v54 = vsel %vm501_vm2, %v7492_v56, 0.0  ;;  %v1133_v3 = vpop.xlane.xlu1 %1132 }
 0x368   :  { %6561 = vpow2.f32 %v1152_v53  ;;  %1162 = vadd.xlane.f32.xlu1 %v1161_v54  ;;  %v1141_v5 = vsub.f32 %v1106_v4, %v1133_v3 }
 0x36a   :  { %v7496_v57 = vpop.eup %6553  ;;  %v1156_v6 = vmul.f32 1.442695, %v1141_v5 }
 0x36b   :  { %v1164_v58 = vsel %vm501_vm2, %v7496_v57, 0.0  ;;  %v7500_v59 = vpop.eup %6555 }
 0x36c   :  { %1165 = vadd.xlane.f32.xlu0 %v1164_v58  ;;  %v1170_v61 = vsel %vm501_vm2, %v7500_v59, 0.0  ;;  %6563 = vpow2.f32 %v1156_v6 }
 0x36e   :  { %v7502_v60 = vpop.eup %6557 }
 0x36f   :  { %v1167_v62 = vsel %vm501_vm2, %v7502_v60, 0.0  ;;  %v7508_v63 = vpop.eup %6559 }
 0x370   :  { %1171 = vadd.xlane.f32.xlu0 %v1170_v61  ;;  %1168 = vadd.xlane.f32.xlu1 %v1167_v62  ;;  %v1176_v2 = vsel %vm501_vm2, %v7508_v63, 0.0  ;;  %v7592_v61 = vpack.c.bf16 %v7465_v39, %v7465_v39 }
 0x372   :  { %v7510_v0 = vpop.eup %6561  ;;  %v1487_v39 = vsel %vm1209_vm3, %v7592_v61, 0 }
 0x373   :  { %v1173_v1 = vsel %vm501_vm2, %v7510_v0, 0.0 }
 0x374   :  { %1177 = vadd.xlane.f32.xlu0 %v1176_v2  ;;  %1174 = vadd.xlane.f32.xlu1 %v1173_v1  ;;  %v7606_v1 = vpack.c.bf16 %v7469_v41, %v7469_v41 }
 0x376   :  { %v7532_v7 = vpop.eup %6563 }
 0x377   :  { %v1179_v8 = vsel %vm501_vm2, %v7532_v7, 0.0 }
 0x385   :  { %1655 = vrot.lane.b32.xlu1 %v7397_v30, %s7085_s13 }
 0x38a   :  { %1577 = vrot.lane.b32.xlu0 %v7391_v28, %s7085_s13 }
 0x38e   :  { %1733 = vrot.lane.b32.xlu0 %v7389_v27, %s7085_s13 }
 0x392   :  { %1731 = vrot.lane.b32.xlu0 %v7373_v19, %s7085_s13 }
 0x396   :  { %1889 = vrot.lane.b32.xlu0 %v7409_v32, %s7085_s13 }
 0x39a   :  { %1887 = vrot.lane.b32.xlu0 %v7383_v24, %s7085_s13 }
 0x39e   :  { %2045 = vrot.lane.b32.xlu0 %v7407_v31, %s7085_s13 }
 0x3a2   :  { %2043 = vrot.lane.b32.xlu0 %v7381_v23, %s7085_s13 }
 0x3a9   :  { %1180 = vadd.xlane.f32.xlu1 %v1179_v8 }
 0x3ba   :  { %1575 = vrot.lane.b32.xlu1 %v7375_v20, %s7085_s13 }
 0x3be   :  { %1653 = vrot.lane.b32.xlu1 %v7379_v22, %s7085_s13 }
 0x3c2   :  { %1811 = vrot.lane.b32.xlu1 %v7393_v29, %s7085_s13 }
 0x3c6   :  { %1809 = vrot.lane.b32.xlu1 %v7377_v21, %s7085_s13 }
 0x3ca   :  { %1967 = vrot.lane.b32.xlu1 %v7422_v34, %s7085_s13 }
 0x3ce   :  { %1965 = vrot.lane.b32.xlu1 %v7387_v26, %s7085_s13 }
 0x3d2   :  { %2123 = vrot.lane.b32.xlu1 %v7417_v33, %s7085_s13 }
 0x3d6   :  { %2121 = vrot.lane.b32.xlu1 %v7385_v25, %s7085_s13 }
 0x3f1   :  { %v1160_v4 = vpop.xlane.xlu0 %1159 }
 0x3f2   :  { %6565 = vrcp.f32 %v1160_v4 }
 0x3f5   :  { %v1163_v9 = vpop.xlane.xlu1 %1162 }
 0x3f6   :  { %6567 = vrcp.f32 %v1163_v9 }
 0x3f9   :  { %v1166_v10 = vpop.xlane.xlu0 %1165 }
 0x3fa   :  { %6569 = vrcp.f32 %v1166_v10 }
 0x3fc   :  { %v6566_v11 = vpop.eup %6565 }
 0x3fd   :  { %v1190_v13 = vmul.f32 %v6566_v11, %v6550_v49  ;;  %v1172_v14 = vpop.xlane.xlu0 %1171  ;;  %v1169_v15 = vpop.xlane.xlu1 %1168 }
 0x3fe   :  { %6571 = vrcp.f32 %v1172_v14 }
 0x3ff   :  { %v1198_v16 = vpack.c.bf16 %v1190_v13, %v1190_v13  ;;  %6573 = vrcp.f32 %v1169_v15 }
 0x400   :  { %v6568_v17 = vpop.eup %6567 }
 0x401   :  { %6088 = vmatmul.mubr.msk.bf16.vlgmr.msra.gmra.mrb[12].mxu0 %vm501_vm2, %v1198_v16  ;;  %v1191_v45 = vmul.f32 %v6568_v17, %v7492_v56  ;;  %v1175_v35 = vpop.xlane.xlu1 %1174  ;;  %v1178_v48 = vpop.xlane.xlu0 %1177  ;;  %v1395_v56 = vsel %vm1209_vm3, %v7572_v51, 0 }
 0x402   :  { %6098 = vmatpush3.bf16.msra.mxu0 %v1303_v38  ;;  %6099 = vmatprep.mubr.msk.bf16.mxu0 %vm7084_vm1, %v7083_v18  ;;  %6575 = vrcp.f32 %v1175_v35 }
 0x403   :  { %v1199_v46 = vpack.c.bf16 %v1191_v45, %v1191_v45  ;;  %6109 = vmatprep.subr.bf16.mxu0 %v7083_v18  ;;  %6577 = vrcp.f32 %v1178_v48 }
 0x404   :  { %v6570_v49 = vpop.eup %6569 }
 0x405   :  { %6094 = vmatmul.mubr.msk.bf16.vlgmr.msra.gmra.mrb[28].mxu1 %vm501_vm2, %v1199_v46  ;;  %v1192_v47 = vmul.f32 %v6570_v49, %v7496_v57  ;;  %v1578_v41 = vpop.permute.xlu0 %1577  ;;  %v1656_v8 = vpop.permute.xlu1 %1655 }
 0x406   :  { %6104 = vmatpush3.bf16.msra.mxu1 %v1349_v37  ;;  %6105 = vmatprep.mubr.msk.bf16.mxu1 %vm7084_vm1, %v7083_v18 }
 0x407   :  { %6115 = vmatprep.subr.bf16.mxu1 %v7083_v18  ;;  %v1200_v52 = vpack.c.bf16 %v1192_v47, %v1192_v47 }
 0x408   :  { %v6572_v50 = vpop.eup %6571 }
 0x409   :  { %v6574_v55 = vpop.eup %6573  ;;  %6100 = vmatmul.mubr.msk.bf16.vlgmr.msra.gmra.mrb[16].mxu0 %vm501_vm2, %v1200_v52  ;;  %v1194_v54 = vmul.f32 %v6572_v50, %v7500_v59 }
 0x40a   :  { %6110 = vmatpush3.bf16.msra.mxu0 %v1395_v56  ;;  %v1193_v53 = vmul.f32 %v6574_v55, %v7502_v60  ;;  %6111 = vmatprep.mubr.msk.bf16.mxu0 %vm7084_vm1, %v7083_v18 }
 0x40b   :  { %6121 = vmatprep.subr.bf16.mxu0 %v7083_v18  ;;  %v1202_v60 = vpack.c.bf16 %v1194_v54, %v1194_v54 }
 0x40c   :  { %v1201_v57 = vpack.c.bf16 %v1193_v53, %v1193_v53  ;;  %v6576_v58 = vpop.eup %6575 }
 0x40d   :  { %v6578_v62 = vpop.eup %6577  ;;  %v1195_v59 = vmul.f32 %v6576_v58, %v7510_v0  ;;  %v1533_v0 = vsel %vm1209_vm3, %v7606_v1, 0 }
 0x40e   :  { %6106 = vmatmul.mubr.msk.bf16.vlgmr.msra.gmra.mrb[32].mxu1 %vm501_vm2, %v1201_v57  ;;  %v1196_v2 = vmul.f32 %v6578_v62, %v7508_v63  ;;  %v1734_v63 = vpop.permute.xlu0 %1733 }
 0x40f   :  { %6116 = vmatpush3.bf16.msra.mxu1 %v1441_v42  ;;  %6117 = vmatprep.mubr.msk.bf16.mxu1 %vm7084_vm1, %v7083_v18  ;;  %v1203_v3 = vpack.c.bf16 %v1195_v59, %v1195_v59 }
 0x410   :  { %6127 = vmatprep.subr.bf16.mxu1 %v7083_v18  ;;  %v1204_v5 = vpack.c.bf16 %v1196_v2, %v1196_v2 }
 0x411   :  { %6112 = vmatmul.mubr.msk.bf16.vlgmr.msra.gmra.mrb[20].mxu0 %vm501_vm2, %v1202_v60 }
 0x412   :  { %6122 = vmatpush3.bf16.msra.mxu0 %v1487_v39  ;;  %6123 = vmatprep.mubr.msk.bf16.mxu0 %vm7084_vm1, %v7083_v18  ;;  %v1732_v6 = vpop.permute.xlu0 %1731 }
 0x413   :  { %6133 = vmatprep.subr.mxu0 %v7083_v18 }
 0x416   :  { %6118 = vmatmul.mubr.msk.bf16.vlgmr.msra.gmra.mrb[36].mxu1 %vm501_vm2, %v1203_v3  ;;  %v1890_v4 = vpop.permute.xlu0 %1889 }
 0x417   :  { %6128 = vmatpush3.bf16.msra.mxu1 %v1533_v0  ;;  %6129 = vmatprep.mubr.msk.bf16.mxu1 %vm7084_vm1, %v7083_v18 }
 0x418   :  { %6138 = vmatprep.subr.mxu1 %v7083_v18 }
 0x419   :  { %6124 = vmatmul.mubr.msk.bf16.vlgmr.msra.gmra.mrb[24].mxu0 %vm501_vm2, %v1204_v5 }
 0x41a   :  { %6135 = vmatprep.mubr.msk.f32.mxu0 %vm7084_vm1, %v7083_v18  ;;  %v1888_v10 = vpop.permute.xlu0 %1887 }
 0x41b   :  { %6134 = vmatpush3.xpose.msk.msra.mxu0 %vm501_vm2, %v1578_v41 }
 0x41c   :  { %6143 = vmatprep.subr.mxu0 %v7083_v18 }
 0x41e   :  { %v2046_v14 = vpop.permute.xlu0 %2045 }
 0x422   :  { %v2044_v45 = vpop.permute.xlu0 %2043 }
 0x436   :  { %v1181_v9 = vpop.xlane.xlu1 %1180 }
 0x437   :  { %6579 = vrcp.f32 %v1181_v9 }
 0x43a   :  { %v1576_v11 = vpop.permute.xlu1 %1575 }
 0x43b   :  { %6136 = vmatmul.mubr.msk.f32.vlgmr.msra.gmra.mrb[28].mxu0 %vm501_vm2, %v1576_v11 }
 0x43c   :  { %6144 = vmatpush3.xpose.msk.msra.mxu0 %vm501_vm2, %v1734_v63  ;;  %6145 = vmatprep.mubr.msk.f32.mxu0 %vm7084_vm1, %v7083_v18 }
 0x43d   :  { %6153 = vmatprep.subr.mxu0 %v7083_v18 }
 0x43e   :  { %v1654_v13 = vpop.permute.xlu1 %1653 }
 0x43f   :  { %6146 = vmatmul.mubr.msk.f32.vlgmr.msra.gmra.mrb[30].mxu0 %vm501_vm2, %v1732_v6 }
 0x440   :  { %6154 = vmatpush3.xpose.msk.msra.mxu0 %vm501_vm2, %v1890_v4  ;;  %6155 = vmatprep.mubr.msk.f32.mxu0 %vm7084_vm1, %v7083_v18 }
 0x441   :  { %v6580_v15 = vpop.eup %6579  ;;  %6163 = vmatprep.subr.mxu0 %v7083_v18 }
 0x442   :  { %v1812_v16 = vpop.permute.xlu1 %1811  ;;  %v1197_v17 = vmul.f32 %v6580_v15, %v7532_v7 }
 0x443   :  { %6156 = vmatmul.mubr.msk.f32.vlgmr.msra.gmra.mrb[32].mxu0 %vm501_vm2, %v1888_v10 }
 0x444   :  { %6164 = vmatpush3.xpose.msk.msra.mxu0 %vm501_vm2, %v2046_v14  ;;  %v1205_v38 = vpack.c.bf16 %v1197_v17, %v1197_v17  ;;  %6165 = vmatprep.mubr.msk.f32.mxu0 %vm7084_vm1, %v7083_v18 }
 0x445   :  { %6173 = vmatprep.subr.bf16.mxu0 %v7083_v18 }
 0x446   :  { %6130 = vmatmul.mubr.msk.bf16.vlgmr.msra.gmra.mrb[40].mxu1 %vm501_vm2, %v1205_v38  ;;  %v1810_v35 = vpop.permute.xlu1 %1809 }
 0x447   :  { %6139 = vmatpush3.xpose.msk.msra.mxu1 %vm501_vm2, %v1656_v8  ;;  %6166 = vmatmul.mubr.msk.f32.vlgmr.msra.gmra.mrb[34].mxu0 %vm501_vm2, %v2044_v45 }
 0x448   :  { %6140 = vmatprep.mubr.msk.f32.mxu1 %vm7084_vm1, %v7083_v18  ;;  %6148 = vmatprep.subr.mxu1 %v7083_v18 }
 0x449   :  { %6175 = vmatprep.mubr.msk.bf16.mxu0 %vm7084_vm1, %v7083_v18 }
 0x44a   :  { %v1968_v7 = vpop.permute.xlu1 %1967 }
 0x44e   :  { %6141 = vmatmul.mubr.msk.f32.vlgmr.msra.gmra.mrb[44].mxu1 %vm501_vm2, %v1654_v13  ;;  %v1966_v46 = vpop.permute.xlu1 %1965 }
 0x44f   :  { %6149 = vmatpush3.xpose.msk.msra.mxu1 %vm501_vm2, %v1812_v16  ;;  %6150 = vmatprep.mubr.msk.f32.mxu1 %vm7084_vm1, %v7083_v18 }
 0x450   :  { %6158 = vmatprep.subr.mxu1 %v7083_v18 }
 0x452   :  { %6151 = vmatmul.mubr.msk.f32.vlgmr.msra.gmra.mrb[46].mxu1 %vm501_vm2, %v1810_v35  ;;  %v2124_v48 = vpop.permute.xlu1 %2123 }
 0x453   :  { %6159 = vmatpush3.xpose.msk.msra.mxu1 %vm501_vm2, %v1968_v7  ;;  %6160 = vmatprep.mubr.msk.f32.mxu1 %vm7084_vm1, %v7083_v18 }
 0x454   :  { %6168 = vmatprep.subr.mxu1 %v7083_v18 }
 0x456   :  { %6161 = vmatmul.mubr.msk.f32.vlgmr.msra.gmra.mrb[48].mxu1 %vm501_vm2, %v1966_v46  ;;  %v2122_v49 = vpop.permute.xlu1 %2121 }
 0x457   :  { %6169 = vmatpush3.xpose.msk.msra.mxu1 %vm501_vm2, %v2124_v48  ;;  %6170 = vmatprep.mubr.msk.f32.mxu1 %vm7084_vm1, %v7083_v18 }
 0x458   :  { %6179 = vmatprep.subr.bf16.mxu1 %v7083_v18 }
 0x45a   :  { %6171 = vmatmul.mubr.msk.f32.vlgmr.msra.gmra.mrb[50].mxu1 %vm501_vm2, %v2122_v49 }
 0x45b   :  { %6181 = vmatprep.mubr.msk.bf16.mxu1 %vm7084_vm1, %v7083_v18 }
 0x4d4   :  { %v7665_v37 = vpop.f32.mrb[12].mxu0 }
 0x4d5   :  { %v6089_v47 = vpop.f32.mrb[13].mxu0 }
 0x4d6   :  { %v1250_v52 = vpop.f32.mrb[14].mxu0 }
 0x4d7   :  { %v6090_v50 = vpop.f32.mrb[15].mxu0 }
 0x4d8   :  { %v7667_v55 = vpop.f32.mrb[28].mxu1 }
 0x4d9   :  { %v6095_v56 = vpop.f32.mrb[29].mxu1 }
 0x4da   :  { %v1296_v53 = vpop.f32.mrb[30].mxu1 }
 0x4db   :  { %v6096_v54 = vpop.f32.mrb[31].mxu1 }
 0x4dc   :  { %v7669_v57 = vpop.f32.mrb[16].mxu0 }
 0x4dd   :  { %v6101_v58 = vpop.f32.mrb[17].mxu0 }
 0x4de   :  { %v1342_v42 = vpop.f32.mrb[18].mxu0 }
 0x4df   :  { %v6102_v60 = vpop.f32.mrb[19].mxu0 }
 0x4e1   :  { %v7671_v62 = vpop.f32.mrb[32].mxu1 }
 0x4e2   :  { %v6107_v59 = vpop.f32.mrb[33].mxu1 }
 0x4e3   :  { %v1388_v39 = vpop.f32.mrb[34].mxu1 }
 0x4e4   :  { %v6108_v2 = vpop.f32.mrb[35].mxu1  ;;  %v7673_v3 = vpop.f32.mrb[20].mxu0 }
 0x4e5   :  { %v6113_v0 = vpop.f32.mrb[21].mxu0 }
 0x4e6   :  { %v1434_v5 = vpop.f32.mrb[22].mxu0 }
 0x4e7   :  { %v6114_v41 = vpop.f32.mrb[23].mxu0 }
 0x4e9   :  { %v7675_v63 = vpop.f32.mrb[36].mxu1 }
 0x4ea   :  { %v6119_v6 = vpop.f32.mrb[37].mxu1 }
 0x4eb   :  { %v1480_v8 = vpop.f32.mrb[38].mxu1 }
 0x4ec   :  { %v6120_v4 = vpop.f32.mrb[39].mxu1  ;;  %v7677_v9 = vpop.f32.mrb[24].mxu0 }
 0x4ed   :  { %v6125_v10 = vpop.f32.mrb[25].mxu0 }
 0x4ee   :  { %v1526_v11 = vpop.f32.mrb[26].mxu0 }
 0x4ef   :  { %v6126_v13 = vpop.f32.mrb[27].mxu0 }
 0x50e   :  { %v1649_v14 = vpop.f32.mrb[28].mxu0 }
 0x50f   :  { %v6137_v15 = vpop.f32.mrb[29].mxu0  ;;  %v2199_v16 = vsel %vm501_vm2, %v1649_v14, -inf }
 0x510   :  { %2200 = vmax.xlane.f32.xlu0 %v2199_v16 }
 0x512   :  { %v1805_v17 = vpop.f32.mrb[30].mxu0 }
 0x513   :  { %v6147_v38 = vpop.f32.mrb[31].mxu0  ;;  %v2205_v45 = vsel %vm501_vm2, %v1805_v17, -inf }
 0x514   :  { %2206 = vmax.xlane.f32.xlu0 %v2205_v45 }
 0x516   :  { %v7681_v35 = vpop.f32.mrb[32].mxu0 }
 0x517   :  { %v6157_v7 = vpop.f32.mrb[33].mxu0  ;;  %v2211_v2 = vsel %vm501_vm2, %v7681_v35, -inf }
 0x519   :  { %v7683_v46 = vpop.f32.mrb[40].mxu1 }
 0x51a   :  { %v6131_v48 = vpop.f32.mrb[41].mxu1  ;;  %v7685_v49 = vpop.f32.mrb[34].mxu0 }
 0x51b   :  { %v1572_v47 = vpop.f32.mrb[42].mxu1  ;;  %v6167_v52 = vpop.f32.mrb[35].mxu0  ;;  %v2217_v6 = vsel %vm501_vm2, %v7685_v49, -inf }
 0x51c   :  { %v6132_v50 = vpop.f32.mrb[43].mxu1 }
 0x521   :  { %v1727_v56 = vpop.f32.mrb[44].mxu1 }
 0x522   :  { %v6142_v53 = vpop.f32.mrb[45].mxu1  ;;  %v2202_v54 = vsel %vm501_vm2, %v1727_v56, -inf }
 0x523   :  { %2203 = vmax.xlane.f32.xlu1 %v2202_v54 }
 0x525   :  { %v7688_v58 = vpop.f32.mrb[46].mxu1 }
 0x526   :  { %v6152_v42 = vpop.f32.mrb[47].mxu1  ;;  %v2208_v60 = vsel %vm501_vm2, %v7688_v58, -inf }
 0x527   :  { %2209 = vmax.xlane.f32.xlu0 %v2208_v60 }
 0x529   :  { %v7692_v59 = vpop.f32.mrb[48].mxu1 }
 0x52a   :  { %v6162_v39 = vpop.f32.mrb[49].mxu1  ;;  %v2214_v0 = vsel %vm501_vm2, %v7692_v59, -inf }
 0x52b   :  { %2212 = vmax.xlane.f32.xlu0 %v2211_v2  ;;  %2215 = vmax.xlane.f32.xlu1 %v2214_v0 }
 0x52d   :  { %v7698_v5 = vpop.f32.mrb[50].mxu1 }
 0x52e   :  { %v6172_v41 = vpop.f32.mrb[51].mxu1  ;;  %v2220_v8 = vsel %vm501_vm2, %v7698_v5, -inf }
 0x52f   :  { %2218 = vmax.xlane.f32.xlu0 %v2217_v6 }
 0x53c   :  { %2345 = vrot.lane.b32.xlu1 %v7475_v44, %s7085_s13 }
 0x540   :  { %2394 = vrot.lane.b32.xlu1 %v7554_v12, %s7085_s13 }
 0x544   :  { %2443 = vrot.lane.b32.xlu1 %v7558_v36, %s7085_s13 }
 0x545   :  { %2296 = vrot.lane.b32.xlu0 %v7473_v43, %s7085_s13 }
 0x568   :  { %2221 = vmax.xlane.f32.xlu1 %v2220_v8 }
 0x59d   :  { %v2201_v4 = vpop.xlane.xlu0 %2200 }
 0x59e   :  { %v2223_v10 = vsub.f32 %v1649_v14, %v2201_v4 }
 0x5a0   :  { %v2231_v11 = vmul.f32 1.442695, %v2223_v10 }
 0x5a1   :  { %v2207_v13 = vpop.xlane.xlu0 %2206 }
 0x5a2   :  { %6581 = vpow2.f32 %v2231_v11  ;;  %v2225_v15 = vsub.f32 %v1805_v17, %v2207_v13 }
 0x5a4   :  { %v2235_v16 = vmul.f32 1.442695, %v2225_v15 }
 0x5a6   :  { %6583 = vpow2.f32 %v2235_v16 }
 0x5ac   :  { %v7712_v38 = vpop.eup %6581 }
 0x5ad   :  { %v2247_v45 = vsel %vm501_vm2, %v7712_v38, 0.0 }
 0x5ae   :  { %2248 = vadd.xlane.f32.xlu0 %v2247_v45 }
 0x5b0   :  { %v7716_v7 = vpop.eup %6583  ;;  %v2204_v48 = vpop.xlane.xlu1 %2203 }
 0x5b1   :  { %v2224_v47 = vsub.f32 %v1727_v56, %v2204_v48  ;;  %v2253_v52 = vsel %vm501_vm2, %v7716_v7, 0.0 }
 0x5b2   :  { %2254 = vadd.xlane.f32.xlu0 %v2253_v52 }
 0x5b3   :  { %v2233_v14 = vmul.f32 1.442695, %v2224_v47 }
 0x5b4   :  { %v2210_v50 = vpop.xlane.xlu0 %2209 }
 0x5b5   :  { %6585 = vpow2.f32 %v2233_v14  ;;  %v2226_v10 = vsub.f32 %v7688_v58, %v2210_v50 }
 0x5b7   :  { %v2237_v13 = vmul.f32 1.442695, %v2226_v10 }
 0x5b8   :  { %v2213_v17 = vpop.xlane.xlu0 %2212  ;;  %v2216_v53 = vpop.xlane.xlu1 %2215 }
 0x5b9   :  { %v2227_v41 = vsub.f32 %v7681_v35, %v2213_v17  ;;  %v2228_v15 = vsub.f32 %v7692_v59, %v2216_v53 }
 0x5bb   :  { %v2239_v6 = vmul.f32 1.442695, %v2227_v41  ;;  %v2241_v45 = vmul.f32 1.442695, %v2228_v15 }
 0x5bc   :  { %v2219_v54 = vpop.xlane.xlu0 %2218  ;;  %v2346_v42 = vpop.permute.xlu1 %2345 }
 0x5bd   :  { %v2351_v60 = vsel %vm1209_vm3, %v2346_v42, 0  ;;  %v2229_v8 = vsub.f32 %v7685_v49, %v2219_v54  ;;  %6587 = vpow2.f32 %v2239_v6 }
 0x5be   :  { %6180 = vmatpush3.bf16.msra.mxu1 %v2351_v60 }
 0x5bf   :  { %v7721_v39 = vpop.eup %6585  ;;  %6191 = vmatprep.subr.bf16.mxu1 %v7083_v18  ;;  %v2243_v4 = vmul.f32 1.442695, %v2229_v8 }
 0x5c0   :  { %v2297_v2 = vpop.permute.xlu0 %2296  ;;  %v2250_v56 = vsel %vm501_vm2, %v7721_v39, 0.0  ;;  %v2395_v52 = vpop.permute.xlu1 %2394 }
 0x5c1   :  { %v2302_v0 = vsel %vm1209_vm3, %v2297_v2, 0  ;;  %2251 = vadd.xlane.f32.xlu1 %v2250_v56  ;;  %6589 = vpow2.f32 %v2243_v4  ;;  %v2400_v6 = vsel %vm1209_vm3, %v2395_v52, 0 }
 0x5c2   :  { %6174 = vmatpush3.bf16.msra.mxu0 %v2302_v0  ;;  %6591 = vpow2.f32 %v2237_v13 }
 0x5c3   :  { %6185 = vmatprep.subr.bf16.mxu0 %v7083_v18  ;;  %6593 = vpow2.f32 %v2241_v45 }
 0x5c4   :  { %v2444_v14 = vpop.permute.xlu1 %2443 }
 0x5c5   :  { %v2449_v45 = vsel %vm1209_vm3, %v2444_v14, 0 }
 0x5c7   :  { %v7735_v11 = vpop.eup %6587 }
 0x5c8   :  { %2492 = vrot.lane.b32.xlu0 %v7572_v51, %s7085_s13  ;;  %v2259_v16 = vsel %vm501_vm2, %v7735_v11, 0.0 }
 0x5cb   :  { %v7740_v35 = vpop.eup %6589 }
 0x5cc   :  { %v2265_v49 = vsel %vm501_vm2, %v7740_v35, 0.0  ;;  %v7744_v48 = vpop.eup %6591 }
 0x5cd   :  { %v2256_v58 = vsel %vm501_vm2, %v7744_v48, 0.0  ;;  %v7748_v47 = vpop.eup %6593 }
 0x5ce   :  { %v2262_v59 = vsel %vm501_vm2, %v7748_v47, 0.0 }
 0x5d2   :  { %2541 = vrot.lane.b32.xlu1 %v7583_v40, %s7085_s13 }
 0x5e7   :  { %2260 = vadd.xlane.f32.xlu0 %v2259_v16 }
 0x5eb   :  { %2266 = vadd.xlane.f32.xlu0 %v2265_v49 }
 0x5f5   :  { %v2222_v50 = vpop.xlane.xlu1 %2221 }
 0x5f6   :  { %2257 = vadd.xlane.f32.xlu1 %v2256_v58  ;;  %v2230_v17 = vsub.f32 %v7698_v5, %v2222_v50 }
 0x5f8   :  { %v2245_v53 = vmul.f32 1.442695, %v2230_v17 }
 0x5fa   :  { %2263 = vadd.xlane.f32.xlu1 %v2262_v59  ;;  %6595 = vpow2.f32 %v2245_v53 }
 0x601   :  { %2590 = vrot.lane.b32.xlu0 %v7592_v61, %s7085_s13 }
 0x604   :  { %v7773_v54 = vpop.eup %6595 }
 0x605   :  { %2689 = vrot.lane.b32.xlu0 %v7391_v28, %s7086_s23  ;;  %v2268_v42 = vsel %vm501_vm2, %v7773_v54, 0.0 }
 0x609   :  { %2687 = vrot.lane.b32.xlu0 %v7375_v20, %s7086_s23 }
 0x60b   :  { %2639 = vrot.lane.b32.xlu1 %v7606_v1, %s7085_s13 }
 0x60d   :  { %2845 = vrot.lane.b32.xlu0 %v7389_v27, %s7086_s23 }
 0x611   :  { %2843 = vrot.lane.b32.xlu0 %v7373_v19, %s7086_s23 }
 0x615   :  { %3001 = vrot.lane.b32.xlu0 %v7409_v32, %s7086_s23 }
 0x619   :  { %2999 = vrot.lane.b32.xlu0 %v7383_v24, %s7086_s23 }
 0x61d   :  { %3157 = vrot.lane.b32.xlu0 %v7407_v31, %s7086_s23 }
 0x621   :  { %3155 = vrot.lane.b32.xlu0 %v7381_v23, %s7086_s23 }
 0x62f   :  { %2269 = vadd.xlane.f32.xlu1 %v2268_v42 }
 0x63b   :  { %v2249_v60 = vpop.xlane.xlu0 %2248 }
 0x63c   :  { %6597 = vrcp.f32 %v2249_v60 }
 0x63f   :  { %v2255_v5 = vpop.xlane.xlu0 %2254 }
 0x640   :  { %6599 = vrcp.f32 %v2255_v5  ;;  %2767 = vrot.lane.b32.xlu1 %v7397_v30, %s7086_s23 }
 0x643   :  { %v2493_v4 = vpop.permute.xlu0 %2492 }
 0x644   :  { %2765 = vrot.lane.b32.xlu1 %v7379_v22, %s7086_s23  ;;  %v2498_v13 = vsel %vm1209_vm3, %v2493_v4, 0 }
 0x646   :  { %v6598_v2 = vpop.eup %6597 }
 0x647   :  { %v2279_v56 = vmul.f32 %v6598_v2, %v7712_v38 }
 0x648   :  { %2923 = vrot.lane.b32.xlu1 %v7393_v29, %s7086_s23 }
 0x649   :  { %v2287_v0 = vpack.c.bf16 %v2279_v56, %v2279_v56 }
 0x64a   :  { %v6600_v41 = vpop.eup %6599 }
 0x64b   :  { %6176 = vmatmul.mubr.msk.bf16.vlgmr.msra.gmra.mrb[36].mxu0 %vm501_vm2, %v2287_v0  ;;  %v2281_v38 = vmul.f32 %v6600_v41, %v7716_v7 }
 0x64c   :  { %6186 = vmatpush3.bf16.msra.mxu0 %v2400_v6  ;;  %2921 = vrot.lane.b32.xlu1 %v7377_v21, %s7086_s23 }
 0x64d   :  { %6187 = vmatprep.mubr.msk.bf16.mxu0 %vm7084_vm1, %v7083_v18  ;;  %6197 = vmatprep.subr.bf16.mxu0 %v7083_v18  ;;  %v2289_v10 = vpack.c.bf16 %v2281_v38, %v2281_v38 }
 0x64e   :  { %v2252_v8 = vpop.xlane.xlu1 %2251 }
 0x64f   :  { %6601 = vrcp.f32 %v2252_v8 }
 0x650   :  { %3079 = vrot.lane.b32.xlu1 %v7422_v34, %s7086_s23 }
 0x652   :  { %v2542_v52 = vpop.permute.xlu1 %2541 }
 0x653   :  { %6188 = vmatmul.mubr.msk.bf16.vlgmr.msra.gmra.mrb[40].mxu0 %vm501_vm2, %v2289_v10  ;;  %v2547_v10 = vsel %vm1209_vm3, %v2542_v52, 0 }
 0x654   :  { %6198 = vmatpush3.bf16.msra.mxu0 %v2498_v13  ;;  %3077 = vrot.lane.b32.xlu1 %v7387_v26, %s7086_s23 }
 0x655   :  { %6199 = vmatprep.mubr.msk.bf16.mxu0 %vm7084_vm1, %v7083_v18  ;;  %6209 = vmatprep.subr.bf16.mxu0 %v7083_v18 }
 0x658   :  { %3235 = vrot.lane.b32.xlu1 %v7417_v33, %s7086_s23 }
 0x659   :  { %v6602_v7 = vpop.eup %6601 }
 0x65a   :  { %v2280_v15 = vmul.f32 %v6602_v7, %v7721_v39 }
 0x65c   :  { %3233 = vrot.lane.b32.xlu1 %v7385_v25, %s7086_s23  ;;  %v2288_v16 = vpack.c.bf16 %v2280_v15, %v2280_v15 }
 0x65e   :  { %6182 = vmatmul.mubr.msk.bf16.vlgmr.msra.gmra.mrb[52].mxu1 %vm501_vm2, %v2288_v16 }
 0x65f   :  { %6192 = vmatpush3.bf16.msra.mxu1 %v2449_v45  ;;  %6193 = vmatprep.mubr.msk.bf16.mxu1 %vm7084_vm1, %v7083_v18 }
 0x660   :  { %6203 = vmatprep.subr.bf16.mxu1 %v7083_v18 }
 0x674   :  { %v2261_v49 = vpop.xlane.xlu0 %2260 }
 0x675   :  { %6603 = vrcp.f32 %v2261_v49 }
 0x678   :  { %v2267_v58 = vpop.xlane.xlu0 %2266 }
 0x679   :  { %6605 = vrcp.f32 %v2267_v58 }
 0x67c   :  { %v2591_v59 = vpop.permute.xlu0 %2590 }
 0x67d   :  { %v2596_v60 = vsel %vm1209_vm3, %v2591_v59, 0 }
 0x67f   :  { %v6604_v39 = vpop.eup %6603 }
 0x680   :  { %v2690_v50 = vpop.permute.xlu0 %2689  ;;  %v2283_v17 = vmul.f32 %v6604_v39, %v7735_v11 }
 0x682   :  { %v2291_v53 = vpack.c.bf16 %v2283_v17, %v2283_v17 }
 0x683   :  { %v6606_v14 = vpop.eup %6605  ;;  %v2258_v42 = vpop.xlane.xlu1 %2257 }
 0x684   :  { %6607 = vrcp.f32 %v2258_v42  ;;  %v2688_v5 = vpop.permute.xlu0 %2687  ;;  %6200 = vmatmul.mubr.msk.bf16.vlgmr.msra.gmra.mrb[44].mxu0 %vm501_vm2, %v2291_v53  ;;  %v2285_v2 = vmul.f32 %v6606_v14, %v7740_v35 }
 0x685   :  { %6210 = vmatpush3.bf16.msra.mxu0 %v2596_v60  ;;  %6211 = vmatprep.mubr.msk.bf16.mxu0 %vm7084_vm1, %v7083_v18 }
 0x686   :  { %6221 = vmatprep.subr.mxu0 %v7083_v18  ;;  %v2293_v0 = vpack.c.bf16 %v2285_v2, %v2285_v2 }
 0x687   :  { %v2264_v56 = vpop.xlane.xlu1 %2263 }
 0x688   :  { %6609 = vrcp.f32 %v2264_v56  ;;  %v2846_v11 = vpop.permute.xlu0 %2845 }
 0x68b   :  { %v2640_v7 = vpop.permute.xlu1 %2639 }
 0x68c   :  { %v2844_v41 = vpop.permute.xlu0 %2843  ;;  %6212 = vmatmul.mubr.msk.bf16.vlgmr.msra.gmra.mrb[48].mxu0 %vm501_vm2, %v2293_v0 }
 0x68d   :  { %6223 = vmatprep.mubr.msk.f32.mxu0 %vm7084_vm1, %v7083_v18 }
 0x68e   :  { %v6608_v6 = vpop.eup %6607  ;;  %6222 = vmatpush3.xpose.msk.msra.mxu0 %vm501_vm2, %v2690_v50 }
 0x68f   :  { %v2282_v38 = vmul.f32 %v6608_v6, %v7744_v48  ;;  %6231 = vmatprep.subr.mxu0 %v7083_v18 }
 0x690   :  { %v3002_v35 = vpop.permute.xlu0 %3001 }
 0x691   :  { %v2290_v8 = vpack.c.bf16 %v2282_v38, %v2282_v38 }
 0x692   :  { %v6610_v4 = vpop.eup %6609 }
 0x693   :  { %6194 = vmatmul.mubr.msk.bf16.vlgmr.msra.gmra.mrb[56].mxu1 %vm501_vm2, %v2290_v8  ;;  %v2284_v48 = vmul.f32 %v6610_v4, %v7748_v47  ;;  %v2645_v47 = vsel %vm1209_vm3, %v2640_v7, 0 }
 0x694   :  { %6204 = vmatpush3.bf16.msra.mxu1 %v2547_v10  ;;  %v3000_v13 = vpop.permute.xlu0 %2999  ;;  %6224 = vmatmul.mubr.msk.f32.vlgmr.msra.gmra.mrb[52].mxu0 %vm501_vm2, %v2688_v5 }
 0x695   :  { %6232 = vmatpush3.xpose.msk.msra.mxu0 %vm501_vm2, %v2846_v11  ;;  %6233 = vmatprep.mubr.msk.f32.mxu0 %vm7084_vm1, %v7083_v18  ;;  %v2292_v16 = vpack.c.bf16 %v2284_v48, %v2284_v48 }
 0x696   :  { %6241 = vmatprep.subr.mxu0 %v7083_v18  ;;  %6205 = vmatprep.mubr.msk.bf16.mxu1 %vm7084_vm1, %v7083_v18 }
 0x697   :  { %6215 = vmatprep.subr.bf16.mxu1 %v7083_v18 }
 0x698   :  { %6234 = vmatmul.mubr.msk.f32.vlgmr.msra.gmra.mrb[54].mxu0 %vm501_vm2, %v2844_v41  ;;  %v3158_v15 = vpop.permute.xlu0 %3157 }
 0x699   :  { %6242 = vmatpush3.xpose.msk.msra.mxu0 %vm501_vm2, %v3002_v35  ;;  %6243 = vmatprep.mubr.msk.f32.mxu0 %vm7084_vm1, %v7083_v18 }
 0x69a   :  { %6251 = vmatprep.subr.mxu0 %v7083_v18 }
 0x69b   :  { %6206 = vmatmul.mubr.msk.bf16.vlgmr.msra.gmra.mrb[60].mxu1 %vm501_vm2, %v2292_v16 }
 0x69c   :  { %6216 = vmatpush3.bf16.msra.mxu1 %v2645_v47  ;;  %6244 = vmatmul.mubr.msk.f32.vlgmr.msra.gmra.mrb[56].mxu0 %vm501_vm2, %v3000_v13  ;;  %v3156_v45 = vpop.permute.xlu0 %3155 }
 0x69d   :  { %6252 = vmatpush3.xpose.msk.msra.mxu0 %vm501_vm2, %v3158_v15  ;;  %6253 = vmatprep.mubr.msk.f32.mxu0 %vm7084_vm1, %v7083_v18 }
 0x69e   :  { %6217 = vmatprep.mubr.msk.bf16.mxu1 %vm7084_vm1, %v7083_v18  ;;  %6226 = vmatprep.subr.mxu1 %v7083_v18 }
 0x69f   :  { %6261 = vmatprep.subr.bf16.mxu0 %v7083_v18 }
 0x6a0   :  { %6254 = vmatmul.mubr.msk.f32.vlgmr.msra.gmra.mrb[58].mxu0 %vm501_vm2, %v3156_v45 }
 0x6a1   :  { %6263 = vmatprep.mubr.msk.bf16.mxu0 %vm7084_vm1, %v7083_v18 }
 0x6bc   :  { %v2270_v49 = vpop.xlane.xlu1 %2269 }
 0x6bd   :  { %6611 = vrcp.f32 %v2270_v49 }
 0x6c0   :  { %v2768_v58 = vpop.permute.xlu1 %2767 }
 0x6c4   :  { %v2766_v59 = vpop.permute.xlu1 %2765 }
 0x6c7   :  { %v6612_v39 = vpop.eup %6611 }
 0x6c8   :  { %v2924_v52 = vpop.permute.xlu1 %2923  ;;  %v2286_v50 = vmul.f32 %v6612_v39, %v7773_v54 }
 0x6ca   :  { %v2294_v17 = vpack.c.bf16 %v2286_v50, %v2286_v50 }
 0x6cc   :  { %6218 = vmatmul.mubr.msk.bf16.vlgmr.msra.gmra.mrb[64].mxu1 %vm501_vm2, %v2294_v17  ;;  %v2922_v53 = vpop.permute.xlu1 %2921 }
 0x6cd   :  { %6227 = vmatpush3.xpose.msk.msra.mxu1 %vm501_vm2, %v2768_v58  ;;  %6228 = vmatprep.mubr.msk.f32.mxu1 %vm7084_vm1, %v7083_v18 }
 0x6ce   :  { %6236 = vmatprep.subr.mxu1 %v7083_v18 }
 0x6d0   :  { %v3080_v14 = vpop.permute.xlu1 %3079 }
 0x6d4   :  { %6229 = vmatmul.mubr.msk.f32.vlgmr.msra.gmra.mrb[68].mxu1 %vm501_vm2, %v2766_v59  ;;  %v3078_v42 = vpop.permute.xlu1 %3077 }
 0x6d5   :  { %6237 = vmatpush3.xpose.msk.msra.mxu1 %vm501_vm2, %v2924_v52  ;;  %6238 = vmatprep.mubr.msk.f32.mxu1 %vm7084_vm1, %v7083_v18 }
 0x6d6   :  { %6246 = vmatprep.subr.mxu1 %v7083_v18 }
 0x6d8   :  { %6239 = vmatmul.mubr.msk.f32.vlgmr.msra.gmra.mrb[70].mxu1 %vm501_vm2, %v2922_v53  ;;  %v3236_v54 = vpop.permute.xlu1 %3235 }
 0x6d9   :  { %6247 = vmatpush3.xpose.msk.msra.mxu1 %vm501_vm2, %v3080_v14  ;;  %6248 = vmatprep.mubr.msk.f32.mxu1 %vm7084_vm1, %v7083_v18 }
 0x6da   :  { %6256 = vmatprep.subr.mxu1 %v7083_v18 }
 0x6dc   :  { %6249 = vmatmul.mubr.msk.f32.vlgmr.msra.gmra.mrb[72].mxu1 %vm501_vm2, %v3078_v42  ;;  %v3234_v60 = vpop.permute.xlu1 %3233 }
 0x6dd   :  { %6257 = vmatpush3.xpose.msk.msra.mxu1 %vm501_vm2, %v3236_v54  ;;  %6258 = vmatprep.mubr.msk.f32.mxu1 %vm7084_vm1, %v7083_v18 }
 0x6de   :  { %6267 = vmatprep.subr.bf16.mxu1 %v7083_v18 }
 0x6e0   :  { %6259 = vmatmul.mubr.msk.f32.vlgmr.msra.gmra.mrb[74].mxu1 %vm501_vm2, %v3234_v60 }
 0x6e1   :  { %6269 = vmatprep.mubr.msk.bf16.mxu1 %vm7084_vm1, %v7083_v18 }
 0x71e   :  { %v7877_v5 = vpop.f32.mrb[36].mxu0 }
 0x71f   :  { %v6177_v2 = vpop.f32.mrb[37].mxu0 }
 0x720   :  { %v2341_v56 = vpop.f32.mrb[38].mxu0 }
 0x721   :  { %v6178_v11 = vpop.f32.mrb[39].mxu0 }
 0x726   :  { %v7879_v0 = vpop.f32.mrb[40].mxu0 }
 0x727   :  { %v6189_v41 = vpop.f32.mrb[41].mxu0 }
 0x728   :  { %v2439_v6 = vpop.f32.mrb[42].mxu0 }
 0x729   :  { %v6190_v38 = vpop.f32.mrb[43].mxu0 }
 0x731   :  { %v7881_v35 = vpop.f32.mrb[52].mxu1 }
 0x732   :  { %v6471_v8 = vpack.i.bf16 %v7881_v35, %v7877_v5  ;;  %v6183_v4 = vpop.f32.mrb[53].mxu1 }
 0x733   :  { %v2390_v10 = vpop.f32.mrb[54].mxu1 }
 0x734   :  { %v6184_v13 = vpop.f32.mrb[55].mxu1 }
 0x757   :  { %v7885_v48 = vpop.f32.mrb[44].mxu0 }
 0x758   :  { %v6201_v7 = vpop.f32.mrb[45].mxu0 }
 0x759   :  { %v2537_v15 = vpop.f32.mrb[46].mxu0 }
 0x75a   :  { %v6202_v16 = vpop.f32.mrb[47].mxu0 }
 0x75f   :  { %v7887_v47 = vpop.f32.mrb[48].mxu0 }
 0x760   :  { %v6213_v45 = vpop.f32.mrb[49].mxu0 }
 0x761   :  { %v2635_v49 = vpop.f32.mrb[50].mxu0 }
 0x762   :  { %v6214_v58 = vpop.f32.mrb[51].mxu0 }
 0x766   :  { %v7889_v59 = vpop.f32.mrb[56].mxu1 }
 0x767   :  { %v6195_v52 = vpop.f32.mrb[57].mxu1  ;;  %v2761_v50 = vpop.f32.mrb[52].mxu0 }
 0x768   :  { %v2488_v17 = vpop.f32.mrb[58].mxu1  ;;  %v6225_v53 = vpop.f32.mrb[53].mxu0  ;;  %v3311_v14 = vsel %vm501_vm2, %v2761_v50, -inf }
 0x769   :  { %3312 = vmax.xlane.f32.xlu0 %v3311_v14  ;;  %v6196_v42 = vpop.f32.mrb[59].mxu1 }
 0x76b   :  { %v2917_v54 = vpop.f32.mrb[54].mxu0 }
 0x76c   :  { %v6235_v60 = vpop.f32.mrb[55].mxu0  ;;  %v3317_v2 = vsel %vm501_vm2, %v2917_v54, -inf }
 0x76d   :  { %3318 = vmax.xlane.f32.xlu0 %v3317_v2 }
 0x76e   :  { %v7895_v56 = vpop.f32.mrb[60].mxu1 }
 0x76f   :  { %v6207_v41 = vpop.f32.mrb[61].mxu1  ;;  %v3073_v6 = vpop.f32.mrb[56].mxu0 }
 0x770   :  { %v2586_v38 = vpop.f32.mrb[62].mxu1  ;;  %v6245_v4 = vpop.f32.mrb[57].mxu0 }
 0x771   :  { %v6208_v10 = vpop.f32.mrb[63].mxu1  ;;  %v3323_v38 = vsel %vm501_vm2, %v3073_v6, -inf }
 0x773   :  { %v3229_v13 = vpop.f32.mrb[58].mxu0 }
 0x774   :  { %v6255_v7 = vpop.f32.mrb[59].mxu0 }
 0x79f   :  { %v7899_v15 = vpop.f32.mrb[64].mxu1 }
 0x7a0   :  { %v6219_v45 = vpop.f32.mrb[65].mxu1 }
 0x7a1   :  { %v2684_v49 = vpop.f32.mrb[66].mxu1  ;;  %v3329_v45 = vsel %vm501_vm2, %v3229_v13, -inf }
 0x7a2   :  { %v6220_v58 = vpop.f32.mrb[67].mxu1 }
 0x7a7   :  { %v2839_v52 = vpop.f32.mrb[68].mxu1 }
 0x7a8   :  { %v6230_v17 = vpop.f32.mrb[69].mxu1  ;;  %v3314_v53 = vsel %vm501_vm2, %v2839_v52, -inf }
 0x7a9   :  { %3315 = vmax.xlane.f32.xlu1 %v3314_v53 }
 0x7ab   :  { %v7904_v14 = vpop.f32.mrb[70].mxu1 }
 0x7ac   :  { %v6240_v42 = vpop.f32.mrb[71].mxu1  ;;  %v3320_v60 = vsel %vm501_vm2, %v7904_v14, -inf }
 0x7ad   :  { %3321 = vmax.xlane.f32.xlu0 %v3320_v60 }
 0x7af   :  { %v7908_v2 = vpop.f32.mrb[72].mxu1 }
 0x7b0   :  { %v6250_v41 = vpop.f32.mrb[73].mxu1  ;;  %v3326_v4 = vsel %vm501_vm2, %v7908_v2, -inf }
 0x7b1   :  { %3324 = vmax.xlane.f32.xlu0 %v3323_v38  ;;  %3327 = vmax.xlane.f32.xlu1 %v3326_v4 }
 0x7b3   :  { %v7913_v10 = vpop.f32.mrb[74].mxu1 }
 0x7b4   :  { %v6260_v7 = vpop.f32.mrb[75].mxu1  ;;  %v3332_v49 = vsel %vm501_vm2, %v7913_v10, -inf }
 0x7b5   :  { %3330 = vmax.xlane.f32.xlu0 %v3329_v45 }
 0x7c2   :  { %3455 = vrot.lane.b32.xlu1 %v7475_v44, %s7086_s23 }
 0x7c6   :  { %3503 = vrot.lane.b32.xlu1 %v7554_v12, %s7086_s23 }
 0x7ca   :  { %3551 = vrot.lane.b32.xlu1 %v7558_v36, %s7086_s23 }
 0x7cb   :  { %3407 = vrot.lane.b32.xlu0 %v7473_v43, %s7086_s23 }
 0x7ee   :  { %3333 = vmax.xlane.f32.xlu1 %v3332_v49 }
 0x7f6   :  { %v3313_v58 = vpop.xlane.xlu0 %3312 }
 0x7f7   :  { %v3335_v17 = vsub.f32 %v2761_v50, %v3313_v58 }
 0x7f9   :  { %v3343_v53 = vmul.f32 1.442695, %v3335_v17 }
 0x7fa   :  { %v3319_v42 = vpop.xlane.xlu0 %3318 }
 0x7fb   :  { %6613 = vpow2.f32 %v3343_v53  ;;  %v3337_v60 = vsub.f32 %v2917_v54, %v3319_v42 }
 0x7fd   :  { %v3347_v41 = vmul.f32 1.442695, %v3337_v60 }
 0x7ff   :  { %6615 = vpow2.f32 %v3347_v41 }
 0x805   :  { %v7926_v38 = vpop.eup %6613 }
 0x806   :  { %v3359_v4 = vsel %vm501_vm2, %v7926_v38, 0.0 }
 0x807   :  { %3360 = vadd.xlane.f32.xlu0 %v3359_v4 }
 0x809   :  { %v7930_v7 = vpop.eup %6615 }
 0x80a   :  { %v3365_v45 = vsel %vm501_vm2, %v7930_v7, 0.0 }
 0x80b   :  { %3366 = vadd.xlane.f32.xlu0 %v3365_v45 }
 0x821   :  { %3599 = vrot.lane.b32.xlu0 %v7572_v51, %s7086_s23 }
 0x836   :  { %v3316_v50 = vpop.xlane.xlu1 %3315 }
 0x837   :  { %v3336_v49 = vsub.f32 %v2839_v52, %v3316_v50 }
 0x839   :  { %v3345_v54 = vmul.f32 1.442695, %v3336_v49 }
 0x83a   :  { %v3322_v58 = vpop.xlane.xlu0 %3321 }
 0x83b   :  { %6617 = vpow2.f32 %v3345_v54 }
 0x83e   :  { %v3325_v17 = vpop.xlane.xlu0 %3324  ;;  %v3328_v53 = vpop.xlane.xlu1 %3327 }
 0x83f   :  { %v3339_v42 = vsub.f32 %v3073_v6, %v3325_v17  ;;  %v3340_v17 = vsub.f32 %v7908_v2, %v3328_v53 }
 0x841   :  { %v3351_v60 = vmul.f32 1.442695, %v3339_v42  ;;  %v3353_v42 = vmul.f32 1.442695, %v3340_v17 }
 0x842   :  { %v3331_v41 = vpop.xlane.xlu0 %3330  ;;  %v3456_v4 = vpop.permute.xlu1 %3455 }
 0x843   :  { %6619 = vpow2.f32 %v3351_v60  ;;  %v3341_v16 = vsub.f32 %v3229_v13, %v3331_v41  ;;  %v3461_v39 = vsel %vm1209_vm3, %v3456_v4, 0 }
 0x844   :  { %6268 = vmatpush3.bf16.msra.mxu1 %v3461_v39 }
 0x845   :  { %v7937_v45 = vpop.eup %6617  ;;  %v3355_v11 = vmul.f32 1.442695, %v3341_v16  ;;  %6279 = vmatprep.subr.bf16.mxu1 %v7083_v18 }
 0x846   :  { %v3408_v52 = vpop.permute.xlu0 %3407  ;;  %v3362_v50 = vsel %vm501_vm2, %v7937_v45, 0.0 }
 0x847   :  { %6621 = vpow2.f32 %v3355_v11  ;;  %v3413_v6 = vsel %vm1209_vm3, %v3408_v52, 0  ;;  %3363 = vadd.xlane.f32.xlu1 %v3362_v50  ;;  %v3338_v11 = vsub.f32 %v7904_v14, %v3322_v58 }
 0x848   :  { %6262 = vmatpush3.bf16.msra.mxu0 %v3413_v6 }
 0x849   :  { %6273 = vmatprep.subr.bf16.mxu0 %v7083_v18  ;;  %v3349_v54 = vmul.f32 1.442695, %v3338_v11 }
 0x84b   :  { %6623 = vpow2.f32 %v3349_v54 }
 0x84c   :  { %6625 = vpow2.f32 %v3353_v42 }
 0x84d   :  { %v7944_v13 = vpop.eup %6619 }
 0x84e   :  { %v3371_v39 = vsel %vm501_vm2, %v7944_v13, 0.0 }
 0x84f   :  { %3372 = vadd.xlane.f32.xlu0 %v3371_v39 }
 0x851   :  { %v7948_v16 = vpop.eup %6621 }
 0x852   :  { %v3377_v49 = vsel %vm501_vm2, %v7948_v16, 0.0 }
 0x853   :  { %3378 = vadd.xlane.f32.xlu0 %v3377_v49 }
 0x855   :  { %v7964_v14 = vpop.eup %6623 }
 0x856   :  { %v3368_v2 = vsel %vm501_vm2, %v7964_v14, 0.0  ;;  %v7970_v58 = vpop.eup %6625 }
 0x858   :  { %3647 = vrot.lane.b32.xlu1 %v7583_v40, %s7086_s23 }
 0x869   :  { %3695 = vrot.lane.b32.xlu0 %v7592_v61, %s7086_s23 }
 0x86d   :  { %3793 = vrot.lane.b32.xlu0 %v7391_v28, %s7087_s24 }
 0x871   :  { %3791 = vrot.lane.b32.xlu0 %v7375_v20, %s7087_s24  ;;  %v3374_v20 = vsel %vm501_vm2, %v7970_v58, 0.0 }
 0x875   :  { %3949 = vrot.lane.b32.xlu0 %v7389_v27, %s7087_s24 }
 0x879   :  { %3947 = vrot.lane.b32.xlu0 %v7373_v19, %s7087_s24  ;;  %v3504_v19 = vpop.permute.xlu1 %3503 }
 0x87c   :  { %3369 = vadd.xlane.f32.xlu1 %v3368_v2 }
 0x87d   :  { %4105 = vrot.lane.b32.xlu0 %v7409_v32, %s7087_s24  ;;  %v3552_v28 = vpop.permute.xlu1 %3551 }
 0x87e   :  { %v3557_v54 = vsel %vm1209_vm3, %v3552_v28, 0 }
 0x880   :  { %3375 = vadd.xlane.f32.xlu1 %v3374_v20 }
 0x881   :  { %4103 = vrot.lane.b32.xlu0 %v7383_v24, %s7087_s24  ;;  %v3334_v53 = vpop.xlane.xlu1 %3333 }
 0x882   :  { %v3342_v41 = vsub.f32 %v7913_v10, %v3334_v53 }
 0x884   :  { %v3357_v52 = vmul.f32 1.442695, %v3342_v41 }
 0x885   :  { %4261 = vrot.lane.b32.xlu0 %v7407_v31, %s7087_s24 }
 0x889   :  { %4259 = vrot.lane.b32.xlu0 %v7381_v23, %s7087_s24  ;;  %v3509_v23 = vsel %vm1209_vm3, %v3504_v19, 0 }
 0x891   :  { %3743 = vrot.lane.b32.xlu1 %v7606_v1, %s7086_s23 }
 0x894   :  { %v3361_v27 = vpop.xlane.xlu0 %3360 }
 0x895   :  { %6627 = vrcp.f32 %v3361_v27 }
 0x898   :  { %v3367_v32 = vpop.xlane.xlu0 %3366 }
 0x899   :  { %6629 = vrcp.f32 %v3367_v32 }
 0x89a   :  { %6631 = vpow2.f32 %v3357_v52 }
 0x89c   :  { %v3600_v6 = vpop.permute.xlu0 %3599 }
 0x89f   :  { %v6628_v60 = vpop.eup %6627 }
 0x8a0   :  { %v3391_v24 = vmul.f32 %v6628_v60, %v7926_v38  ;;  %v3605_v38 = vsel %vm1209_vm3, %v3600_v6, 0 }
 0x8a2   :  { %v3399_v4 = vpack.c.bf16 %v3391_v24, %v3391_v24 }
 0x8a3   :  { %v6630_v31 = vpop.eup %6629 }
 0x8a4   :  { %6264 = vmatmul.mubr.msk.bf16.vlgmr.msra.gmra.mrb[60].mxu0 %vm501_vm2, %v3399_v4  ;;  %v3393_v50 = vmul.f32 %v6630_v31, %v7930_v7  ;;  %v7997_v39 = vpop.eup %6631 }
 0x8a5   :  { %6274 = vmatpush3.bf16.msra.mxu0 %v3509_v23  ;;  %6275 = vmatprep.mubr.msk.bf16.mxu0 %vm7084_vm1, %v7083_v18  ;;  %v3380_v7 = vsel %vm501_vm2, %v7997_v39, 0.0 }
 0x8a6   :  { %6285 = vmatprep.subr.bf16.mxu0 %v7083_v18  ;;  %v3401_v10 = vpack.c.bf16 %v3393_v50, %v3393_v50 }
 0x8ac   :  { %6276 = vmatmul.mubr.msk.bf16.vlgmr.msra.gmra.mrb[64].mxu0 %vm501_vm2, %v3401_v10 }
 0x8ad   :  { %6286 = vmatpush3.bf16.msra.mxu0 %v3605_v38  ;;  %6287 = vmatprep.mubr.msk.bf16.mxu0 %vm7084_vm1, %v7083_v18 }
 0x8ae   :  { %6297 = vmatprep.subr.bf16.mxu0 %v7083_v18 }
 0x8b5   :  { %3381 = vadd.xlane.f32.xlu1 %v3380_v7 }
 0x8c6   :  { %3871 = vrot.lane.b32.xlu1 %v7397_v30, %s7087_s24 }
 0x8ca   :  { %3869 = vrot.lane.b32.xlu1 %v7379_v22, %s7087_s24 }
 0x8ce   :  { %4027 = vrot.lane.b32.xlu1 %v7393_v29, %s7087_s24 }
 0x8d2   :  { %4025 = vrot.lane.b32.xlu1 %v7377_v21, %s7087_s24 }
 0x8d4   :  { %v3364_v49 = vpop.xlane.xlu1 %3363 }
 0x8d5   :  { %6633 = vrcp.f32 %v3364_v49 }
 0x8d6   :  { %4183 = vrot.lane.b32.xlu1 %v7422_v34, %s7087_s24 }
 0x8d8   :  { %v3648_v53 = vpop.permute.xlu1 %3647 }
 0x8d9   :  { %v3653_v50 = vsel %vm1209_vm3, %v3648_v53, 0 }
 0x8da   :  { %4181 = vrot.lane.b32.xlu1 %v7387_v26, %s7087_s24 }
 0x8dc   :  { %v3373_v11 = vpop.xlane.xlu0 %3372 }
 0x8dd   :  { %6635 = vrcp.f32 %v3373_v11 }
 0x8de   :  { %4339 = vrot.lane.b32.xlu1 %v7417_v33, %s7087_s24 }
 0x8df   :  { %v6634_v22 = vpop.eup %6633 }
 0x8e0   :  { %v3392_v30 = vmul.f32 %v6634_v22, %v7937_v45  ;;  %v3379_v29 = vpop.xlane.xlu0 %3378 }
 0x8e1   :  { %6637 = vrcp.f32 %v3379_v29 }
 0x8e2   :  { %4337 = vrot.lane.b32.xlu1 %v7385_v25, %s7087_s24  ;;  %v3400_v21 = vpack.c.bf16 %v3392_v30, %v3392_v30 }
 0x8e4   :  { %v3696_v34 = vpop.permute.xlu0 %3695  ;;  %6270 = vmatmul.mubr.msk.bf16.vlgmr.msra.gmra.mrb[76].mxu1 %vm501_vm2, %v3400_v21 }
 0x8e5   :  { %6280 = vmatpush3.bf16.msra.mxu1 %v3557_v54  ;;  %6281 = vmatprep.mubr.msk.bf16.mxu1 %vm7084_vm1, %v7083_v18  ;;  %v3701_v25 = vsel %vm1209_vm3, %v3696_v34, 0 }
 0x8e6   :  { %6291 = vmatprep.subr.bf16.mxu1 %v7083_v18 }
 0x8e7   :  { %v6636_v26 = vpop.eup %6635 }
 0x8e8   :  { %v3395_v33 = vmul.f32 %v6636_v26, %v7944_v13  ;;  %v3794_v45 = vpop.permute.xlu0 %3793 }
 0x8ea   :  { %v3403_v17 = vpack.c.bf16 %v3395_v33, %v3395_v33 }
 0x8eb   :  { %v6638_v42 = vpop.eup %6637 }
 0x8ec   :  { %v3792_v2 = vpop.permute.xlu0 %3791  ;;  %6288 = vmatmul.mubr.msk.bf16.vlgmr.msra.gmra.mrb[68].mxu0 %vm501_vm2, %v3403_v17  ;;  %v3397_v20 = vmul.f32 %v6638_v42, %v7948_v16 }
 0x8ed   :  { %6298 = vmatpush3.bf16.msra.mxu0 %v3701_v25  ;;  %6299 = vmatprep.mubr.msk.bf16.mxu0 %vm7084_vm1, %v7083_v18 }
 0x8ee   :  { %6309 = vmatprep.subr.mxu0 %v7083_v18  ;;  %v3405_v27 = vpack.c.bf16 %v3397_v20, %v3397_v20 }
 0x8f0   :  { %v3950_v19 = vpop.permute.xlu0 %3949 }
 0x8f4   :  { %v3948_v28 = vpop.permute.xlu0 %3947  ;;  %6300 = vmatmul.mubr.msk.bf16.vlgmr.msra.gmra.mrb[72].mxu0 %vm501_vm2, %v3405_v27 }
 0x8f5   :  { %6311 = vmatprep.mubr.msk.f32.mxu0 %vm7084_vm1, %v7083_v18 }
 0x8f6   :  { %6310 = vmatpush3.xpose.msk.msra.mxu0 %vm501_vm2, %v3794_v45 }
 0x8f7   :  { %6319 = vmatprep.subr.mxu0 %v7083_v18 }
 0x8f8   :  { %v4106_v13 = vpop.permute.xlu0 %4105 }
 0x8fc   :  { %v4104_v32 = vpop.permute.xlu0 %4103  ;;  %6312 = vmatmul.mubr.msk.f32.vlgmr.msra.gmra.mrb[76].mxu0 %vm501_vm2, %v3792_v2 }
 0x8fd   :  { %6320 = vmatpush3.xpose.msk.msra.mxu0 %vm501_vm2, %v3950_v19  ;;  %6321 = vmatprep.mubr.msk.f32.mxu0 %vm7084_vm1, %v7083_v18 }
 0x8fe   :  { %6329 = vmatprep.subr.mxu0 %v7083_v18 }
 0x900   :  { %6322 = vmatmul.mubr.msk.f32.vlgmr.msra.gmra.mrb[78].mxu0 %vm501_vm2, %v3948_v28  ;;  %v4262_v16 = vpop.permute.xlu0 %4261 }
 0x901   :  { %6330 = vmatpush3.xpose.msk.msra.mxu0 %vm501_vm2, %v4106_v13  ;;  %6331 = vmatprep.mubr.msk.f32.mxu0 %vm7084_vm1, %v7083_v18 }
 0x902   :  { %6339 = vmatprep.subr.mxu0 %v7083_v18 }
 0x904   :  { %6332 = vmatmul.mubr.msk.f32.vlgmr.msra.gmra.mrb[80].mxu0 %vm501_vm2, %v4104_v32  ;;  %v4260_v60 = vpop.permute.xlu0 %4259 }
 0x905   :  { %6340 = vmatpush3.xpose.msk.msra.mxu0 %vm501_vm2, %v4262_v16  ;;  %6341 = vmatprep.mubr.msk.f32.mxu0 %vm7084_vm1, %v7083_v18 }
 0x906   :  { %6349 = vmatprep.subr.bf16.mxu0 %v7083_v18 }
 0x908   :  { %6342 = vmatmul.mubr.msk.f32.vlgmr.msra.gmra.mrb[82].mxu0 %vm501_vm2, %v4260_v60 }
 0x909   :  { %v3370_v41 = vpop.xlane.xlu1 %3369  ;;  %6351 = vmatprep.mubr.msk.bf16.mxu0 %vm7084_vm1, %v7083_v18 }
 0x90a   :  { %6639 = vrcp.f32 %v3370_v41 }
 0x90d   :  { %v3376_v24 = vpop.xlane.xlu1 %3375 }
 0x90e   :  { %6641 = vrcp.f32 %v3376_v24 }
 0x911   :  { %v3744_v10 = vpop.permute.xlu1 %3743 }
 0x912   :  { %v3749_v7 = vsel %vm1209_vm3, %v3744_v10, 0 }
 0x914   :  { %v6640_v4 = vpop.eup %6639 }
 0x915   :  { %v3394_v31 = vmul.f32 %v6640_v4, %v7964_v14 }
 0x917   :  { %v3402_v52 = vpack.c.bf16 %v3394_v31, %v3394_v31 }
 0x918   :  { %v6642_v23 = vpop.eup %6641 }
 0x919   :  { %6282 = vmatmul.mubr.msk.bf16.vlgmr.msra.gmra.mrb[80].mxu1 %vm501_vm2, %v3402_v52  ;;  %v3396_v6 = vmul.f32 %v6642_v23, %v7970_v58 }
 0x91a   :  { %6292 = vmatpush3.bf16.msra.mxu1 %v3653_v50  ;;  %6293 = vmatprep.mubr.msk.bf16.mxu1 %vm7084_vm1, %v7083_v18 }
 0x91b   :  { %6303 = vmatprep.subr.bf16.mxu1 %v7083_v18  ;;  %v3404_v38 = vpack.c.bf16 %v3396_v6, %v3396_v6 }
 0x921   :  { %6294 = vmatmul.mubr.msk.bf16.vlgmr.msra.gmra.mrb[84].mxu1 %vm501_vm2, %v3404_v38 }
 0x922   :  { %6304 = vmatpush3.bf16.msra.mxu1 %v3749_v7  ;;  %6305 = vmatprep.mubr.msk.bf16.mxu1 %vm7084_vm1, %v7083_v18 }
 0x923   :  { %6314 = vmatprep.subr.mxu1 %v7083_v18 }
 0x942   :  { %v3382_v14 = vpop.xlane.xlu1 %3381 }
 0x943   :  { %6643 = vrcp.f32 %v3382_v14 }
 0x946   :  { %v3872_v49 = vpop.permute.xlu1 %3871 }
 0x94a   :  { %v3870_v11 = vpop.permute.xlu1 %3869 }
 0x94d   :  { %v6644_v22 = vpop.eup %6643 }
 0x94e   :  { %v3398_v58 = vmul.f32 %v6644_v22, %v7997_v39  ;;  %v4028_v30 = vpop.permute.xlu1 %4027 }
 0x950   :  { %v3406_v29 = vpack.c.bf16 %v3398_v58, %v3398_v58 }
 0x952   :  { %6306 = vmatmul.mubr.msk.bf16.vlgmr.msra.gmra.mrb[88].mxu1 %vm501_vm2, %v3406_v29  ;;  %v4026_v21 = vpop.permute.xlu1 %4025 }
 0x953   :  { %6315 = vmatpush3.xpose.msk.msra.mxu1 %vm501_vm2, %v3872_v49  ;;  %6316 = vmatprep.mubr.msk.f32.mxu1 %vm7084_vm1, %v7083_v18 }
 0x954   :  { %6324 = vmatprep.subr.mxu1 %v7083_v18 }
 0x956   :  { %v4184_v54 = vpop.permute.xlu1 %4183 }
 0x95a   :  { %6317 = vmatmul.mubr.msk.f32.vlgmr.msra.gmra.mrb[92].mxu1 %vm501_vm2, %v3870_v11  ;;  %v4182_v34 = vpop.permute.xlu1 %4181 }
 0x95b   :  { %6325 = vmatpush3.xpose.msk.msra.mxu1 %vm501_vm2, %v4028_v30  ;;  %6326 = vmatprep.mubr.msk.f32.mxu1 %vm7084_vm1, %v7083_v18 }
 0x95c   :  { %6334 = vmatprep.subr.mxu1 %v7083_v18 }
 0x95e   :  { %6327 = vmatmul.mubr.msk.f32.vlgmr.msra.gmra.mrb[94].mxu1 %vm501_vm2, %v4026_v21  ;;  %v4340_v39 = vpop.permute.xlu1 %4339 }
 0x95f   :  { %6335 = vmatpush3.xpose.msk.msra.mxu1 %vm501_vm2, %v4184_v54  ;;  %6336 = vmatprep.mubr.msk.f32.mxu1 %vm7084_vm1, %v7083_v18 }
 0x960   :  { %6344 = vmatprep.subr.mxu1 %v7083_v18 }
 0x962   :  { %6337 = vmatmul.mubr.msk.f32.vlgmr.msra.gmra.mrb[96].mxu1 %vm501_vm2, %v4182_v34  ;;  %v4338_v26 = vpop.permute.xlu1 %4337 }
 0x963   :  { %6345 = vmatpush3.xpose.msk.msra.mxu1 %vm501_vm2, %v4340_v39  ;;  %6346 = vmatprep.mubr.msk.f32.mxu1 %vm7084_vm1, %v7083_v18 }
 0x964   :  { %6355 = vmatprep.subr.bf16.mxu1 %v7083_v18 }
 0x966   :  { %6347 = vmatmul.mubr.msk.f32.vlgmr.msra.gmra.mrb[98].mxu1 %vm501_vm2, %v4338_v26 }
 0x967   :  { %6357 = vmatprep.mubr.msk.bf16.mxu1 %vm7084_vm1, %v7083_v18 }
 0x977   :  { %v8089_v33 = vpop.f32.mrb[60].mxu0 }
 0x978   :  { %v6265_v45 = vpop.f32.mrb[61].mxu0 }
 0x979   :  { %v3452_v17 = vpop.f32.mrb[62].mxu0 }
 0x97a   :  { %v6266_v42 = vpop.f32.mrb[63].mxu0 }
 0x97f   :  { %v8091_v25 = vpop.f32.mrb[64].mxu0 }
 0x980   :  { %v6277_v2 = vpop.f32.mrb[65].mxu0 }
 0x981   :  { %v3548_v20 = vpop.f32.mrb[66].mxu0 }
 0x982   :  { %v6278_v19 = vpop.f32.mrb[67].mxu0 }
 0x9b7   :  { %v8093_v27 = vpop.f32.mrb[76].mxu1 }
 0x9b8   :  { %v6481_v28 = vpack.i.bf16 %v8093_v27, %v8089_v33  ;;  %v6271_v13 = vpop.f32.mrb[77].mxu1 }
 0x9b9   :  { %v3500_v32 = vpop.f32.mrb[78].mxu1 }
 0x9ba   :  { %v6272_v16 = vpop.f32.mrb[79].mxu1 }
 0x9bf   :  { %v8097_v53 = vpop.f32.mrb[68].mxu0 }
 0x9c0   :  { %v6289_v60 = vpop.f32.mrb[69].mxu0 }
 0x9c1   :  { %v3644_v41 = vpop.f32.mrb[70].mxu0 }
 0x9c2   :  { %v6290_v24 = vpop.f32.mrb[71].mxu0 }
 0x9c7   :  { %v8099_v4 = vpop.f32.mrb[72].mxu0 }
 0x9c8   :  { %v6301_v31 = vpop.f32.mrb[73].mxu0 }
 0x9c9   :  { %v3740_v52 = vpop.f32.mrb[74].mxu0 }
 0x9ca   :  { %v6302_v23 = vpop.f32.mrb[75].mxu0 }
 0x9cf   :  { %v3865_v50 = vpop.f32.mrb[76].mxu0 }
 0x9d0   :  { %v6313_v6 = vpop.f32.mrb[77].mxu0  ;;  %v4415_v10 = vsel %vm501_vm2, %v3865_v50, -inf }
 0x9d1   :  { %4416 = vmax.xlane.f32.xlu0 %v4415_v10 }
 0x9d3   :  { %v4021_v38 = vpop.f32.mrb[78].mxu0 }
 0x9d4   :  { %v6323_v7 = vpop.f32.mrb[79].mxu0  ;;  %v4421_v14 = vsel %vm501_vm2, %v4021_v38, -inf }
 0x9d5   :  { %4422 = vmax.xlane.f32.xlu0 %v4421_v14 }
 0x9d7   :  { %v8103_v49 = vpop.f32.mrb[80].mxu0 }
 0x9d8   :  { %v6333_v11 = vpop.f32.mrb[81].mxu0  ;;  %v4427_v10 = vsel %vm501_vm2, %v8103_v49, -inf }
 0x9db   :  { %v8105_v22 = vpop.f32.mrb[82].mxu0 }
 0x9dc   :  { %v6343_v58 = vpop.f32.mrb[83].mxu0 }
 0x9dd   :  { %v4433_v58 = vsel %vm501_vm2, %v8105_v22, -inf }
 0x9ec   :  { %v8107_v30 = vpop.f32.mrb[80].mxu1 }
 0x9ed   :  { %v6486_v29 = vpack.i.bf16 %v8107_v30, %v8091_v25  ;;  %v6283_v21 = vpop.f32.mrb[81].mxu1 }
 0x9ee   :  { %v3596_v54 = vpop.f32.mrb[82].mxu1 }
 0x9ef   :  { %v6284_v34 = vpop.f32.mrb[83].mxu1 }
 0x9f4   :  { %v8111_v39 = vpop.f32.mrb[84].mxu1 }
 0x9f5   :  { %v6506_v26 = vpack.i.bf16 %v8111_v39, %v8097_v53  ;;  %v6295_v45 = vpop.f32.mrb[85].mxu1 }
 0x9f6   :  { %v3692_v17 = vpop.f32.mrb[86].mxu1 }
 0x9f7   :  { %v6296_v42 = vpop.f32.mrb[87].mxu1 }
 0xa25   :  { %v8115_v2 = vpop.f32.mrb[88].mxu1 }
 0xa26   :  { %v6516_v20 = vpack.i.bf16 %v8115_v2, %v8099_v4  ;;  %v6307_v19 = vpop.f32.mrb[89].mxu1 }
 0xa27   :  { %v3788_v13 = vpop.f32.mrb[90].mxu1 }
 0xa28   :  { %v6308_v32 = vpop.f32.mrb[91].mxu1 }
 0xa2d   :  { %v3943_v16 = vpop.f32.mrb[92].mxu1 }
 0xa2e   :  { %v6318_v60 = vpop.f32.mrb[93].mxu1  ;;  %v4418_v41 = vsel %vm501_vm2, %v3943_v16, -inf }
 0xa2f   :  { %4419 = vmax.xlane.f32.xlu1 %v4418_v41 }
 0xa31   :  { %v8120_v24 = vpop.f32.mrb[94].mxu1 }
 0xa32   :  { %v6328_v31 = vpop.f32.mrb[95].mxu1  ;;  %v4424_v52 = vsel %vm501_vm2, %v8120_v24, -inf }
 0xa33   :  { %4425 = vmax.xlane.f32.xlu0 %v4424_v52 }
 0xa35   :  { %v8124_v23 = vpop.f32.mrb[96].mxu1 }
 0xa36   :  { %v6338_v6 = vpop.f32.mrb[97].mxu1  ;;  %v4430_v7 = vsel %vm501_vm2, %v8124_v23, -inf }
 0xa37   :  { %4428 = vmax.xlane.f32.xlu0 %v4427_v10  ;;  %4431 = vmax.xlane.f32.xlu1 %v4430_v7 }
 0xa39   :  { %v8130_v14 = vpop.f32.mrb[98].mxu1 }
 0xa3a   :  { %v6348_v11 = vpop.f32.mrb[99].mxu1 }
 0xa3b   :  { %4434 = vmax.xlane.f32.xlu0 %v4433_v58 }
 0xa48   :  { %4559 = vrot.lane.b32.xlu1 %v7475_v44, %s7087_s24  ;;  %v4436_v44 = vsel %vm501_vm2, %v8130_v14, -inf }
 0xa4c   :  { %4607 = vrot.lane.b32.xlu1 %v7554_v12, %s7087_s24 }
 0xa51   :  { %4511 = vrot.lane.b32.xlu0 %v7473_v43, %s7087_s24 }
 0xa5e   :  { %v4417_v21 = vpop.xlane.xlu0 %4416 }
 0xa5f   :  { %v4439_v54 = vsub.f32 %v3865_v50, %v4417_v21 }
 0xa61   :  { %v4447_v34 = vmul.f32 1.442695, %v4439_v54 }
 0xa62   :  { %v4423_v45 = vpop.xlane.xlu0 %4422 }
 0xa63   :  { %6645 = vpow2.f32 %v4447_v34  ;;  %v4441_v17 = vsub.f32 %v4021_v38, %v4423_v45 }
 0xa65   :  { %v4451_v42 = vmul.f32 1.442695, %v4441_v17 }
 0xa67   :  { %6647 = vpow2.f32 %v4451_v42 }
 0xa6d   :  { %v8140_v19 = vpop.eup %6645 }
 0xa6e   :  { %v4463_v13 = vsel %vm501_vm2, %v8140_v19, 0.0 }
 0xa70   :  { %4464 = vadd.xlane.f32.xlu0 %v4463_v13  ;;  %4437 = vmax.xlane.f32.xlu1 %v4436_v44 }
 0xa71   :  { %v8146_v12 = vpop.eup %6647 }
 0xa72   :  { %v4469_v43 = vsel %vm501_vm2, %v8146_v12, 0.0 }
 0xa74   :  { %4470 = vadd.xlane.f32.xlu0 %v4469_v43 }
 0xa81   :  { %4655 = vrot.lane.b32.xlu1 %v7558_v36, %s7087_s24 }
 0xa8a   :  { %4703 = vrot.lane.b32.xlu0 %v7572_v51, %s7087_s24 }
 0xabc   :  { %v4420_v50 = vpop.xlane.xlu1 %4419 }
 0xabd   :  { %v4440_v38 = vsub.f32 %v3943_v16, %v4420_v50 }
 0xabf   :  { %v4449_v32 = vmul.f32 1.442695, %v4440_v38 }
 0xac0   :  { %v4426_v60 = vpop.xlane.xlu0 %4425 }
 0xac1   :  { %6649 = vpow2.f32 %v4449_v32  ;;  %v4442_v17 = vsub.f32 %v8120_v24, %v4426_v60 }
 0xac3   :  { %v4453_v42 = vmul.f32 1.442695, %v4442_v17 }
 0xac4   :  { %v4429_v41 = vpop.xlane.xlu0 %4428  ;;  %v4432_v31 = vpop.xlane.xlu1 %4431 }
 0xac5   :  { %v4443_v52 = vsub.f32 %v8103_v49, %v4429_v41  ;;  %v4444_v13 = vsub.f32 %v8124_v23, %v4432_v31 }
 0xac7   :  { %v4455_v6 = vmul.f32 1.442695, %v4443_v52  ;;  %v4457_v44 = vmul.f32 1.442695, %v4444_v13 }
 0xac8   :  { %v4435_v10 = vpop.xlane.xlu0 %4434  ;;  %v4560_v7 = vpop.permute.xlu1 %4559 }
 0xac9   :  { %6651 = vpow2.f32 %v4455_v6  ;;  %v4445_v11 = vsub.f32 %v8105_v22, %v4435_v10  ;;  %v4565_v36 = vsel %vm1209_vm3, %v4560_v7, 0  ;;  %v8491_v6 = vpack.i.bf16 %v7899_v15, %v7887_v47 }
 0xaca   :  { %6356 = vmatpush3.bf16.msra.mxu1 %v4565_v36 }
 0xacb   :  { %v8157_v58 = vpop.eup %6649  ;;  %v4459_v51 = vmul.f32 1.442695, %v4445_v11  ;;  %6367 = vmatprep.subr.bf16.mxu1 %v7083_v18 }
 0xacc   :  { %v4512_v16 = vpop.permute.xlu0 %4511  ;;  %v4466_v21 = vsel %vm501_vm2, %v8157_v58, 0.0 }
 0xacd   :  { %6653 = vpow2.f32 %v4459_v51  ;;  %v4517_v49 = vsel %vm1209_vm3, %v4512_v16, 0  ;;  %4467 = vadd.xlane.f32.xlu1 %v4466_v21 }
 0xace   :  { %6350 = vmatpush3.bf16.msra.mxu0 %v4517_v49  ;;  %6655 = vpow2.f32 %v4453_v42 }
 0xacf   :  { %6361 = vmatprep.subr.bf16.mxu0 %v7083_v18  ;;  %6657 = vpow2.f32 %v4457_v44 }
 0xad3   :  { %v8164_v22 = vpop.eup %6651 }
 0xad4   :  { %v4475_v54 = vsel %vm501_vm2, %v8164_v22, 0.0 }
 0xad5   :  { %4476 = vadd.xlane.f32.xlu0 %v4475_v54 }
 0xad7   :  { %v8168_v34 = vpop.eup %6653 }
 0xad8   :  { %v4481_v45 = vsel %vm501_vm2, %v8168_v34, 0.0  ;;  %v8190_v43 = vpop.eup %6655 }
 0xad9   :  { %4482 = vadd.xlane.f32.xlu0 %v4481_v45  ;;  %v4472_v33 = vsel %vm501_vm2, %v8190_v43, 0.0  ;;  %v8195_v27 = vpop.eup %6657 }
 0xade   :  { %4751 = vrot.lane.b32.xlu1 %v7583_v40, %s7087_s24  ;;  %v4608_v40 = vpop.permute.xlu1 %4607 }
 0xadf   :  { %v4613_v32 = vsel %vm1209_vm3, %v4608_v40, 0 }
 0xaef   :  { %4799 = vrot.lane.b32.xlu0 %v7592_v61, %s7087_s24  ;;  %v8489_v61 = vpack.i.bf16 %v7895_v56, %v7885_v48  ;;  %v4478_v48 = vsel %vm501_vm2, %v8195_v27, 0.0 }
 0xaf3   :  { %6472 = vrot.lane.b32.xlu0 %v6471_v8, %s7075_s19 }
 0xaf7   :  { %6482 = vrot.lane.b32.xlu0 %v6481_v28, %s7088_s17 }
 0xafb   :  { %6492 = vrot.lane.b32.xlu0 %v8489_v61, %s7075_s19 }
 0xafd   :  { %v4465_v24 = vpop.xlane.xlu0 %4464  ;;  %v4438_v23 = vpop.xlane.xlu1 %4437 }
 0xafe   :  { %6659 = vrcp.f32 %v4465_v24  ;;  %v4446_v5 = vsub.f32 %v8130_v14, %v4438_v23 }
 0xb00   :  { %v4461_v35 = vmul.f32 1.442695, %v4446_v5 }
 0xb01   :  { %v4471_v8 = vpop.xlane.xlu0 %4470  ;;  %v4656_v10 = vpop.permute.xlu1 %4655 }
 0xb02   :  { %6661 = vpow2.f32 %v4461_v35  ;;  %4473 = vadd.xlane.f32.xlu1 %v4472_v33  ;;  %v4661_v51 = vsel %vm1209_vm3, %v4656_v10, 0 }
 0xb03   :  { %6663 = vrcp.f32 %v4471_v8 }
 0xb06   :  { %4479 = vadd.xlane.f32.xlu1 %v4478_v48 }
 0xb08   :  { %v6660_v56 = vpop.eup %6659 }
 0xb09   :  { %v4495_v28 = vmul.f32 %v6660_v56, %v8140_v19  ;;  %v4704_v19 = vpop.permute.xlu0 %4703 }
 0xb0a   :  { %v4709_v52 = vsel %vm1209_vm3, %v4704_v19, 0 }
 0xb0b   :  { %v4503_v50 = vpack.c.bf16 %v4495_v28, %v4495_v28 }
 0xb0c   :  { %v8200_v38 = vpop.eup %6661 }
 0xb0d   :  { %v6664_v14 = vpop.eup %6663  ;;  %6352 = vmatmul.mubr.msk.bf16.vlgmr.msra.gmra.mrb[84].mxu0 %vm501_vm2, %v4503_v50  ;;  %v4484_v60 = vsel %vm501_vm2, %v8200_v38, 0.0 }
 0xb0e   :  { %6362 = vmatpush3.bf16.msra.mxu0 %v4613_v32  ;;  %4485 = vadd.xlane.f32.xlu1 %v4484_v60  ;;  %v4497_v41 = vmul.f32 %v6664_v14, %v8146_v12  ;;  %v8490_v12 = vpack.i.bf16 %v7889_v59, %v7879_v0  ;;  %v6537_v32 = vld [vmem:[#allocation10] sm:$0xff]  }
 0xb0f   :  { %6363 = vmatprep.mubr.msk.bf16.mxu0 %vm7084_vm1, %v7083_v18  ;;  %6373 = vmatprep.subr.bf16.mxu0 %v7083_v18 }
 0xb10   :  { %v4505_v31 = vpack.c.bf16 %v4497_v41, %v4497_v41 }
 0xb15   :  { %6364 = vmatmul.mubr.msk.bf16.vlgmr.msra.gmra.mrb[88].mxu0 %vm501_vm2, %v4505_v31 }
 0xb16   :  { %6374 = vmatpush3.bf16.msra.mxu0 %v4709_v52  ;;  %6375 = vmatprep.mubr.msk.bf16.mxu0 %vm7084_vm1, %v7083_v18 }
 0xb17   :  { %6385 = vmatprep.subr.bf16.mxu0 %v7083_v18 }
 0xb1f   :  { %4847 = vrot.lane.b32.xlu1 %v7606_v1, %s7087_s24 }
 0xb23   :  { %6477 = vrot.lane.b32.xlu1 %v8490_v12, %s7075_s19 }
 0xb27   :  { %6487 = vrot.lane.b32.xlu1 %v6486_v29, %s7088_s17 }
 0xb2b   :  { %6497 = vrot.lane.b32.xlu1 %v8491_v6, %s7075_s19 }
 0xb5a   :  { %v4468_v7 = vpop.xlane.xlu1 %4467 }
 0xb5b   :  { %6665 = vrcp.f32 %v4468_v7 }
 0xb5e   :  { %v4752_v49 = vpop.permute.xlu1 %4751 }
 0xb5f   :  { %v4757_v40 = vsel %vm1209_vm3, %v4752_v49, 0 }
 0xb62   :  { %v4477_v11 = vpop.xlane.xlu0 %4476 }
 0xb63   :  { %6667 = vrcp.f32 %v4477_v11 }
 0xb65   :  { %v6666_v1 = vpop.eup %6665 }
 0xb66   :  { %v4496_v36 = vmul.f32 %v6666_v1, %v8157_v58  ;;  %v4483_v0 = vpop.xlane.xlu0 %4482 }
 0xb67   :  { %6669 = vrcp.f32 %v4483_v0 }
 0xb68   :  { %v4504_v59 = vpack.c.bf16 %v4496_v36, %v4496_v36  ;;  %v6538_v36 = vld [vmem:[#allocation10 + $0x8] sm:$0xff]  }
 0xb6a   :  { %6358 = vmatmul.mubr.msk.bf16.vlgmr.msra.gmra.mrb[100].mxu1 %vm501_vm2, %v4504_v59  ;;  %v4800_v25 = vpop.permute.xlu0 %4799 }
 0xb6b   :  { %6368 = vmatpush3.bf16.msra.mxu1 %v4661_v51  ;;  %6369 = vmatprep.mubr.msk.bf16.mxu1 %vm7084_vm1, %v7083_v18  ;;  %v4805_v58 = vsel %vm1209_vm3, %v4800_v25, 0 }
 0xb6c   :  { %6379 = vmatprep.subr.bf16.mxu1 %v7083_v18 }
 0xb6d   :  { %v6668_v47 = vpop.eup %6667 }
 0xb6e   :  { %v4499_v15 = vmul.f32 %v6668_v47, %v8164_v22 }
 0xb70   :  { %v4507_v30 = vpack.c.bf16 %v4499_v15, %v4499_v15 }
 0xb71   :  { %v6670_v29 = vpop.eup %6669 }
 0xb72   :  { %6376 = vmatmul.mubr.msk.bf16.vlgmr.msra.gmra.mrb[92].mxu0 %vm501_vm2, %v4507_v30  ;;  %v4501_v16 = vmul.f32 %v6670_v29, %v8168_v34 }
 0xb73   :  { %6386 = vmatpush3.bf16.msra.mxu0 %v4805_v58  ;;  %6387 = vmatprep.mubr.msk.bf16.mxu0 %vm7084_vm1, %v7083_v18 }
 0xb74   :  { %v4509_v21 = vpack.c.bf16 %v4501_v16, %v4501_v16  ;;  %6397 = vmatprep.subr.bf16.mxu0 %v6537_v32 }
 0xb7a   :  { %6388 = vmatmul.mubr.msk.bf16.vlgmr.msra.gmra.mrb[96].mxu0 %vm501_vm2, %v4509_v21 }
 0xb7b   :  { %6398 = vmatpush3.bf16.msra.mxu0 %v6537_v32 }
 0xb7c   :  { %6399 = vmatprep.subr.bf16.mxu0 %v6538_v36 }
 0xb7f   :  { %6400 = vmatpush3.bf16.msra.mxu0 %v6538_v36 }
 0xb8f   :  { %v4474_v54 = vpop.xlane.xlu1 %4473 }
 0xb90   :  { %6671 = vrcp.f32 %v4474_v54  ;;  %v6473_v54 = vpop.permute.xlu0 %6472 }
 0xb91   :  { %v6474_v4 = vunpack.i.l.bf16 %v6473_v54 }
 0xb93   :  { %v4480_v22 = vpop.xlane.xlu1 %4479 }
 0xb94   :  { %6673 = vrcp.f32 %v4480_v22  ;;  %v6483_v22 = vpop.permute.xlu0 %6482 }
 0xb95   :  { %v6485_v2 = vunpack.i.h.bf16 %v6483_v22 }
 0xb9a   :  { %v6672_v45 = vpop.eup %6671 }
 0xb9b   :  { %v4498_v17 = vmul.f32 %v6672_v45, %v8190_v43  ;;  %v4486_v42 = vpop.xlane.xlu1 %4485  ;;  %v6493_v45 = vpop.permute.xlu0 %6492 }
 0xb9c   :  { %6675 = vrcp.f32 %v4486_v42 }
 0xb9d   :  { %v4506_v13 = vpack.c.bf16 %v4498_v17, %v4498_v17  ;;  %v6475_v17 = vunpack.i.h.bf16 %v6473_v54 }
 0xb9e   :  { %v6674_v44 = vpop.eup %6673 }
 0xb9f   :  { %6370 = vmatmul.mubr.msk.bf16.vlgmr.msra.gmra.mrb[104].mxu1 %vm501_vm2, %v4506_v13  ;;  %v4500_v34 = vmul.f32 %v6674_v44, %v8195_v27  ;;  %v4848_v61 = vpop.permute.xlu1 %4847  ;;  %v4992_v13 = vsel %vm501_vm2, %v7667_v55, %v6475_v17  ;;  %v4991_v44 = vsel %vm501_vm2, %v7665_v37, %v6474_v4  ;;  %v5818_v17 = vld [vmem:[#allocation11] ss:$0 sm:$0xff] }
 0xba0   :  { %6380 = vmatpush3.bf16.msra.mxu1 %v4757_v40  ;;  %6381 = vmatprep.mubr.msk.bf16.mxu1 %vm7084_vm1, %v7083_v18  ;;  %v4853_v43 = vsel %vm1209_vm3, %v4848_v61, 0 }
 0xba1   :  { %6391 = vmatprep.subr.bf16.mxu1 %v7083_v18  ;;  %v4508_v24 = vpack.c.bf16 %v4500_v34, %v4500_v34 }
 0xba6   :  { %v6676_v23 = vpop.eup %6675 }
 0xba7   :  { %6382 = vmatmul.mubr.msk.bf16.vlgmr.msra.gmra.mrb[108].mxu1 %vm501_vm2, %v4508_v24  ;;  %v4502_v5 = vmul.f32 %v6676_v23, %v8200_v38  ;;  %v5001_v24 = vsel %vm4999_vm4, %v4992_v13, %v6485_v2 }
 0xba8   :  { %6392 = vmatpush3.bf16.msra.mxu1 %v4853_v43  ;;  %6393 = vmatprep.mubr.msk.bf16.mxu1 %vm7084_vm1, %v7083_v18 }
 0xba9   :  { %v4510_v35 = vpack.c.bf16 %v4502_v5, %v4502_v5 }
 0xbaf   :  { %6394 = vmatmul.mubr.msk.bf16.vlgmr.msra.gmra.mrb[112].mxu1 %vm501_vm2, %v4510_v35  ;;  %v6478_v35 = vpop.permute.xlu1 %6477 }
 0xbb0   :  { %v6480_v55 = vunpack.i.h.bf16 %v6478_v35 }
 0xbe0   :  { %v4553_v8 = vpop.f32.mrb[84].mxu0 }
 0xbe1   :  { %v6353_v33 = vpop.f32.mrb[85].mxu0 }
 0xbe2   :  { %v4556_v27 = vpop.f32.mrb[86].mxu0 }
 0xbe3   :  { %v6354_v48 = vpop.f32.mrb[87].mxu0  ;;  %v6479_v27 = vunpack.i.l.bf16 %v6478_v35 }
 0xbe8   :  { %v4649_v56 = vpop.f32.mrb[88].mxu0 }
 0xbe9   :  { %v6365_v28 = vpop.f32.mrb[89].mxu0 }
 0xbea   :  { %v4652_v50 = vpop.f32.mrb[90].mxu0  ;;  %v4994_v28 = vsel %vm501_vm2, %v7671_v62, %v6480_v55 }
 0xbeb   :  { %v6366_v14 = vpop.f32.mrb[91].mxu0  ;;  %v4993_v50 = vsel %vm501_vm2, %v7669_v57, %v6479_v27 }
 0xc3d   :  { %v4601_v60 = vpop.f32.mrb[100].mxu1 }
 0xc3e   :  { %v6501_v41 = vpack.i.bf16 %v4601_v60, %v4553_v8  ;;  %v6359_v19 = vpop.f32.mrb[101].mxu1  ;;  %v6488_v8 = vpop.permute.xlu1 %6487 }
 0xc3f   :  { %v4604_v18 = vpop.f32.mrb[102].mxu1  ;;  %v6490_v48 = vunpack.i.h.bf16 %v6488_v8  ;;  %v6489_v37 = vunpack.i.l.bf16 %v6488_v8 }
 0xc40   :  { %6502 = vrot.lane.b32.xlu0 %v6501_v41, %s7089_s3  ;;  %v6360_v38 = vpop.f32.mrb[103].mxu1 }
 0xc41   :  { %v5002_v60 = vsel %vm4999_vm4, %v4993_v50, %v6489_v37  ;;  %v5003_v41 = vsel %vm4999_vm4, %v4994_v28, %v6490_v48  ;;  %v6713_v37 = vld [vmem:[#allocation2 + $0x30] sm:$0xff]  ;;  %v6714_v28 = vld [vmem:[#allocation2 + $0x20] sm:$0xff] }
 0xc42   :  { %v6498_v33 = vpop.permute.xlu1 %6497 }
 0xc44   :  { %6507 = vrot.lane.b32.xlu0 %v6506_v26, %s7088_s17 }
 0xc45   :  { %v4745_v31 = vpop.f32.mrb[92].mxu0 }
 0xc46   :  { %v6377_v52 = vpop.f32.mrb[93].mxu0 }
 0xc47   :  { %v4748_v12 = vpop.f32.mrb[94].mxu0  ;;  %v6495_v52 = vunpack.i.h.bf16 %v6493_v45 }
 0xc48   :  { %v6378_v6 = vpop.f32.mrb[95].mxu0  ;;  %v6494_v12 = vunpack.i.l.bf16 %v6493_v45 }
 0xc49   :  { %v4996_v57 = vsel %vm501_vm2, %v7675_v63, %v6495_v52 }
 0xc4d   :  { %v4841_v10 = vpop.f32.mrb[96].mxu0 }
 0xc4e   :  { %v6389_v7 = vpop.f32.mrb[97].mxu0 }
 0xc4f   :  { %v4844_v11 = vpop.f32.mrb[98].mxu0  ;;  %v4995_v7 = vsel %vm501_vm2, %v7673_v3, %v6494_v12 }
 0xc50   :  { %v6390_v1 = vpop.f32.mrb[99].mxu0 }
 0xc72   :  { %v4697_v0 = vpop.f32.mrb[104].mxu1 }
 0xc73   :  { %v6511_v59 = vpack.i.bf16 %v4697_v0, %v4649_v56  ;;  %v6371_v51 = vpop.f32.mrb[105].mxu1 }
 0xc74   :  { %v4700_v47 = vpop.f32.mrb[106].mxu1 }
 0xc75   :  { %6512 = vrot.lane.b32.xlu1 %v6511_v59, %s7089_s3  ;;  %v6372_v15 = vpop.f32.mrb[107].mxu1 }
 0xc79   :  { %6517 = vrot.lane.b32.xlu1 %v6516_v20, %s7088_s17  ;;  %v6484_v20 = vunpack.i.l.bf16 %v6483_v22 }
 0xc7a   :  { %v4793_v53 = vpop.f32.mrb[108].mxu1 }
 0xc7b   :  { %v6521_v39 = vpack.i.bf16 %v4793_v53, %v4745_v31  ;;  %v6383_v26 = vpop.f32.mrb[109].mxu1  ;;  %v5000_v61 = vsel %vm4999_vm4, %v4991_v44, %v6484_v20  ;;  %v6500_v53 = vunpack.i.h.bf16 %v6498_v33  ;;  %v6710_v20 = vld [vmem:[#allocation2] sm:$0xff] }
 0xc7c   :  { %v4796_v25 = vpop.f32.mrb[110].mxu1 }
 0xc7d   :  { %6522 = vrot.lane.b32.xlu0 %v6521_v39, %s7089_s3  ;;  %v6384_v30 = vpop.f32.mrb[111].mxu1  ;;  %v6499_v39 = vunpack.i.l.bf16 %v6498_v33  ;;  %v4998_v3 = vsel %vm501_vm2, %v7683_v46, %v6500_v53  ;;  %v6709_v46 = vld [vmem:[#allocation2 + $0x10] sm:$0xff] }
 0xc7f   :  { %v4997_v30 = vsel %vm501_vm2, %v7677_v9, %v6499_v39 }
 0xc82   :  { %v4889_v29 = vpop.f32.mrb[112].mxu1 }
 0xc83   :  { %v6526_v58 = vpack.i.bf16 %v4889_v29, %v4841_v10  ;;  %v6395_v16 = vpop.f32.mrb[113].mxu1 }
 0xc84   :  { %v4892_v21 = vpop.f32.mrb[114].mxu1 }
 0xc85   :  { %6527 = vrot.lane.b32.xlu1 %v6526_v58, %s7089_s3  ;;  %v6396_v49 = vpop.f32.mrb[115].mxu1 }
 0xcb2   :  { %v6503_v42 = vpop.permute.xlu0 %6502 }
 0xcb3   :  { %v6505_v40 = vunpack.i.h.bf16 %v6503_v42  ;;  %v6504_v34 = vunpack.i.l.bf16 %v6503_v42 }
 0xcb5   :  { %v5010_v23 = vsel %vm5008_vm5, %v5001_v24, %v6505_v40  ;;  %v5009_v43 = vsel %vm5008_vm5, %v5000_v61, %v6504_v34  ;;  %v6711_v40 = vld [vmem:[#allocation2 + $0x8] sm:$0xff]  ;;  %v6712_v24 = vld [vmem:[#allocation2 + $0x18] sm:$0xff] }
 0xcb6   :  { %v5017_v5 = vpack.c.bf16 %v5010_v23, %v5009_v43  ;;  %v6508_v19 = vpop.permute.xlu0 %6507 }
 0xcb7   :  { %v6510_v6 = vunpack.i.h.bf16 %v6508_v19  ;;  %v6509_v10 = vunpack.i.l.bf16 %v6508_v19 }
 0xcb8   :  { %6401 = vmatprep.mubr.msk.bf16.mxu0 %vm253_vm0, %v5017_v5 }
 0xcb9   :  { %v5005_v36 = vsel %vm4999_vm4, %v4996_v57, %v6510_v6  ;;  %v5004_v0 = vsel %vm4999_vm4, %v4995_v7, %v6509_v10 }
 0xce7   :  { %v6513_v56 = vpop.permute.xlu1 %6512 }
 0xce8   :  { %v6515_v14 = vunpack.i.h.bf16 %v6513_v56  ;;  %v6514_v32 = vunpack.i.l.bf16 %v6513_v56 }
 0xcea   :  { %v5012_v18 = vsel %vm5008_vm5, %v5003_v41, %v6515_v14  ;;  %v5011_v38 = vsel %vm5008_vm5, %v5002_v60, %v6514_v32  ;;  %v6715_v41 = vld [vmem:[#allocation2 + $0x38] sm:$0xff] }
 0xceb   :  { %v5018_v31 = vpack.c.bf16 %v5012_v18, %v5011_v38  ;;  %v6518_v59 = vpop.permute.xlu1 %6517  ;;  %v6716_v18 = vld [vmem:[#allocation2 + $0x28] sm:$0xff] }
 0xcec   :  { %v6520_v26 = vunpack.i.h.bf16 %v6518_v59  ;;  %v6519_v25 = vunpack.i.l.bf16 %v6518_v59 }
 0xced   :  { %6402 = vmatmul.mubr.msk.bf16.vlgmr.msra.gmra.mrb[100].mxu0 %vm253_vm0, %v5018_v31 }
 0xcee   :  { %v5007_v16 = vsel %vm4999_vm4, %v4998_v3, %v6520_v26  ;;  %v5006_v21 = vsel %vm4999_vm4, %v4997_v30, %v6519_v25 }
 0xcef   :  { %v6523_v62 = vpop.permute.xlu0 %6522 }
 0xcf0   :  { %v6525_v11 = vunpack.i.h.bf16 %v6523_v62  ;;  %v6524_v1 = vunpack.i.l.bf16 %v6523_v62 }
 0xcf2   :  { %v5014_v51 = vsel %vm5008_vm5, %v5005_v36, %v6525_v11  ;;  %v5013_v47 = vsel %vm5008_vm5, %v5004_v0, %v6524_v1 }
 0xcf3   :  { %v5019_v15 = vpack.c.bf16 %v5014_v51, %v5013_v47 }
 0xcf5   :  { %6405 = vmatprep.mubr.msk.bf16.mxu0 %vm253_vm0, %v5019_v15 }
 0xcf7   :  { %v6528_v63 = vpop.permute.xlu1 %6527 }
 0xcf8   :  { %v6530_v29 = vunpack.i.h.bf16 %v6528_v63  ;;  %v6529_v58 = vunpack.i.l.bf16 %v6528_v63 }
 0xcfa   :  { %v5016_v49 = vsel %vm5008_vm5, %v5007_v16, %v6530_v29  ;;  %v5015_v54 = vsel %vm5008_vm5, %v5006_v21, %v6529_v58 }
 0xcfb   :  { %v5020_v22 = vpack.c.bf16 %v5016_v49, %v5015_v54 }
 0xcfd   :  { %6406 = vmatmul.mubr.msk.bf16.gmra.mrb[104].mxu0 %vm253_vm0, %v5020_v22 }
 0xdc0   :  { %v6403_v45 = vpop.f32.mrb[100].mxu0 }
 0xdc1   :  { %v5083_v4 = vpop.f32.mrb[101].mxu0  ;;  %v5116_v2 = vadd.f32 %v6709_v46, %v6403_v45 }
 0xdc2   :  { %v5114_v9 = vadd.f32 %v6710_v20, %v5083_v4  ;;  %v6404_v42 = vpop.f32.mrb[102].mxu0 }
 0xdc3   :  { %v5086_v13 = vpop.f32.mrb[103].mxu0  ;;  %v5131_v61 = vadd.f32 %v5818_v17, %v5116_v2  ;;  %v5117_v23 = vadd.f32 %v6712_v24, %v6404_v42 }
 0xdc4   :  { %v5129_v44 = vadd.f32 %v5818_v17, %v5114_v9  ;;  %v5115_v34 = vadd.f32 %v6711_v40, %v5086_v13 }
 0xdc5   :  { %v5132_v8 = vadd.f32 %v5818_v17, %v5117_v23  ;;  %v5145_v33 = vsel %vm253_vm0, %v5131_v61, 0.0 }
 0xdc6   :  { %v5130_v43 = vadd.f32 %v5818_v17, %v5115_v34  ;;  %v5139_v5 = vsel %vm253_vm0, %v5129_v44, 0.0 }
 0xdc7   :  { %5140 = vadd.xlane.f32.xlu0 %v5139_v5  ;;  %v5148_v55 = vsel %vm253_vm0, %v5132_v8, 0.0 }
 0xdc8   :  { %v5142_v35 = vsel %vm253_vm0, %v5130_v43, 0.0 }
 0xdc9   :  { %5143 = vadd.xlane.f32.xlu1 %v5142_v35  ;;  %v6539_v35 = vld [vmem:[#allocation13] sm:$0xff]  }
 0xdca   :  { %6409 = vmatprep.subr.bf16.mxu1 %v6539_v35 }
 0xdcb   :  { %5146 = vadd.xlane.f32.xlu0 %v5145_v33  ;;  %6410 = vmatpush3.bf16.msra.mxu1 %v6539_v35  ;;  %v6541_v33 = vld [vmem:[#allocation16] sm:$0xff]  }
 0xdcc   :  { %6421 = vmatprep.subr.bf16.mxu0 %v6541_v33 }
 0xdcd   :  { %6422 = vmatpush3.bf16.msra.mxu0 %v6541_v33 }
 0xdcf   :  { %5149 = vadd.xlane.f32.xlu0 %v5148_v55  ;;  %v6542_v55 = vld [vmem:[#allocation16 + $0x8] sm:$0xff]  }
 0xdd0   :  { %v6407_v27 = vpop.f32.mrb[104].mxu0  ;;  %6423 = vmatprep.subr.bf16.mxu0 %v6542_v55 }
 0xdd1   :  { %v5099_v48 = vpop.f32.mrb[105].mxu0  ;;  %v5120_v56 = vadd.f32 %v6713_v37, %v6407_v27  ;;  %v6543_v27 = vld [vmem:[#allocation16 + $0x10] sm:$0xff]   ;;  %6424 = vmatpush3.bf16.msra.mxu0 %v6542_v55  ;;  %v6545_v37 = vld [vmem:[#allocation16 + $0x20] sm:$0xff]  }
 0xdd2   :  { %v5118_v50 = vadd.f32 %v6714_v28, %v5099_v48  ;;  %v6408_v14 = vpop.f32.mrb[106].mxu0  ;;  %6425 = vmatprep.subr.bf16.mxu0 %v6543_v27  ;;  %v6544_v48 = vld [vmem:[#allocation16 + $0x18] sm:$0xff]  }
 0xdd3   :  { %v5102_v32 = vpop.f32.mrb[107].mxu0  ;;  %v5121_v19 = vadd.f32 %v6715_v41, %v6408_v14  ;;  %v5135_v31 = vadd.f32 %v5818_v17, %v5120_v56  ;;  %v6546_v56 = vld [vmem:[#allocation16 + $0x28] sm:$0xff]  }
 0xdd4   :  { %v5133_v60 = vadd.f32 %v5818_v17, %v5118_v50  ;;  %v5119_v38 = vadd.f32 %v6716_v18, %v5102_v32 }
 0xdd5   :  { %v5136_v6 = vadd.f32 %v5818_v17, %v5121_v19  ;;  %v5157_v62 = vsel %vm253_vm0, %v5135_v31, 0.0  ;;  %6426 = vmatpush3.bf16.msra.mxu0 %v6543_v27 }
 0xdd6   :  { %v5134_v52 = vadd.f32 %v5818_v17, %v5119_v38  ;;  %v5151_v12 = vsel %vm253_vm0, %v5133_v60, 0.0  ;;  %6427 = vmatprep.subr.bf16.mxu0 %v6544_v48 }
 0xdd7   :  { %5152 = vadd.xlane.f32.xlu0 %v5151_v12  ;;  %v5160_v57 = vsel %vm253_vm0, %v5136_v6, 0.0 }
 0xdd8   :  { %v5154_v10 = vsel %vm253_vm0, %v5134_v52, 0.0 }
 0xdd9   :  { %5155 = vadd.xlane.f32.xlu1 %v5154_v10  ;;  %6428 = vmatpush3.bf16.msra.mxu0 %v6544_v48  ;;  %v5819_v10 = vld [vmem:[#allocation19] ss:$0 sm:$0xff] }
 0xdda   :  { %6429 = vmatprep.subr.bf16.mxu0 %v6545_v37 }
 0xddb   :  { %5158 = vadd.xlane.f32.xlu0 %v5157_v62 }
 0xddd   :  { %5161 = vadd.xlane.f32.xlu1 %v5160_v57  ;;  %6430 = vmatpush3.bf16.msra.mxu0 %v6545_v37 }
 0xdde   :  { %6431 = vmatprep.subr.bf16.mxu0 %v6546_v56 }
 0xde1   :  { %6432 = vmatpush3.bf16.msra.mxu0 %v6546_v56  ;;  %v6548_v56 = vld [vmem:[#allocation16 + $0x38] sm:$0xff]  }
 0xe54   :  { %v5141_v7 = vpop.xlane.xlu0 %5140 }
 0xe55   :  { %v5164_v11 = vmul.f32 0.03125, %v5141_v7 }
 0xe56   :  { %v5144_v1 = vpop.xlane.xlu1 %5143 }
 0xe57   :  { %v8311_v36 = vsub.f32 %v5129_v44, %v5164_v11  ;;  %v5165_v0 = vmul.f32 0.03125, %v5144_v1 }
 0xe58   :  { %v5147_v59 = vpop.xlane.xlu0 %5146 }
 0xe59   :  { %v8313_v51 = vsub.f32 %v5130_v43, %v5165_v0  ;;  %v5166_v47 = vmul.f32 0.03125, %v5147_v59  ;;  %v5180_v15 = vmul.f32 %v8311_v36, %v8311_v36 }
 0xe5b   :  { %v8317_v53 = vsub.f32 %v5131_v61, %v5166_v47  ;;  %v5188_v39 = vsel %vm253_vm0, %v5180_v15, 0.0  ;;  %v5181_v26 = vmul.f32 %v8313_v51, %v8313_v51 }
 0xe5c   :  { %v5150_v25 = vpop.xlane.xlu0 %5149  ;;  %5189 = vadd.xlane.f32.xlu0 %v5188_v39 }
 0xe5d   :  { %v5167_v63 = vmul.f32 0.03125, %v5150_v25  ;;  %v5191_v3 = vsel %vm253_vm0, %v5181_v26, 0.0  ;;  %v5182_v30 = vmul.f32 %v8317_v53, %v8317_v53  ;;  %v5820_v26 = vld [vmem:[#allocation20] ss:$0 sm:$0xff] }
 0xe5e   :  { %5192 = vadd.xlane.f32.xlu1 %v5191_v3 }
 0xe5f   :  { %v8325_v29 = vsub.f32 %v5132_v8, %v5167_v63  ;;  %v5194_v58 = vsel %vm253_vm0, %v5182_v30, 0.0  ;;  %v6540_v8 = vld [vmem:[#allocation13 + $0x8] sm:$0xff]  }
 0xe60   :  { %5195 = vadd.xlane.f32.xlu0 %v5194_v58  ;;  %6411 = vmatprep.subr.bf16.mxu1 %v6540_v8 }
 0xe61   :  { %v5183_v16 = vmul.f32 %v8325_v29, %v8325_v29  ;;  %6412 = vmatpush3.bf16.msra.mxu1 %v6540_v8 }
 0xe63   :  { %v5197_v21 = vsel %vm253_vm0, %v5183_v16, 0.0 }
 0xe64   :  { %v5153_v49 = vpop.xlane.xlu0 %5152  ;;  %5198 = vadd.xlane.f32.xlu1 %v5197_v21 }
 0xe65   :  { %v5168_v54 = vmul.f32 0.03125, %v5153_v49 }
 0xe66   :  { %v5156_v22 = vpop.xlane.xlu1 %5155 }
 0xe67   :  { %v8331_v45 = vsub.f32 %v5133_v60, %v5168_v54  ;;  %v5169_v17 = vmul.f32 0.03125, %v5156_v22 }
 0xe68   :  { %v5159_v4 = vpop.xlane.xlu0 %5158 }
 0xe69   :  { %v8333_v46 = vsub.f32 %v5134_v52, %v5169_v17  ;;  %v5170_v2 = vmul.f32 0.03125, %v5159_v4  ;;  %v5184_v20 = vmul.f32 %v8331_v45, %v8331_v45 }
 0xe6a   :  { %v5162_v9 = vpop.xlane.xlu1 %5161 }
 0xe6b   :  { %v8337_v42 = vsub.f32 %v5135_v31, %v5170_v2  ;;  %v5171_v13 = vmul.f32 0.03125, %v5162_v9  ;;  %v5200_v44 = vsel %vm253_vm0, %v5184_v20, 0.0  ;;  %v5185_v40 = vmul.f32 %v8333_v46, %v8333_v46 }
 0xe6c   :  { %5201 = vadd.xlane.f32.xlu0 %v5200_v44 }
 0xe6d   :  { %v8342_v34 = vsub.f32 %v5136_v6, %v5171_v13  ;;  %v5203_v61 = vsel %vm253_vm0, %v5185_v40, 0.0  ;;  %v5186_v24 = vmul.f32 %v8337_v42, %v8337_v42 }
 0xe6e   :  { %5204 = vadd.xlane.f32.xlu1 %v5203_v61 }
 0xe6f   :  { %v5206_v23 = vsel %vm253_vm0, %v5186_v24, 0.0  ;;  %v5187_v43 = vmul.f32 %v8342_v34, %v8342_v34 }
 0xe70   :  { %5207 = vadd.xlane.f32.xlu0 %v5206_v23 }
 0xe71   :  { %v5209_v5 = vsel %vm253_vm0, %v5187_v43, 0.0 }
 0xe72   :  { %5210 = vadd.xlane.f32.xlu1 %v5209_v5 }
 0xee9   :  { %v5190_v28 = vpop.xlane.xlu0 %5189 }
 0xeea   :  { %v5212_v50 = vmul.f32 0.03125, %v5190_v28  ;;  %v5821_v28 = vld [vmem:[#allocation14] ss:$0 sm:$0xff] }
 0xeeb   :  { %v5193_v14 = vpop.xlane.xlu1 %5192 }
 0xeec   :  { %v5220_v32 = vadd.f32 1e-05, %v5212_v50  ;;  %v5213_v60 = vmul.f32 0.03125, %v5193_v14 }
 0xeed   :  { %v5196_v41 = vpop.xlane.xlu0 %5195 }
 0xeee   :  { %6677 = vrsqrt.f32 %v5220_v32  ;;  %v5221_v19 = vadd.f32 1e-05, %v5213_v60  ;;  %v5214_v18 = vmul.f32 0.03125, %v5196_v41 }
 0xef0   :  { %6679 = vrsqrt.f32 %v5221_v19  ;;  %v5222_v38 = vadd.f32 1e-05, %v5214_v18 }
 0xef1   :  { %v5199_v31 = vpop.xlane.xlu1 %5198 }
 0xef2   :  { %6681 = vrsqrt.f32 %v5222_v38  ;;  %v5215_v52 = vmul.f32 0.03125, %v5199_v31 }
 0xef4   :  { %v5223_v12 = vadd.f32 1e-05, %v5215_v52 }
 0xef6   :  { %6683 = vrsqrt.f32 %v5223_v12 }
 0xef8   :  { %v6678_v6 = vpop.eup %6677 }
 0xef9   :  { %v5236_v62 = vmul.f32 %v6678_v6, %v8311_v36  ;;  %v5202_v57 = vpop.xlane.xlu0 %5201 }
 0xefa   :  { %v6680_v7 = vpop.eup %6679  ;;  %v5216_v11 = vmul.f32 0.03125, %v5202_v57 }
 0xefb   :  { %v5237_v1 = vmul.f32 %v6680_v7, %v8313_v51  ;;  %v5205_v0 = vpop.xlane.xlu1 %5204  ;;  %v5250_v59 = vmul.f32 %v5819_v10, %v5236_v62 }
 0xefc   :  { %v6682_v47 = vpop.eup %6681  ;;  %v5224_v15 = vadd.f32 1e-05, %v5216_v11  ;;  %v5217_v39 = vmul.f32 0.03125, %v5205_v0 }
 0xefd   :  { %v5238_v25 = vmul.f32 %v6682_v47, %v8317_v53  ;;  %v5208_v63 = vpop.xlane.xlu0 %5207  ;;  %v5251_v3 = vmul.f32 %v5819_v10, %v5237_v1  ;;  %v8354_v36 = vadd.f32 %v5820_v26, %v5250_v59 }
 0xefe   :  { %6685 = vrsqrt.f32 %v5224_v15  ;;  %v5225_v30 = vadd.f32 1e-05, %v5217_v39  ;;  %v5218_v58 = vmul.f32 0.03125, %v5208_v63 }
 0xeff   :  { %v5211_v16 = vpop.xlane.xlu1 %5210  ;;  %v8356_v21 = vadd.f32 %v5820_v26, %v5251_v3  ;;  %v5252_v22 = vmul.f32 %v5819_v10, %v5238_v25 }
 0xf00   :  { %v6684_v49 = vpop.eup %6683  ;;  %6687 = vrsqrt.f32 %v5225_v30  ;;  %v5226_v51 = vadd.f32 1e-05, %v5218_v58  ;;  %v5219_v54 = vmul.f32 0.03125, %v5211_v16  ;;  %v5828_v58 = vld [vmem:[#allocation17] ss:$0 sm:$0xff] }
 0xf01   :  { %v5239_v17 = vmul.f32 %v6684_v49, %v8325_v29  ;;  %v5272_v53 = vpack.c.bf16 %v8356_v21, %v8354_v36  ;;  %v8362_v20 = vadd.f32 %v5820_v26, %v5252_v22 }
 0xf02   :  { %6689 = vrsqrt.f32 %v5226_v51  ;;  %v5227_v4 = vadd.f32 1e-05, %v5219_v54 }
 0xf03   :  { %v5253_v2 = vmul.f32 %v5819_v10, %v5239_v17  ;;  %6413 = vmatprep.mubr.msk.bf16.mxu1 %vm253_vm0, %v5272_v53 }
 0xf04   :  { %6691 = vrsqrt.f32 %v5227_v4 }
 0xf05   :  { %v8364_v9 = vadd.f32 %v5820_v26, %v5253_v2 }
 0xf07   :  { %v5273_v13 = vpack.c.bf16 %v8364_v9, %v8362_v20 }
 0xf08   :  { %v6686_v44 = vpop.eup %6685 }
 0xf09   :  { %v5240_v40 = vmul.f32 %v6686_v44, %v8331_v45  ;;  %6414 = vmatmul.mubr.msk.bf16.vlgmr.msra.gmra.mrb[116].mxu1 %vm253_vm0, %v5273_v13 }
 0xf0a   :  { %v6688_v29 = vpop.eup %6687 }
 0xf0b   :  { %v5241_v61 = vmul.f32 %v6688_v29, %v8333_v46  ;;  %v5254_v24 = vmul.f32 %v5819_v10, %v5240_v40 }
 0xf0c   :  { %v6690_v23 = vpop.eup %6689 }
 0xf0d   :  { %v5242_v43 = vmul.f32 %v6690_v23, %v8337_v42  ;;  %v5255_v5 = vmul.f32 %v5819_v10, %v5241_v61  ;;  %v8373_v33 = vadd.f32 %v5820_v26, %v5254_v24 }
 0xf0e   :  { %v6692_v35 = vpop.eup %6691 }
 0xf0f   :  { %v5243_v8 = vmul.f32 %v6692_v35, %v8342_v34  ;;  %v8375_v55 = vadd.f32 %v5820_v26, %v5255_v5  ;;  %v5256_v27 = vmul.f32 %v5819_v10, %v5242_v43  ;;  %v6547_v34 = vld [vmem:[#allocation16 + $0x30] sm:$0xff]  }
 0xf10   :  { %6433 = vmatprep.subr.bf16.mxu0 %v6547_v34 }
 0xf11   :  { %v5274_v45 = vpack.c.bf16 %v8375_v55, %v8373_v33  ;;  %v5257_v48 = vmul.f32 %v5819_v10, %v5243_v8  ;;  %v8380_v46 = vadd.f32 %v5820_v26, %v5256_v27  ;;  %6434 = vmatpush3.bf16.msra.mxu0 %v6547_v34 }
 0xf12   :  { %6435 = vmatprep.subr.bf16.mxu0 %v6548_v56 }
 0xf13   :  { %6417 = vmatprep.mubr.msk.bf16.mxu1 %vm253_vm0, %v5274_v45  ;;  %v8382_v37 = vadd.f32 %v5820_v26, %v5257_v48 }
 0xf15   :  { %v5275_v42 = vpack.c.bf16 %v8382_v37, %v8380_v46  ;;  %6436 = vmatpush3.bf16.msra.mxu0 %v6548_v56 }
 0xf17   :  { %6418 = vmatmul.mubr.msk.bf16.gmra.mrb[120].mxu1 %vm253_vm0, %v5275_v42 }
 0xfdc   :  { %v6415_v50 = vpop.f32.mrb[116].mxu1 }
 0xfdd   :  { %v5354_v14 = vadd.f32 %v6415_v50, %v5821_v28  ;;  %v5345_v32 = vpop.f32.mrb[117].mxu1 }
 0xfde   :  { %v5346_v60 = vadd.f32 %v5821_v28, %v5345_v32  ;;  %v6416_v41 = vpop.f32.mrb[118].mxu1 }
 0xfdf   :  { %v5357_v19 = vadd.f32 %v6416_v41, %v5821_v28  ;;  %v5348_v18 = vpop.f32.mrb[119].mxu1  ;;  %v5378_v31 = vmax.f32 %v5354_v14, 0.0 }
 0xfe0   :  { %v5349_v38 = vadd.f32 %v5821_v28, %v5348_v18  ;;  %v5376_v12 = vmax.f32 %v5346_v60, 0.0 }
 0xfe1   :  { %v5379_v52 = vmax.f32 %v5357_v19, 0.0 }
 0xfe2   :  { %v5377_v6 = vmax.f32 %v5349_v38, 0.0 }
 0xfe3   :  { %v5385_v10 = vpack.c.bf16 %v5379_v52, %v5378_v31 }
 0xfe4   :  { %v5384_v62 = vpack.c.bf16 %v5377_v6, %v5376_v12 }
 0xfe6   :  { %6437 = vmatprep.mubr.bf16.mxu0 %v5384_v62 }
 0xfe7   :  { %6438 = vmatmul.mubr.bf16.vlgmr.msra.gmra.mrb[108].mxu0 %v5385_v10 }
 0xfea   :  { %v6419_v57 = vpop.f32.mrb[120].mxu1 }
 0xfeb   :  { %v5370_v7 = vadd.f32 %v6419_v57, %v5821_v28  ;;  %v5361_v11 = vpop.f32.mrb[121].mxu1 }
 0xfec   :  { %v5362_v1 = vadd.f32 %v5821_v28, %v5361_v11  ;;  %v6420_v0 = vpop.f32.mrb[122].mxu1 }
 0xfed   :  { %v5373_v59 = vadd.f32 %v6420_v0, %v5821_v28  ;;  %v5364_v47 = vpop.f32.mrb[123].mxu1  ;;  %v5382_v39 = vmax.f32 %v5370_v7, 0.0 }
 0xfee   :  { %v5365_v15 = vadd.f32 %v5821_v28, %v5364_v47  ;;  %v5380_v25 = vmax.f32 %v5362_v1, 0.0 }
 0xfef   :  { %v5383_v26 = vmax.f32 %v5373_v59, 0.0 }
 0xff0   :  { %v5381_v63 = vmax.f32 %v5365_v15, 0.0 }
 0xff1   :  { %v5387_v3 = vpack.c.bf16 %v5383_v26, %v5382_v39 }
 0xff2   :  { %v5386_v30 = vpack.c.bf16 %v5381_v63, %v5380_v25 }
 0xff4   :  { %6441 = vmatprep.mubr.bf16.mxu0 %v5386_v30 }
 0xff5   :  { %6442 = vmatmul.mubr.bf16.gmra.mrb[112].mxu0 %v5387_v3 }
0x10ba   :  { %v6439_v16 = vpop.f32.mrb[108].mxu0 }
0x10bb   :  { %v5502_v49 = vadd.f32 %v6439_v16, %v5828_v58  ;;  %v5493_v51 = vpop.f32.mrb[109].mxu0 }
0x10bc   :  { %v5494_v54 = vadd.f32 %v5828_v58, %v5493_v51  ;;  %v6440_v22 = vpop.f32.mrb[110].mxu0 }
0x10bd   :  { %v5526_v17 = vadd.f32 %v5502_v49, %v8362_v20  ;;  %v5505_v53 = vadd.f32 %v6440_v22, %v5828_v58  ;;  %v5496_v4 = vpop.f32.mrb[111].mxu0 }
0x10be   :  { %v5497_v2 = vadd.f32 %v5828_v58, %v5496_v4  ;;  %v5524_v13 = vadd.f32 %v5494_v54, %v8354_v36 }
0x10bf   :  { %v5527_v44 = vadd.f32 %v5505_v53, %v8364_v9  ;;  %v5540_v40 = vsel %vm253_vm0, %v5526_v17, 0.0 }
0x10c0   :  { %5541 = vadd.xlane.f32.xlu0 %v5540_v40  ;;  %v5525_v29 = vadd.f32 %v5497_v2, %v8356_v21  ;;  %v5534_v24 = vsel %vm253_vm0, %v5524_v13, 0.0 }
0x10c1   :  { %v5543_v61 = vsel %vm253_vm0, %v5527_v44, 0.0 }
0x10c2   :  { %5544 = vadd.xlane.f32.xlu1 %v5543_v61  ;;  %v5537_v20 = vsel %vm253_vm0, %v5525_v29, 0.0 }
0x10c4   :  { %5535 = vadd.xlane.f32.xlu0 %v5534_v24 }
0x10c6   :  { %5538 = vadd.xlane.f32.xlu1 %v5537_v20 }
0x10c8   :  { %v6443_v23 = vpop.f32.mrb[112].mxu0 }
0x10c9   :  { %v5509_v43 = vpop.f32.mrb[113].mxu0  ;;  %v5518_v5 = vadd.f32 %v6443_v23, %v5828_v58 }
0x10ca   :  { %v5510_v36 = vadd.f32 %v5828_v58, %v5509_v43  ;;  %v6444_v35 = vpop.f32.mrb[114].mxu0 }
0x10cb   :  { %v5512_v9 = vpop.f32.mrb[115].mxu0  ;;  %v5521_v27 = vadd.f32 %v6444_v35, %v5828_v58  ;;  %v5530_v21 = vadd.f32 %v5518_v5, %v8380_v46 }
0x10cc   :  { %v5528_v8 = vadd.f32 %v5510_v36, %v8373_v33  ;;  %v5513_v45 = vadd.f32 %v5828_v58, %v5512_v9  ;;  %v5837_v9 = vld [vmem:[#allocation22] ss:$0 sm:$0xff] }
0x10cd   :  { %v5531_v34 = vadd.f32 %v5521_v27, %v8382_v37  ;;  %v5552_v28 = vsel %vm253_vm0, %v5530_v21, 0.0 }
0x10ce   :  { %v5529_v48 = vadd.f32 %v5513_v45, %v8375_v55  ;;  %v5546_v42 = vsel %vm253_vm0, %v5528_v8, 0.0 }
0x10cf   :  { %5547 = vadd.xlane.f32.xlu0 %v5546_v42  ;;  %v5555_v50 = vsel %vm253_vm0, %v5531_v34, 0.0 }
0x10d0   :  { %v5549_v56 = vsel %vm253_vm0, %v5529_v48, 0.0 }
0x10d1   :  { %5550 = vadd.xlane.f32.xlu1 %v5549_v56 }
0x10d3   :  { %5553 = vadd.xlane.f32.xlu0 %v5552_v28 }
0x10d5   :  { %5556 = vadd.xlane.f32.xlu1 %v5555_v50 }
0x114d   :  { %v5542_v33 = vpop.xlane.xlu0 %5541 }
0x114e   :  { %v5560_v14 = vmul.f32 0.03125, %v5542_v33 }
0x114f   :  { %v5545_v32 = vpop.xlane.xlu1 %5544 }
0x1150   :  { %v8403_v46 = vsub.f32 %v5526_v17, %v5560_v14  ;;  %v5561_v55 = vmul.f32 0.03125, %v5545_v32 }
0x1151   :  { %v5536_v60 = vpop.xlane.xlu0 %5535 }
0x1152   :  { %v8405_v41 = vsub.f32 %v5527_v44, %v5561_v55  ;;  %v5558_v19 = vmul.f32 0.03125, %v5536_v60  ;;  %v5576_v37 = vmul.f32 %v8403_v46, %v8403_v46 }
0x1153   :  { %v5539_v18 = vpop.xlane.xlu1 %5538 }
0x1154   :  { %v8409_v38 = vsub.f32 %v5524_v13, %v5558_v19  ;;  %v5559_v31 = vmul.f32 0.03125, %v5539_v18  ;;  %v5588_v52 = vsel %vm253_vm0, %v5576_v37, 0.0  ;;  %v5577_v12 = vmul.f32 %v8405_v41, %v8405_v41 }
0x1155   :  { %5589 = vadd.xlane.f32.xlu0 %v5588_v52 }
0x1156   :  { %v8414_v6 = vsub.f32 %v5525_v29, %v5559_v31  ;;  %v5591_v10 = vsel %vm253_vm0, %v5577_v12, 0.0  ;;  %v5574_v62 = vmul.f32 %v8409_v38, %v8409_v38 }
0x1157   :  { %5592 = vadd.xlane.f32.xlu1 %v5591_v10 }
0x1158   :  { %v5582_v57 = vsel %vm253_vm0, %v5574_v62, 0.0  ;;  %v5575_v7 = vmul.f32 %v8414_v6, %v8414_v6 }
0x1159   :  { %5583 = vadd.xlane.f32.xlu0 %v5582_v57 }
0x115a   :  { %v5585_v11 = vsel %vm253_vm0, %v5575_v7, 0.0 }
0x115b   :  { %5586 = vadd.xlane.f32.xlu1 %v5585_v11 }
0x115c   :  { %v5548_v1 = vpop.xlane.xlu0 %5547 }
0x115d   :  { %v5562_v0 = vmul.f32 0.03125, %v5548_v1 }
0x115e   :  { %v5551_v59 = vpop.xlane.xlu1 %5550 }
0x115f   :  { %v8423_v47 = vsub.f32 %v5528_v8, %v5562_v0  ;;  %v5563_v15 = vmul.f32 0.03125, %v5551_v59 }
0x1160   :  { %v5554_v39 = vpop.xlane.xlu0 %5553 }
0x1161   :  { %v8425_v26 = vsub.f32 %v5529_v48, %v5563_v15  ;;  %v5564_v25 = vmul.f32 0.03125, %v5554_v39  ;;  %v5578_v63 = vmul.f32 %v8423_v47, %v8423_v47  ;;  %v5838_v48 = vld [vmem:[#allocation23] ss:$0 sm:$0xff] }
0x1162   :  { %v5557_v3 = vpop.xlane.xlu1 %5556 }
0x1163   :  { %v8429_v30 = vsub.f32 %v5530_v21, %v5564_v25  ;;  %v5565_v58 = vmul.f32 0.03125, %v5557_v3  ;;  %v5594_v16 = vsel %vm253_vm0, %v5578_v63, 0.0  ;;  %v5579_v49 = vmul.f32 %v8425_v26, %v8425_v26 }
0x1164   :  { %5595 = vadd.xlane.f32.xlu0 %v5594_v16 }
0x1165   :  { %v8434_v51 = vsub.f32 %v5531_v34, %v5565_v58  ;;  %v5597_v54 = vsel %vm253_vm0, %v5579_v49, 0.0  ;;  %v5580_v22 = vmul.f32 %v8429_v30, %v8429_v30 }
0x1166   :  { %5598 = vadd.xlane.f32.xlu1 %v5597_v54 }
0x1167   :  { %v5600_v17 = vsel %vm253_vm0, %v5580_v22, 0.0  ;;  %v5581_v53 = vmul.f32 %v8434_v51, %v8434_v51 }
0x1168   :  { %5601 = vadd.xlane.f32.xlu0 %v5600_v17 }
0x1169   :  { %v5603_v4 = vsel %vm253_vm0, %v5581_v53, 0.0 }
0x116a   :  { %5604 = vadd.xlane.f32.xlu1 %v5603_v4 }
0x11e2   :  { %v5590_v2 = vpop.xlane.xlu0 %5589 }
0x11e3   :  { %v5608_v13 = vmul.f32 0.03125, %v5590_v2 }
0x11e4   :  { %v5593_v44 = vpop.xlane.xlu1 %5592 }
0x11e5   :  { %v5616_v40 = vadd.f32 1e-05, %v5608_v13  ;;  %v5609_v29 = vmul.f32 0.03125, %v5593_v44 }
0x11e6   :  { %v5584_v61 = vpop.xlane.xlu0 %5583 }
0x11e7   :  { %6693 = vrsqrt.f32 %v5616_v40  ;;  %v5617_v24 = vadd.f32 1e-05, %v5609_v29  ;;  %v5606_v20 = vmul.f32 0.03125, %v5584_v61 }
0x11e8   :  { %v5587_v23 = vpop.xlane.xlu1 %5586 }
0x11e9   :  { %6695 = vrsqrt.f32 %v5617_v24  ;;  %v5614_v43 = vadd.f32 1e-05, %v5606_v20  ;;  %v5607_v5 = vmul.f32 0.03125, %v5587_v23 }
0x11eb   :  { %6697 = vrsqrt.f32 %v5614_v43  ;;  %v5615_v36 = vadd.f32 1e-05, %v5607_v5 }
0x11ed   :  { %6699 = vrsqrt.f32 %v5615_v36 }
0x11f1   :  { %v6694_v35 = vpop.eup %6693  ;;  %v5596_v8 = vpop.xlane.xlu0 %5595 }
0x11f2   :  { %v5632_v27 = vmul.f32 %v6694_v35, %v8403_v46  ;;  %v5610_v45 = vmul.f32 0.03125, %v5596_v8 }
0x11f3   :  { %v6696_v21 = vpop.eup %6695  ;;  %v5599_v42 = vpop.xlane.xlu1 %5598 }
0x11f4   :  { %v5646_v34 = vmul.f32 %v5837_v9, %v5632_v27  ;;  %v5633_v56 = vmul.f32 %v6696_v21, %v8405_v41  ;;  %v5618_v28 = vadd.f32 1e-05, %v5610_v45  ;;  %v5611_v50 = vmul.f32 0.03125, %v5599_v42 }
0x11f5   :  { %v6698_v33 = vpop.eup %6697  ;;  %v5602_v14 = vpop.xlane.xlu0 %5601 }
0x11f6   :  { %v5660_v32 = vadd.f32 %v5838_v48, %v5646_v34  ;;  %v5647_v55 = vmul.f32 %v5837_v9, %v5633_v56  ;;  %v5630_v60 = vmul.f32 %v6698_v33, %v8409_v38  ;;  %6701 = vrsqrt.f32 %v5618_v28 }
0x11f7   :  { %v6700_v19 = vpop.eup %6699  ;;  %v5619_v37 = vadd.f32 1e-05, %v5611_v50  ;;  %v5612_v18 = vmul.f32 0.03125, %v5602_v14  ;;  %v5605_v46 = vpop.xlane.xlu1 %5604 }
0x11f8   :  { %5668 = vst.msk [vmem:[#allocation25 + $0x10] sm:$0xff] %vm253_vm0, %v5660_v32  ;;  %v5661_v31 = vadd.f32 %v5838_v48, %v5647_v55  ;;  %v5644_v52 = vmul.f32 %v5837_v9, %v5630_v60  ;;  %v5631_v12 = vmul.f32 %v6700_v19, %v8414_v6  ;;  %v5613_v41 = vmul.f32 0.03125, %v5605_v46 }
0x11f9   :  { %6703 = vrsqrt.f32 %v5619_v37  ;;  %v5620_v10 = vadd.f32 1e-05, %v5612_v18 }
0x11fa   :  { %5669 = vst.msk [vmem:[#allocation25 + $0x18] sm:$0xff] %vm253_vm0, %v5661_v31  ;;  %v5658_v62 = vadd.f32 %v5838_v48, %v5644_v52  ;;  %v5645_v57 = vmul.f32 %v5837_v9, %v5631_v12  ;;  %v5621_v7 = vadd.f32 1e-05, %v5613_v41 }
0x11fb   :  { %6705 = vrsqrt.f32 %v5620_v10 }
0x11fc   :  { %5666 = vst.msk [vmem:[#allocation25] sm:$0xff] %vm253_vm0, %v5658_v62  ;;  %v5659_v38 = vadd.f32 %v5838_v48, %v5645_v57  ;;  %6707 = vrsqrt.f32 %v5621_v7 }
0x11fe   :  { %5667 = vst.msk [vmem:[#allocation25 + $0x8] sm:$0xff] %vm253_vm0, %v5659_v38 }
0x1200   :  { %v6702_v11 = vpop.eup %6701 }
0x1201   :  { %v5634_v1 = vmul.f32 %v6702_v11, %v8423_v47 }
0x1203   :  { %v6704_v0 = vpop.eup %6703  ;;  %v5648_v6 = vmul.f32 %v5837_v9, %v5634_v1 }
0x1204   :  { %v5635_v59 = vmul.f32 %v6704_v0, %v8425_v26 }
0x1205   :  { %v6706_v15 = vpop.eup %6705  ;;  %v5662_v39 = vadd.f32 %v5838_v48, %v5648_v6 }
0x1206   :  { %v6708_v25 = vpop.eup %6707  ;;  %v5649_v63 = vmul.f32 %v5837_v9, %v5635_v59  ;;  %v5636_v3 = vmul.f32 %v6706_v15, %v8429_v30 }
0x1207   :  { %5670 = vst.msk [vmem:[#allocation25 + $0x20] sm:$0xff] %vm253_vm0, %v5662_v39  ;;  %v5637_v58 = vmul.f32 %v6708_v25, %v8434_v51 }
0x1208   :  { %v5663_v16 = vadd.f32 %v5838_v48, %v5649_v63  ;;  %v5650_v49 = vmul.f32 %v5837_v9, %v5636_v3 }
0x1209   :  { %v5651_v54 = vmul.f32 %v5837_v9, %v5637_v58 }
0x120a   :  { %5671 = vst.msk [vmem:[#allocation25 + $0x28] sm:$0xff] %vm253_vm0, %v5663_v16  ;;  %v5664_v47 = vadd.f32 %v5838_v48, %v5650_v49 }
0x120b   :  { %v5665_v22 = vadd.f32 %v5838_v48, %v5651_v54 }
0x120c   :  { %5672 = vst.msk [vmem:[#allocation25 + $0x30] sm:$0xff] %vm253_vm0, %v5664_v47 }
0x120d   :  { %5673 = vst.msk [vmem:[#allocation25 + $0x38] sm:$0xff] %vm253_vm0, %v5665_v22 }
0x120e   :  { %7036 = shalt.err (!%p7033_p4)
}
0x120f   :  { %s7037_s30 = scalar_lea.hbm %s8488_s14, 1024 }
0x1210   :  { %p7038_p5 = scmp.ne.s32.totalorder %s8488_s14, %s7037_s30  ;;  %p7041_p6 = scmp.lt.u32.totalorder %s7037_s30, %s8488_s14 }
0x1212   :  { %p7043_p7 = pnand %p7041_p6, %p7038_p5 }
0x1214   :  { %7046 = shalt.err (!%p7043_p7)
}
0x1215   :  { %5685 = dma.vmem_to_hbm [thread:$0]  %s5680_s22, 1024, %s8488_s14, [#allocation4], %s7074_s11, %s7074_s11, %s7075_s19  }
0x1216   :  { %7063 = dma.done.wait [#allocation4], 1024  }
0x1217   :  { %7064 = vsyncadd [#allocation4], 4294966272 }
0x1218   :  { %5689 = vsyncpa [#allocation3], 1 }
0x1219   :  { %5690 = vsyncpa [#allocation6], 1 }
0x121a   :  { %5691 = vsyncpa [#allocation9], 1 }
0x121b   :  { %5692 = vsyncpa [#allocation12], 1 }
0x121c   :  { %5693 = vsyncpa [#allocation15], 1 }
0x121d   :  { %5694 = vsyncpa [#allocation18], 1 }
0x121e   :  { %5695 = vsyncpa [#allocation21], 1 }
0x121f   :  { %5696 = vsyncpa [#allocation24], 1 }
0x1220   :  { %5697 = vsyncpa [#allocation4], 1 }

</bundles_post_ra>
